<compile_context>
chip_gen: v6e
topology: v6e:2x2x1
jax: 0.10.0
libtpu: 0.0.40
codegen_flags: <defaults>
</compile_context>

<pallas_src>
import functools

import jax
import jax.numpy as jnp
import numpy as np
from jax.experimental import pallas as pl
from jax.experimental.pallas import tpu as pltpu


# -----------------------------------------------------------------------------
# Pallas kernel: fused recurrent loop of one ConvLSTM layer.
# grid = (B, T); t is the inner ("arbitrary") axis, h/c stay in VMEM scratch.
# -----------------------------------------------------------------------------
def _convlstm_recurrent_kernel(xg_ref, wh_ref, hseq_ref, clast_ref,
                               hpad_ref, c_ref,
                               *, kh, kw, H, W, Ch, ph, pw):
    # xg_ref   : (1, 1, H, W, 4*Ch) f32   precomputed x-side gates (+ bias)
    # wh_ref   : (kh, kw, Ch, 4*Ch) bf16  hidden->gates conv weight (HWIO)
    # hseq_ref : (1, 1, H, W, Ch)  f32    per-timestep hidden output
    # clast_ref: (1, H, W, Ch)     f32    final cell state (written at t==T-1)
    # hpad_ref : (H+kh-1, W+kw-1, Ch) f32 VMEM scratch: zero-padded hidden state
    # c_ref    : (H, W, Ch)        f32    VMEM scratch: cell state
    t = pl.program_id(1)

    @pl.when(t == 0)
    def _init():
        hpad_ref[...] = jnp.zeros_like(hpad_ref)   # zero state + zero halo
        c_ref[...] = jnp.zeros_like(c_ref)

    hp = hpad_ref[...]                             # (Hp, Wp, Ch) f32
    wh = wh_ref[...]                               # (kh, kw, Ch, 4*Ch) bf16

    # x-side contribution (includes the conv bias), accumulated in f32.
    acc = xg_ref[0, 0]                             # (H, W, 4*Ch) f32

    # h-side "same" conv as kh*kw shifted channel matmuls on the MXU
    # (bf16 operands, f32 accumulation, default precision).
    for i in range(kh):
        for j in range(kw):
            win = hp[i:i + H, j:j + W, :].astype(jnp.bfloat16)   # (H, W, Ch)
            acc = acc + jax.lax.dot_general(
                win, wh[i, j],
                dimension_numbers=(((2,), (0,)), ((), ())),
                preferred_element_type=jnp.float32)              # (H, W, 4*Ch)

    # Gate order matches torch.split(combined_conv, Ch, dim=channel): i, f, o, g
    # Apply sigmoid once on the contiguous first 3*Ch lanes, tanh on the rest.
    sig = jax.nn.sigmoid(acc[..., :3 * Ch])
    g_g = jnp.tanh(acc[..., 3 * Ch:])
    i_g = sig[..., 0 * Ch:1 * Ch]
    f_g = sig[..., 1 * Ch:2 * Ch]
    o_g = sig[..., 2 * Ch:3 * Ch]

    c_next = f_g * c_ref[...] + i_g * g_g
    h_next = o_g * jnp.tanh(c_next)

    # Carry state in VMEM (interior of the padded buffer; halo stays zero).
    c_ref[...] = c_next
    hpad_ref[ph:ph + H, pw:pw + W, :] = h_next

    # Per-timestep layer output.
    hseq_ref[0, 0] = h_next.astype(hseq_ref.dtype)

    # Final cell state only on the last timestep (output block is resident
    # across the t axis and written back when b advances).
    @pl.when(t == pl.num_programs(1) - 1)
    def _finalize():
        clast_ref[0] = c_next.astype(clast_ref.dtype)


# -----------------------------------------------------------------------------
# One ConvLSTM layer over the full sequence (NHWC).
# -----------------------------------------------------------------------------
def _convlstm_layer(x_bthwc, w_hwio, bias, hidden_dim):
    B, T, H, W, Cin = x_bthwc.shape
    kh, kw, Ct, Co = w_hwio.shape
    Ch = hidden_dim
    assert Ct == Cin + Ch and Co == 4 * Ch
    ph, pw = kh // 2, kw // 2
    Hp, Wp = H + kh - 1, W + kw - 1

    # Split the cell conv: conv([x;h], W) = conv(x, Wx) + conv(h, Wh).
    w_x = w_hwio[:, :, :Cin, :].astype(jnp.bfloat16)
    w_h = w_hwio[:, :, Cin:, :].astype(jnp.bfloat16)

    # Non-recurrent input projection for the whole sequence: one XLA conv
    # (bf16 in, f32 out), bias folded in.  Amortised over T — not per-step glue.
    xg = jax.lax.conv_general_dilated(
        x_bthwc.reshape(B * T, H, W, Cin).astype(jnp.bfloat16), w_x,
        window_strides=(1, 1), padding="SAME",
        dimension_numbers=("NHWC", "HWIO", "NHWC"),
        preferred_element_type=jnp.float32)
    xg = (xg + bias.astype(jnp.float32)).reshape(B, T, H, W, Co)

    kernel = functools.partial(_convlstm_recurrent_kernel,
                               kh=kh, kw=kw, H=H, W=W, Ch=Ch, ph=ph, pw=pw)

    h_seq, c_last = pl.pallas_call(
        kernel,
        out_shape=(jax.ShapeDtypeStruct((B, T, H, W, Ch), jnp.float32),
                   jax.ShapeDtypeStruct((B, H, W, Ch), jnp.float32)),
        grid=(B, T),
        in_specs=[
            pl.BlockSpec((1, 1, H, W, Co), lambda b, t: (b, t, 0, 0, 0)),
            pl.BlockSpec((kh, kw, Ch, Co), lambda b, t: (0, 0, 0, 0)),
        ],
        out_specs=(
            pl.BlockSpec((1, 1, H, W, Ch), lambda b, t: (b, t, 0, 0, 0)),
            pl.BlockSpec((1, H, W, Ch), lambda b, t: (b, 0, 0, 0)),
        ),
        scratch_shapes=[
            pltpu.VMEM((Hp, Wp, Ch), jnp.float32),   # padded hidden state
            pltpu.VMEM((H, W, Ch), jnp.float32),     # cell state
        ],
        compiler_params=pltpu.CompilerParams(
            dimension_semantics=("parallel", "arbitrary")),
    )(xg, w_h)
    return h_seq, c_last


# -----------------------------------------------------------------------------
# ConvLSTM module (multi-layer) — glue in plain JAX, jitted end-to-end.
# -----------------------------------------------------------------------------
class ConvLSTMPallas:
    def __init__(self, input_size, input_dim, hidden_dim, kernel_size,
                 bias=True, return_all_layers=False, key=None):
        if key is None:
            key = jax.random.PRNGKey(0)
        if isinstance(hidden_dim, list):
            num_layers = len(hidden_dim)
        else:
            num_layers = 1
            hidden_dim = [hidden_dim]
        if not isinstance(kernel_size, list):
            kernel_size = [kernel_size] * num_layers

        self.height, self.width = input_size
        self.input_dim = input_dim
        self.hidden_dim = hidden_dim
        self.kernel_size = kernel_size
        self.num_layers = num_layers
        self.return_all_layers = return_all_layers

        # Deterministic parameter init (same shapes as nn.Conv2d in the cell),
        # stored in HWIO: (kh, kw, Cin+Ch, 4*Ch).
        self.weights = []
        self.biases = []
        for i in range(num_layers):
            cur_in = input_dim if i == 0 else hidden_dim[i - 1]
            kh, kw = kernel_size[i]
            key, wk, bk = jax.random.split(key, 3)
            fan_in = cur_in + hidden_dim[i]
            w = jax.random.normal(wk, (kh, kw, fan_in, 4 * hidden_dim[i]),
                                  jnp.float32) * (0.1 / np.sqrt(fan_in))
            b = (jax.random.normal(bk, (4 * hidden_dim[i],), jnp.float32) * 0.01
                 if bias else jnp.zeros((4 * hidden_dim[i],), jnp.float32))
            self.weights.append(w)
            self.biases.append(b)

        self._forward = jax.jit(self._forward_impl)

    def _forward_impl(self, params, x):
        # x: (B, T, C, H, W).  (The original module's permute() result is
        # discarded, so the input is effectively treated as batch-first.)
        cur = jnp.transpose(x, (0, 1, 3, 4, 2))          # -> (B, T, H, W, C)
        layer_outputs = []
        last_states = []
        for li in range(self.num_layers):
            w, b = params[li]
            h_seq, c_last = _convlstm_layer(cur, w, b, self.hidden_dim[li])
            cur = h_seq                                  # feed next layer (NHWC)
            layer_outputs.append(jnp.transpose(h_seq, (0, 1, 4, 2, 3)))
            last_states.append((jnp.transpose(h_seq[:, -1], (0, 3, 1, 2)),
                                jnp.transpose(c_last, (0, 3, 1, 2))))
        if not self.return_all_layers:
            layer_outputs = layer_outputs[-1:]
            last_states = last_states[-1:]
        return layer_outputs, last_states

    def __call__(self, x):
        params = tuple((w, b) for w, b in zip(self.weights, self.biases))
        return self._forward(params, x)


# -----------------------------------------------------------------------------
# Pure-JAX reference (f32, HIGHEST precision) for correctness check only.
# -----------------------------------------------------------------------------
def _ref_cell(x, h, c, w_hwio, bias):
    combined = jnp.concatenate([x, h], axis=-1)
    conv = jax.lax.conv_general_dilated(
        combined, w_hwio, window_strides=(1, 1), padding="SAME",
        dimension_numbers=("NHWC", "HWIO", "NHWC"),
        precision=jax.lax.Precision.HIGHEST) + bias
    Ch = h.shape[-1]
    cc_i, cc_f, cc_o, cc_g = (conv[..., k * Ch:(k + 1) * Ch] for k in range(4))
    i = jax.nn.sigmoid(cc_i); f = jax.nn.sigmoid(cc_f)
    o = jax.nn.sigmoid(cc_o); g = jnp.tanh(cc_g)
    c_next = f * c + i * g
    h_next = o * jnp.tanh(c_next)
    return h_next, c_next


def _ref_forward(model, x):
    B, T = x.shape[0], x.shape[1]
    cur = jnp.transpose(x, (0, 1, 3, 4, 2))
    outs_last = None
    h = c = None
    for li in range(model.num_layers):
        Ch = model.hidden_dim[li]
        h = jnp.zeros((B, model.height, model.width, Ch), jnp.float32)
        c = jnp.zeros_like(h)
        outs = []
        for t in range(T):
            h, c = _ref_cell(cur[:, t], h, c, model.weights[li], model.biases[li])
            outs.append(h)
        cur = jnp.stack(outs, axis=1)
        outs_last = jnp.transpose(cur, (0, 1, 4, 2, 3))
    return outs_last, (jnp.transpose(h, (0, 3, 1, 2)),
                       jnp.transpose(c, (0, 3, 1, 2)))


# -----------------------------------------------------------------------------
if __name__ == "__main__":
    key = jax.random.PRNGKey(0)
    B, T, Cin, H, W = 2, 8, 4, 16, 16
    hidden_dim = [32, 32]
    kernel_size = (3, 3)

    kx, kp = jax.random.split(key)
    x = jax.random.normal(kx, (B, T, Cin, H, W), jnp.float32)

    model = ConvLSTMPallas(input_size=(H, W), input_dim=Cin,
                           hidden_dim=hidden_dim, kernel_size=kernel_size,
                           bias=True, return_all_layers=False, key=kp)

    layer_outputs, last_states = model(x)
    out = jax.block_until_ready(layer_outputs[0])        # (B, T, hidden, H, W)
    h_last, c_last = last_states[0]
    jax.block_until_ready(h_last)
    jax.block_until_ready(c_last)

    # Correctness check vs pure-JAX f32 reference (kernel uses bf16 matmul
    # operands with f32 accumulation, hence the relaxed tolerance).
    ref_out, (ref_h, ref_c) = _ref_forward(model, x)
    np.testing.assert_allclose(np.asarray(out), np.asarray(ref_out),
                               rtol=2e-2, atol=2e-2)
    np.testing.assert_allclose(np.asarray(h_last), np.asarray(ref_h),
                               rtol=2e-2, atol=2e-2)
    np.testing.assert_allclose(np.asarray(c_last), np.asarray(ref_c),
                               rtol=2e-2, atol=2e-2)

    print("KERNEL_OK")
</pallas_src>

<mosaic_0001>
module attributes {stable_mosaic.version = 11 : i64} {
  func.func @_convlstm_recurrent_kernel(%arg0: i32, %arg1: i32, %arg2: memref<1x1x16x16x128xf32, #tpu.memory_space<vmem>>, %arg3: memref<3x3x32x128xbf16, #tpu.memory_space<vmem>>, %arg4: memref<1x1x16x16x32xf32, #tpu.memory_space<vmem>>, %arg5: memref<1x16x16x32xf32, #tpu.memory_space<vmem>>, %arg6: memref<18x18x32xf32, #tpu.memory_space<vmem>>, %arg7: memref<16x16x32xf32, #tpu.memory_space<vmem>>) attributes {dimension_semantics = [#tpu.dimension_semantics<parallel>, #tpu.dimension_semantics<arbitrary>], iteration_bounds = array<i64: 2, 8>, scalar_prefetch = 0 : i64, scratch_operands = 2 : i64, tpu.core_type = #tpu.core_type<tc>, window_params = [{transform_indices = @transform_0, window_bounds = array<i64: 1, 1, 16, 16, 128>}, {pipeline_mode = #tpu.pipeline_mode<synchronous>, transform_indices = @transform_1, window_bounds = array<i64: 3, 3, 32, 128>}, {transform_indices = @transform_2, window_bounds = array<i64: 1, 1, 16, 16, 32>}, {transform_indices = @transform_3, window_bounds = array<i64: 1, 16, 16, 32>}]} {
    %c0_i32 = arith.constant 0 : i32
    %0 = arith.cmpi eq, %arg1, %c0_i32 : i32
    %1 = arith.extui %0 : i1 to i32
    %c0_i32_0 = arith.constant 0 : i32
    %2 = arith.cmpi ne, %1, %c0_i32_0 : i32
    scf.if %2 {
      %cst_35 = arith.constant 0.000000e+00 : f32
      %86 = vector.broadcast %cst_35 : f32 to vector<18x18x32xf32>
      %c0_36 = arith.constant 0 : index
      %c0_37 = arith.constant 0 : index
      %c0_38 = arith.constant 0 : index
      %87 = vector.load %arg6[%c0_36, %c0_37, %c0_38] : memref<18x18x32xf32, #tpu.memory_space<vmem>>, vector<18x18x32xf32>
      tpu.vector_store %arg6[%c0_36, %c0_37, %c0_38], %86 {strides = array<i32>} : memref<18x18x32xf32, #tpu.memory_space<vmem>>, vector<18x18x32xf32>,
      %cst_39 = arith.constant 0.000000e+00 : f32
      %88 = vector.broadcast %cst_39 : f32 to vector<16x16x32xf32>
      %c0_40 = arith.constant 0 : index
      %c0_41 = arith.constant 0 : index
      %c0_42 = arith.constant 0 : index
      %89 = vector.load %arg7[%c0_40, %c0_41, %c0_42] : memref<16x16x32xf32, #tpu.memory_space<vmem>>, vector<16x16x32xf32>
      tpu.vector_store %arg7[%c0_40, %c0_41, %c0_42], %88 {strides = array<i32>} : memref<16x16x32xf32, #tpu.memory_space<vmem>>, vector<16x16x32xf32>,
    } else {
    }
    %c0 = arith.constant 0 : index
    %c0_1 = arith.constant 0 : index
    %c0_2 = arith.constant 0 : index
    %3 = vector.load %arg6[%c0, %c0_1, %c0_2] : memref<18x18x32xf32, #tpu.memory_space<vmem>>, vector<18x18x32xf32>
    %c0_3 = arith.constant 0 : index
    %c0_4 = arith.constant 0 : index
    %c0_5 = arith.constant 0 : index
    %c0_6 = arith.constant 0 : index
    %4 = vector.load %arg3[%c0_3, %c0_4, %c0_5, %c0_6] : memref<3x3x32x128xbf16, #tpu.memory_space<vmem>>, vector<3x3x32x128xbf16>
    %c0_7 = arith.constant 0 : index
    %c0_8 = arith.constant 0 : index
    %c0_9 = arith.constant 0 : index
    %c0_10 = arith.constant 0 : index
    %c0_11 = arith.constant 0 : index
    %5 = vector.load %arg2[%c0_7, %c0_8, %c0_9, %c0_10, %c0_11] : memref<1x1x16x16x128xf32, #tpu.memory_space<vmem>>, vector<1x1x16x16x128xf32>
    %6 = vector.shape_cast %5 : vector<1x1x16x16x128xf32> to vector<16x16x128xf32>
    %7 = vector.extract_strided_slice %3 {offsets = [0, 0, 0], sizes = [16, 16, 32], strides = [1, 1, 1]} : vector<18x18x32xf32> to vector<16x16x32xf32>
    %8 = arith.truncf %7 : vector<16x16x32xf32> to vector<16x16x32xbf16>
    %9 = vector.extract_strided_slice %4 {offsets = [0, 0, 0, 0], sizes = [1, 1, 32, 128], strides = [1, 1, 1, 1]} : vector<3x3x32x128xbf16> to vector<1x1x32x128xbf16>
    %10 = vector.shape_cast %9 : vector<1x1x32x128xbf16> to vector<32x128xbf16>
    %cst = arith.constant dense<0.000000e+00> : vector<16x16x128xf32>
    %11 = tpu.matmul %8, %10, %cst {dimension_numbers = #tpu.dot_dimension_numbers<[2], [0], [0, 1], [1], [0, 0, 0, 1, 1, 1], [], []>} : vector<16x16x32xbf16>, vector<32x128xbf16>, vector<16x16x128xf32> -> vector<16x16x128xf32>
    %12 = arith.addf %6, %11 : vector<16x16x128xf32>
    %13 = vector.extract_strided_slice %3 {offsets = [0, 1, 0], sizes = [16, 16, 32], strides = [1, 1, 1]} : vector<18x18x32xf32> to vector<16x16x32xf32>
    %14 = arith.truncf %13 : vector<16x16x32xf32> to vector<16x16x32xbf16>
    %15 = vector.extract_strided_slice %4 {offsets = [0, 1, 0, 0], sizes = [1, 1, 32, 128], strides = [1, 1, 1, 1]} : vector<3x3x32x128xbf16> to vector<1x1x32x128xbf16>
    %16 = vector.shape_cast %15 : vector<1x1x32x128xbf16> to vector<32x128xbf16>
    %cst_12 = arith.constant dense<0.000000e+00> : vector<16x16x128xf32>
    %17 = tpu.matmul %14, %16, %cst_12 {dimension_numbers = #tpu.dot_dimension_numbers<[2], [0], [0, 1], [1], [0, 0, 0, 1, 1, 1], [], []>} : vector<16x16x32xbf16>, vector<32x128xbf16>, vector<16x16x128xf32> -> vector<16x16x128xf32>
    %18 = arith.addf %12, %17 : vector<16x16x128xf32>
    %19 = vector.extract_strided_slice %3 {offsets = [0, 2, 0], sizes = [16, 16, 32], strides = [1, 1, 1]} : vector<18x18x32xf32> to vector<16x16x32xf32>
    %20 = arith.truncf %19 : vector<16x16x32xf32> to vector<16x16x32xbf16>
    %21 = vector.extract_strided_slice %4 {offsets = [0, 2, 0, 0], sizes = [1, 1, 32, 128], strides = [1, 1, 1, 1]} : vector<3x3x32x128xbf16> to vector<1x1x32x128xbf16>
    %22 = vector.shape_cast %21 : vector<1x1x32x128xbf16> to vector<32x128xbf16>
    %cst_13 = arith.constant dense<0.000000e+00> : vector<16x16x128xf32>
    %23 = tpu.matmul %20, %22, %cst_13 {dimension_numbers = #tpu.dot_dimension_numbers<[2], [0], [0, 1], [1], [0, 0, 0, 1, 1, 1], [], []>} : vector<16x16x32xbf16>, vector<32x128xbf16>, vector<16x16x128xf32> -> vector<16x16x128xf32>
    %24 = arith.addf %18, %23 : vector<16x16x128xf32>
    %25 = vector.extract_strided_slice %3 {offsets = [1, 0, 0], sizes = [16, 16, 32], strides = [1, 1, 1]} : vector<18x18x32xf32> to vector<16x16x32xf32>
    %26 = arith.truncf %25 : vector<16x16x32xf32> to vector<16x16x32xbf16>
    %27 = vector.extract_strided_slice %4 {offsets = [1, 0, 0, 0], sizes = [1, 1, 32, 128], strides = [1, 1, 1, 1]} : vector<3x3x32x128xbf16> to vector<1x1x32x128xbf16>
    %28 = vector.shape_cast %27 : vector<1x1x32x128xbf16> to vector<32x128xbf16>
    %cst_14 = arith.constant dense<0.000000e+00> : vector<16x16x128xf32>
    %29 = tpu.matmul %26, %28, %cst_14 {dimension_numbers = #tpu.dot_dimension_numbers<[2], [0], [0, 1], [1], [0, 0, 0, 1, 1, 1], [], []>} : vector<16x16x32xbf16>, vector<32x128xbf16>, vector<16x16x128xf32> -> vector<16x16x128xf32>
    %30 = arith.addf %24, %29 : vector<16x16x128xf32>
    %31 = vector.extract_strided_slice %3 {offsets = [1, 1, 0], sizes = [16, 16, 32], strides = [1, 1, 1]} : vector<18x18x32xf32> to vector<16x16x32xf32>
    %32 = arith.truncf %31 : vector<16x16x32xf32> to vector<16x16x32xbf16>
    %33 = vector.extract_strided_slice %4 {offsets = [1, 1, 0, 0], sizes = [1, 1, 32, 128], strides = [1, 1, 1, 1]} : vector<3x3x32x128xbf16> to vector<1x1x32x128xbf16>
    %34 = vector.shape_cast %33 : vector<1x1x32x128xbf16> to vector<32x128xbf16>
    %cst_15 = arith.constant dense<0.000000e+00> : vector<16x16x128xf32>
    %35 = tpu.matmul %32, %34, %cst_15 {dimension_numbers = #tpu.dot_dimension_numbers<[2], [0], [0, 1], [1], [0, 0, 0, 1, 1, 1], [], []>} : vector<16x16x32xbf16>, vector<32x128xbf16>, vector<16x16x128xf32> -> vector<16x16x128xf32>
    %36 = arith.addf %30, %35 : vector<16x16x128xf32>
    %37 = vector.extract_strided_slice %3 {offsets = [1, 2, 0], sizes = [16, 16, 32], strides = [1, 1, 1]} : vector<18x18x32xf32> to vector<16x16x32xf32>
    %38 = arith.truncf %37 : vector<16x16x32xf32> to vector<16x16x32xbf16>
    %39 = vector.extract_strided_slice %4 {offsets = [1, 2, 0, 0], sizes = [1, 1, 32, 128], strides = [1, 1, 1, 1]} : vector<3x3x32x128xbf16> to vector<1x1x32x128xbf16>
    %40 = vector.shape_cast %39 : vector<1x1x32x128xbf16> to vector<32x128xbf16>
    %cst_16 = arith.constant dense<0.000000e+00> : vector<16x16x128xf32>
    %41 = tpu.matmul %38, %40, %cst_16 {dimension_numbers = #tpu.dot_dimension_numbers<[2], [0], [0, 1], [1], [0, 0, 0, 1, 1, 1], [], []>} : vector<16x16x32xbf16>, vector<32x128xbf16>, vector<16x16x128xf32> -> vector<16x16x128xf32>
    %42 = arith.addf %36, %41 : vector<16x16x128xf32>
    %43 = vector.extract_strided_slice %3 {offsets = [2, 0, 0], sizes = [16, 16, 32], strides = [1, 1, 1]} : vector<18x18x32xf32> to vector<16x16x32xf32>
    %44 = arith.truncf %43 : vector<16x16x32xf32> to vector<16x16x32xbf16>
    %45 = vector.extract_strided_slice %4 {offsets = [2, 0, 0, 0], sizes = [1, 1, 32, 128], strides = [1, 1, 1, 1]} : vector<3x3x32x128xbf16> to vector<1x1x32x128xbf16>
    %46 = vector.shape_cast %45 : vector<1x1x32x128xbf16> to vector<32x128xbf16>
    %cst_17 = arith.constant dense<0.000000e+00> : vector<16x16x128xf32>
    %47 = tpu.matmul %44, %46, %cst_17 {dimension_numbers = #tpu.dot_dimension_numbers<[2], [0], [0, 1], [1], [0, 0, 0, 1, 1, 1], [], []>} : vector<16x16x32xbf16>, vector<32x128xbf16>, vector<16x16x128xf32> -> vector<16x16x128xf32>
    %48 = arith.addf %42, %47 : vector<16x16x128xf32>
    %49 = vector.extract_strided_slice %3 {offsets = [2, 1, 0], sizes = [16, 16, 32], strides = [1, 1, 1]} : vector<18x18x32xf32> to vector<16x16x32xf32>
    %50 = arith.truncf %49 : vector<16x16x32xf32> to vector<16x16x32xbf16>
    %51 = vector.extract_strided_slice %4 {offsets = [2, 1, 0, 0], sizes = [1, 1, 32, 128], strides = [1, 1, 1, 1]} : vector<3x3x32x128xbf16> to vector<1x1x32x128xbf16>
    %52 = vector.shape_cast %51 : vector<1x1x32x128xbf16> to vector<32x128xbf16>
    %cst_18 = arith.constant dense<0.000000e+00> : vector<16x16x128xf32>
    %53 = tpu.matmul %50, %52, %cst_18 {dimension_numbers = #tpu.dot_dimension_numbers<[2], [0], [0, 1], [1], [0, 0, 0, 1, 1, 1], [], []>} : vector<16x16x32xbf16>, vector<32x128xbf16>, vector<16x16x128xf32> -> vector<16x16x128xf32>
    %54 = arith.addf %48, %53 : vector<16x16x128xf32>
    %55 = vector.extract_strided_slice %3 {offsets = [2, 2, 0], sizes = [16, 16, 32], strides = [1, 1, 1]} : vector<18x18x32xf32> to vector<16x16x32xf32>
    %56 = arith.truncf %55 : vector<16x16x32xf32> to vector<16x16x32xbf16>
    %57 = vector.extract_strided_slice %4 {offsets = [2, 2, 0, 0], sizes = [1, 1, 32, 128], strides = [1, 1, 1, 1]} : vector<3x3x32x128xbf16> to vector<1x1x32x128xbf16>
    %58 = vector.shape_cast %57 : vector<1x1x32x128xbf16> to vector<32x128xbf16>
    %cst_19 = arith.constant dense<0.000000e+00> : vector<16x16x128xf32>
    %59 = tpu.matmul %56, %58, %cst_19 {dimension_numbers = #tpu.dot_dimension_numbers<[2], [0], [0, 1], [1], [0, 0, 0, 1, 1, 1], [], []>} : vector<16x16x32xbf16>, vector<32x128xbf16>, vector<16x16x128xf32> -> vector<16x16x128xf32>
    %60 = arith.addf %54, %59 : vector<16x16x128xf32>
    %61 = vector.extract_strided_slice %60 {offsets = [0, 0, 0], sizes = [16, 16, 96], strides = [1, 1, 1]} : vector<16x16x128xf32> to vector<16x16x96xf32>
    %62 = arith.negf %61 : vector<16x16x96xf32>
    %63 = math.exp %62 : vector<16x16x96xf32>
    %cst_20 = arith.constant 1.000000e+00 : f32
    %64 = vector.broadcast %cst_20 : f32 to vector<16x16x96xf32>
    %65 = arith.addf %64, %63 : vector<16x16x96xf32>
    %66 = arith.divf %64, %65 : vector<16x16x96xf32>
    %67 = vector.extract_strided_slice %60 {offsets = [0, 0, 96], sizes = [16, 16, 32], strides = [1, 1, 1]} : vector<16x16x128xf32> to vector<16x16x32xf32>
    %68 = math.tanh %67 : vector<16x16x32xf32>
    %69 = vector.extract_strided_slice %66 {offsets = [0, 0, 0], sizes = [16, 16, 32], strides = [1, 1, 1]} : vector<16x16x96xf32> to vector<16x16x32xf32>
    %70 = vector.extract_strided_slice %66 {offsets = [0, 0, 32], sizes = [16, 16, 32], strides = [1, 1, 1]} : vector<16x16x96xf32> to vector<16x16x32xf32>
    %71 = vector.extract_strided_slice %66 {offsets = [0, 0, 64], sizes = [16, 16, 32], strides = [1, 1, 1]} : vector<16x16x96xf32> to vector<16x16x32xf32>
    %c0_21 = arith.constant 0 : index
    %c0_22 = arith.constant 0 : index
    %c0_23 = arith.constant 0 : index
    %72 = vector.load %arg7[%c0_21, %c0_22, %c0_23] : memref<16x16x32xf32, #tpu.memory_space<vmem>>, vector<16x16x32xf32>
    %73 = arith.mulf %70, %72 : vector<16x16x32xf32>
    %74 = arith.mulf %69, %68 : vector<16x16x32xf32>
    %75 = arith.addf %73, %74 : vector<16x16x32xf32>
    %76 = math.tanh %75 : vector<16x16x32xf32>
    %77 = arith.mulf %71, %76 : vector<16x16x32xf32>
    %c0_24 = arith.constant 0 : index
    %c0_25 = arith.constant 0 : index
    %c0_26 = arith.constant 0 : index
    %78 = vector.load %arg7[%c0_24, %c0_25, %c0_26] : memref<16x16x32xf32, #tpu.memory_space<vmem>>, vector<16x16x32xf32>
    tpu.vector_store %arg7[%c0_24, %c0_25, %c0_26], %75 {strides = array<i32>} : memref<16x16x32xf32, #tpu.memory_space<vmem>>, vector<16x16x32xf32>,
    %c1 = arith.constant 1 : index
    %c1_27 = arith.constant 1 : index
    %c0_28 = arith.constant 0 : index
    %79 = vector.load %arg6[%c1, %c1_27, %c0_28] : memref<18x18x32xf32, #tpu.memory_space<vmem>>, vector<16x16x32xf32>
    tpu.vector_store %arg6[%c1, %c1_27, %c0_28], %77 {strides = array<i32>} : memref<18x18x32xf32, #tpu.memory_space<vmem>>, vector<16x16x32xf32>,
    %c0_29 = arith.constant 0 : index
    %c0_30 = arith.constant 0 : index
    %c0_31 = arith.constant 0 : index
    %c0_32 = arith.constant 0 : index
    %c0_33 = arith.constant 0 : index
    %80 = vector.load %arg4[%c0_29, %c0_30, %c0_31, %c0_32, %c0_33] : memref<1x1x16x16x32xf32, #tpu.memory_space<vmem>>, vector<1x1x16x16x32xf32>
    %81 = vector.shape_cast %80 : vector<1x1x16x16x32xf32> to vector<16x16x32xf32>
    %82 = vector.shape_cast %77 : vector<16x16x32xf32> to vector<1x1x16x16x32xf32>
    tpu.vector_store %arg4[%c0_29, %c0_30, %c0_31, %c0_32, %c0_33], %82 {strides = array<i32>} : memref<1x1x16x16x32xf32, #tpu.memory_space<vmem>>, vector<1x1x16x16x32xf32>,
    %c7_i32 = arith.constant 7 : i32
    %83 = arith.cmpi eq, %arg1, %c7_i32 : i32
    %84 = arith.extui %83 : i1 to i32
    %c0_i32_34 = arith.constant 0 : i32
    %85 = arith.cmpi ne, %84, %c0_i32_34 : i32
    scf.if %85 {
      %c0_35 = arith.constant 0 : index
      %c0_36 = arith.constant 0 : index
      %c0_37 = arith.constant 0 : index
      %c0_38 = arith.constant 0 : index
      %86 = vector.load %arg5[%c0_35, %c0_36, %c0_37, %c0_38] : memref<1x16x16x32xf32, #tpu.memory_space<vmem>>, vector<1x16x16x32xf32>
      %87 = vector.shape_cast %86 : vector<1x16x16x32xf32> to vector<16x16x32xf32>
      %88 = vector.shape_cast %75 : vector<16x16x32xf32> to vector<1x16x16x32xf32>
      tpu.vector_store %arg5[%c0_35, %c0_36, %c0_37, %c0_38], %88 {strides = array<i32>} : memref<1x16x16x32xf32, #tpu.memory_space<vmem>>, vector<1x16x16x32xf32>,
    } else {
    }
    return
  }
  func.func @transform_0(%arg0: i32, %arg1: i32) -> (i32, i32, i32, i32, i32) {
    %c0_i32 = arith.constant 0 : i32
    %c0_i32_0 = arith.constant 0 : i32
    %c0_i32_1 = arith.constant 0 : i32
    %c0_i32_2 = arith.constant 0 : i32
    return %arg0, %arg1, %c0_i32, %c0_i32_0, %c0_i32_1 : i32, i32, i32, i32, i32
  }
  func.func @transform_1(%arg0: i32, %arg1: i32) -> (i32, i32, i32, i32) {
    %c0_i32 = arith.constant 0 : i32
    %c0_i32_0 = arith.constant 0 : i32
    %c0_i32_1 = arith.constant 0 : i32
    %c0_i32_2 = arith.constant 0 : i32
    %c0_i32_3 = arith.constant 0 : i32
    return %c0_i32, %c0_i32_0, %c0_i32_1, %c0_i32_2 : i32, i32, i32, i32
  }
  func.func @transform_2(%arg0: i32, %arg1: i32) -> (i32, i32, i32, i32, i32) {
    %c0_i32 = arith.constant 0 : i32
    %c0_i32_0 = arith.constant 0 : i32
    %c0_i32_1 = arith.constant 0 : i32
    %c0_i32_2 = arith.constant 0 : i32
    return %arg0, %arg1, %c0_i32, %c0_i32_0, %c0_i32_1 : i32, i32, i32, i32, i32
  }
  func.func @transform_3(%arg0: i32, %arg1: i32) -> (i32, i32, i32, i32) {
    %c0_i32 = arith.constant 0 : i32
    %c0_i32_0 = arith.constant 0 : i32
    %c0_i32_1 = arith.constant 0 : i32
    %c0_i32_2 = arith.constant 0 : i32
    return %arg0, %c0_i32, %c0_i32_0, %c0_i32_1 : i32, i32, i32, i32
  }
}

</mosaic_0001>

<bundles_post_ra>
// kernel: _forward_impl.2
= control target key start
LH: loop header
LB: loop body
LE: loop exit
PB: predicated region body
PF: predicated region fallthrough
CT: control target
= control target key end

     0   :  { %9 = vsyncpa [#allocation5], 0  ;;  %s7624_s0 = inlined_call_operand.vmem [shape: f32[2,8,16,16,128], index: 0, kind: input, shape index: {}]   ;;  %s7625_s1 = inlined_call_operand.vmem [shape: bf16[3,3,32,128], index: 1, kind: input, shape index: {}]   ;;  %s7626_s2 = inlined_call_operand.vmem [shape: f32[2,8,16,16,32], index: 2, kind: output, shape index: {0}]   ;;  %s7627_s3 = inlined_call_operand.hbm [shape: f32[2,16,16,32], index: 3, kind: output, shape index: {1}]  }
   0x1   :  { %11 = vsyncpa [#allocation5 + $0x1], 0  ;;  %s5409_s12 = smov 0   ;;  %s5411_s13 = smov 0  }
   0x2   :  { %s5413_s14 = smov 0   ;;  %s5415_s15 = smov 0  }
   0x3   :  { %s5417_s16 = smov 0   ;;  %s5419_s17 = smov 0  }
   0x4   :  { %s5421_s18 = smov 0   ;;  %s5423_s19 = smov 0  }
   0x5 LB: > { %s4233_s20 = sadd.s32 4294967295, %s5380_s19   ;;  %s4234_s21 = sadd.s32 4294967294, %s5380_s19   ;;  %s5380_s19 = sphi %s5423_s19, %s17_s19   ;;  %s5376_s18 = sphi %s5421_s18, %s7701_s18   ;;  %s5372_s17 = sphi %s5419_s17, %s7700_s17   ;;  %s5368_s16 = sphi %s5417_s16, %s7699_s16   ;;  %s5364_s15 = sphi %s5415_s15, %s7698_s15   ;;  %s5360_s14 = sphi %s5413_s14, %s7697_s14   ;;  %s5356_s13 = sphi %s5411_s13, %s7696_s13   ;;  %s5352_s12 = sphi %s5409_s12, %s7695_s12  }
   0x6   : > { %s26_s22 = sadd.s32 1, %s5372_s17  ;;  %s29_s23 = sadd.s32 1, %s5376_s18 }
   0x7   : > { %p27_p0 = scmp.ge.s32.totalorder %s26_s22, 8  ;;  %p123_p1 = scmp.ne.s32.totalorder %s5360_s14, %s5356_s13 }
   0x8   : > { %p124_p2 = scmp.eq.s32.totalorder %s4233_s20, 15  ;;  %p129_p4 = scmp.ne.s32.totalorder %s5356_s13, %s5352_s12 }
   0x9   : > { %s7703_s22 = smov (%p27_p0, %s26_s22), 0  ;;  %s7705_s23 = smov (!%p27_p0, %s29_s23), %s5376_s18 }
   0xa   : > { %p5458_p3 = por %p124_p2, %p123_p1  ;;  %p31_p5 = scmp.ge.s32.totalorder %s7705_s23, 2 }
   0xb   : > { %p130_p6 = scmp.eq.s32.totalorder %s4234_s21, 15  ;;  %p4237_p7 = scmp.ge.s32.totalorder %s5380_s19, 1 }
   0xc   : > { %p163_p8 = scmp.lt.s32.totalorder %s5380_s19, 17  ;;  %s7707_s23 = smov (%p31_p5, %s7705_s23), 0 }
   0xd   : > { %7642 = sst [smem:[#allocation7_spill]] %s7707_s23  ;;  %p5468_p9 = por %p130_p6, %p129_p4 }
   0xe   : > { %p164_p10 = pnand %p4237_p7, %p163_p8  ;;  %s110_s26 = ssub.s32 %s5376_s18, %s7707_s23 }
   0xf   : > { %s113_s27 = sadd.s32 1, %s5360_s14  ;;  %p111_p11 = scmp.eq.s32.totalorder %s110_s26, 0 }
  0x10   : > { %167 = sbr.rel (%p164_p10) target bundleno = 1160 (0x488), region = 28 }
  0x11   : > { %s5476_s28 = scalar_select %p111_p11, %s5360_s14, %s113_s27  }
  0x15   : > { %s197_s29 = sand.u32 1, %s5356_s13   ;;  %p200_p12 = scmp.lt.s32.totalorder %s5368_s16, 1 }
  0x16   : > { %s4238_s30 = sshll.u32 %s197_s29, 8  ;;  %p202_p13 = scmp.lt.s32.totalorder %s5364_s15, 7 }
  0x17   : > { %s201_s4 = scalar_select %p200_p12, %s5368_s16, 1 }
  0x18   : > { %s203_s5 = scalar_select %p202_p13, %s5364_s15, 7 }
  0x19   : > { %s4240_s6 = sshll.u32 %s201_s4, 8  ;;  %s5495_s23 = scalar_lea.vmem [#allocation4], %s4238_s30 }
  0x1a   : > { %s4239_s7 = sshll.u32 %s203_s5, 5  ;;  %p4245_p0 = scmp.ne.s32.totalorder %s5364_s15, 0 }
  0x1b   : > { %s206_s8 = sadd.s32 %s4240_s6, %s4239_s7 }
  0x1c   : > { %s4241_s9 = sshll.u32 %s206_s8, 3  ;;  %222 = sbr.rel (%p4245_p0) target bundleno = 77 (0x4d), region = 32 }
  0x1d   : > { %s5488_s20 = scalar_lea.vmem %s7624_s0, %s4241_s9  ;;  %s5493_s27 = scalar_lea.vmem %s7626_s2, %s4241_s9 }
  0x21   : > { %vm223_vm0 = vcmask 261120   ;;  %vm226_vm1 = vcmask 254976   ;;  %v5382_v0 = vmov 0.0  }
  0x22   : > { %224 = vst.msk [vmem:[#allocation2] sm:$0xff] %vm223_vm0, %v5382_v0  ;;  %225 = vst.msk [vmem:[#allocation2 + $0x8] sm:$0xff] %vm223_vm0, %v5382_v0 }
  0x23   : > { %228 = vst.msk [vmem:[#allocation2 + $0x18] sm:$0xff] %vm223_vm0, %v5382_v0  ;;  %229 = vst.msk [vmem:[#allocation2 + $0x20] sm:$0xff] %vm223_vm0, %v5382_v0 }
  0x24   : > { %231 = vst.msk [vmem:[#allocation2 + $0x30] sm:$0xff] %vm223_vm0, %v5382_v0  ;;  %232 = vst.msk [vmem:[#allocation2 + $0x38] sm:$0xff] %vm223_vm0, %v5382_v0 }
  0x25   : > { %234 = vst.msk [vmem:[#allocation2 + $0x48] sm:$0xff] %vm223_vm0, %v5382_v0  ;;  %235 = vst.msk [vmem:[#allocation2 + $0x50] sm:$0xff] %vm223_vm0, %v5382_v0 }
  0x26   : > { %237 = vst.msk [vmem:[#allocation2 + $0x60] sm:$0xff] %vm223_vm0, %v5382_v0  ;;  %238 = vst.msk [vmem:[#allocation2 + $0x68] sm:$0xff] %vm223_vm0, %v5382_v0 }
  0x27   : > { %240 = vst.msk [vmem:[#allocation2 + $0x78] sm:$0xff] %vm223_vm0, %v5382_v0  ;;  %241 = vst.msk [vmem:[#allocation2 + $0x80] sm:$0xff] %vm223_vm0, %v5382_v0 }
  0x28   : > { %243 = vst.msk [vmem:[#allocation2 + $0x90] sm:$0xff] %vm223_vm0, %v5382_v0  ;;  %244 = vst.msk [vmem:[#allocation2 + $0x98] sm:$0xff] %vm223_vm0, %v5382_v0 }
  0x29   : > { %246 = vst.msk [vmem:[#allocation2 + $0xa8] sm:$0xff] %vm223_vm0, %v5382_v0  ;;  %247 = vst.msk [vmem:[#allocation2 + $0xb0] sm:$0xff] %vm223_vm0, %v5382_v0 }
  0x2a   : > { %249 = vst.msk [vmem:[#allocation2 + $0xc0] sm:$0xff] %vm223_vm0, %v5382_v0  ;;  %250 = vst.msk [vmem:[#allocation2 + $0xc8] sm:$0xff] %vm223_vm0, %v5382_v0 }
  0x2b   : > { %252 = vst.msk [vmem:[#allocation2 + $0xd8] sm:$0xff] %vm223_vm0, %v5382_v0  ;;  %253 = vst.msk [vmem:[#allocation2 + $0xe0] sm:$0xff] %vm223_vm0, %v5382_v0 }
  0x2c   : > { %255 = vst.msk [vmem:[#allocation2 + $0xf0] sm:$0xff] %vm223_vm0, %v5382_v0  ;;  %256 = vst.msk [vmem:[#allocation2 + $0xf8] sm:$0xff] %vm223_vm0, %v5382_v0 }
  0x2d   : > { %258 = vst.msk [vmem:[#allocation2 + $0x108] sm:$0xff] %vm223_vm0, %v5382_v0  ;;  %259 = vst.msk [vmem:[#allocation2 + $0x110] sm:$0xff] %vm223_vm0, %v5382_v0 }
  0x2e   : > { %261 = vst.msk [vmem:[#allocation2 + $0x120] sm:$0xff] %vm223_vm0, %v5382_v0  ;;  %262 = vst.msk [vmem:[#allocation2 + $0x128] sm:$0xff] %vm223_vm0, %v5382_v0 }
  0x2f   : > { %264 = vst.msk [vmem:[#allocation2 + $0x138] sm:$0xff] %vm223_vm0, %v5382_v0  ;;  %265 = vst.msk [vmem:[#allocation2 + $0x140] sm:$0xff] %vm223_vm0, %v5382_v0 }
  0x30   : > { %267 = vst.msk [vmem:[#allocation2 + $0x150] sm:$0xff] %vm223_vm0, %v5382_v0  ;;  %268 = vst.msk [vmem:[#allocation2 + $0x158] sm:$0xff] %vm223_vm0, %v5382_v0 }
  0x31   : > { %270 = vst.msk [vmem:[#allocation2 + $0x168] sm:$0xff] %vm223_vm0, %v5382_v0  ;;  %271 = vst.msk [vmem:[#allocation2 + $0x170] sm:$0xff] %vm223_vm0, %v5382_v0 }
  0x32   : > { %273 = vst.msk [vmem:[#allocation2 + $0x180] sm:$0xff] %vm223_vm0, %v5382_v0  ;;  %274 = vst.msk [vmem:[#allocation2 + $0x188] sm:$0xff] %vm223_vm0, %v5382_v0 }
  0x33   : > { %276 = vst.msk [vmem:[#allocation2 + $0x198] sm:$0xff] %vm223_vm0, %v5382_v0  ;;  %277 = vst.msk [vmem:[#allocation2 + $0x1a0] sm:$0xff] %vm223_vm0, %v5382_v0 }
  0x34   : > { %279 = vst.msk [vmem:[#allocation3] sm:$0xff] %vm223_vm0, %v5382_v0  ;;  %280 = vst.msk [vmem:[#allocation3 + $0x8] sm:$0xff] %vm223_vm0, %v5382_v0 }
  0x35   : > { %281 = vst.msk [vmem:[#allocation3 + $0x10] sm:$0xff] %vm223_vm0, %v5382_v0  ;;  %282 = vst.msk [vmem:[#allocation3 + $0x18] sm:$0xff] %vm223_vm0, %v5382_v0 }
  0x36   : > { %283 = vst.msk [vmem:[#allocation3 + $0x20] sm:$0xff] %vm223_vm0, %v5382_v0  ;;  %284 = vst.msk [vmem:[#allocation3 + $0x28] sm:$0xff] %vm223_vm0, %v5382_v0 }
  0x37   : > { %285 = vst.msk [vmem:[#allocation3 + $0x30] sm:$0xff] %vm223_vm0, %v5382_v0  ;;  %286 = vst.msk [vmem:[#allocation3 + $0x38] sm:$0xff] %vm223_vm0, %v5382_v0 }
  0x38   : > { %287 = vst.msk [vmem:[#allocation3 + $0x40] sm:$0xff] %vm223_vm0, %v5382_v0  ;;  %288 = vst.msk [vmem:[#allocation3 + $0x48] sm:$0xff] %vm223_vm0, %v5382_v0 }
  0x39   : > { %289 = vst.msk [vmem:[#allocation3 + $0x50] sm:$0xff] %vm223_vm0, %v5382_v0  ;;  %290 = vst.msk [vmem:[#allocation3 + $0x58] sm:$0xff] %vm223_vm0, %v5382_v0 }
  0x3a   : > { %291 = vst.msk [vmem:[#allocation3 + $0x60] sm:$0xff] %vm223_vm0, %v5382_v0  ;;  %292 = vst.msk [vmem:[#allocation3 + $0x68] sm:$0xff] %vm223_vm0, %v5382_v0 }
  0x3b   : > { %293 = vst.msk [vmem:[#allocation3 + $0x70] sm:$0xff] %vm223_vm0, %v5382_v0  ;;  %294 = vst.msk [vmem:[#allocation3 + $0x78] sm:$0xff] %vm223_vm0, %v5382_v0 }
  0x3c   : > { %295 = vst.msk [vmem:[#allocation3 + $0x80] sm:$0xff] %vm223_vm0, %v5382_v0  ;;  %296 = vst.msk [vmem:[#allocation3 + $0x88] sm:$0xff] %vm223_vm0, %v5382_v0 }
  0x3d   : > { %297 = vst.msk [vmem:[#allocation3 + $0x90] sm:$0xff] %vm223_vm0, %v5382_v0  ;;  %298 = vst.msk [vmem:[#allocation3 + $0x98] sm:$0xff] %vm223_vm0, %v5382_v0 }
  0x3e   : > { %299 = vst.msk [vmem:[#allocation3 + $0xa0] sm:$0xff] %vm223_vm0, %v5382_v0  ;;  %300 = vst.msk [vmem:[#allocation3 + $0xa8] sm:$0xff] %vm223_vm0, %v5382_v0 }
  0x3f   : > { %301 = vst.msk [vmem:[#allocation3 + $0xb0] sm:$0xff] %vm223_vm0, %v5382_v0  ;;  %302 = vst.msk [vmem:[#allocation3 + $0xb8] sm:$0xff] %vm223_vm0, %v5382_v0 }
  0x40   : > { %303 = vst.msk [vmem:[#allocation3 + $0xc0] sm:$0xff] %vm223_vm0, %v5382_v0  ;;  %304 = vst.msk [vmem:[#allocation3 + $0xc8] sm:$0xff] %vm223_vm0, %v5382_v0 }
  0x41   : > { %305 = vst.msk [vmem:[#allocation3 + $0xd0] sm:$0xff] %vm223_vm0, %v5382_v0  ;;  %306 = vst.msk [vmem:[#allocation3 + $0xd8] sm:$0xff] %vm223_vm0, %v5382_v0 }
  0x42   : > { %307 = vst.msk [vmem:[#allocation3 + $0xe0] sm:$0xff] %vm223_vm0, %v5382_v0  ;;  %308 = vst.msk [vmem:[#allocation3 + $0xe8] sm:$0xff] %vm223_vm0, %v5382_v0 }
  0x43   : > { %309 = vst.msk [vmem:[#allocation3 + $0xf0] sm:$0xff] %vm223_vm0, %v5382_v0  ;;  %310 = vst.msk [vmem:[#allocation3 + $0xf8] sm:$0xff] %vm223_vm0, %v5382_v0 }
  0x44   : > { %227 = vst.msk [vmem:[#allocation2 + $0x10] sm:$0x3] %vm226_vm1, %v5382_v0  ;;  %230 = vst.msk [vmem:[#allocation2 + $0x28] sm:$0x3] %vm226_vm1, %v5382_v0 }
  0x45   : > { %233 = vst.msk [vmem:[#allocation2 + $0x40] sm:$0x3] %vm226_vm1, %v5382_v0  ;;  %236 = vst.msk [vmem:[#allocation2 + $0x58] sm:$0x3] %vm226_vm1, %v5382_v0 }
  0x46   : > { %239 = vst.msk [vmem:[#allocation2 + $0x70] sm:$0x3] %vm226_vm1, %v5382_v0  ;;  %242 = vst.msk [vmem:[#allocation2 + $0x88] sm:$0x3] %vm226_vm1, %v5382_v0 }
  0x47   : > { %245 = vst.msk [vmem:[#allocation2 + $0xa0] sm:$0x3] %vm226_vm1, %v5382_v0  ;;  %248 = vst.msk [vmem:[#allocation2 + $0xb8] sm:$0x3] %vm226_vm1, %v5382_v0 }
  0x48   : > { %251 = vst.msk [vmem:[#allocation2 + $0xd0] sm:$0x3] %vm226_vm1, %v5382_v0  ;;  %254 = vst.msk [vmem:[#allocation2 + $0xe8] sm:$0x3] %vm226_vm1, %v5382_v0 }
  0x49   : > { %257 = vst.msk [vmem:[#allocation2 + $0x100] sm:$0x3] %vm226_vm1, %v5382_v0  ;;  %260 = vst.msk [vmem:[#allocation2 + $0x118] sm:$0x3] %vm226_vm1, %v5382_v0 }
  0x4a   : > { %263 = vst.msk [vmem:[#allocation2 + $0x130] sm:$0x3] %vm226_vm1, %v5382_v0  ;;  %266 = vst.msk [vmem:[#allocation2 + $0x148] sm:$0x3] %vm226_vm1, %v5382_v0 }
  0x4b   : > { %269 = vst.msk [vmem:[#allocation2 + $0x160] sm:$0x3] %vm226_vm1, %v5382_v0  ;;  %272 = vst.msk [vmem:[#allocation2 + $0x178] sm:$0x3] %vm226_vm1, %v5382_v0 }
  0x4c   : > { %275 = vst.msk [vmem:[#allocation2 + $0x190] sm:$0x3] %vm226_vm1, %v5382_v0  ;;  %278 = vst.msk [vmem:[#allocation2 + $0x1a8] sm:$0x3] %vm226_vm1, %v5382_v0 }
  0x4d PF: > { %v5014_v1 = vld [vmem:[%s7625_s1 + $0x8] sm:$0xff]   ;;  %v5015_v2 = vld [vmem:[%s7625_s1] sm:$0xff]   ;;  %vm461_vm2 = vcmask 261120   ;;  %v314_v8 = vld [vmem:[#allocation2 + $0x18] sm:$0xff]  ;;  %vm719_vm3 = vsmask.f32 7424 }
  0x4e   : > { %4609 = vmatprep.subr.bf16.mxu0 %v5014_v1  ;;  %4933 = vmatprep.subr.bf16.mxu1 %v5014_v1  ;;  %v311_v3 = vld [vmem:[#allocation2] sm:$0xff]  ;;  %v312_v4 = vld [vmem:[#allocation2 + $0x8] sm:$0xff]  ;;  %v338_v11 = vld [vmem:[#allocation2 + $0xd8] sm:$0xff]  ;;  %vm1181_vm4 = vcmask 1046528   ;;  %s5383_s6 = smov 32   ;;  %s5385_s7 = smov 64  }
  0x4f   : > { %v335_v5 = vld [vmem:[#allocation2 + $0xc0] sm:$0xff]  ;;  %4610 = vmatpush3.bf16.msra.mxu0 %v5014_v1  ;;  %4935 = vmatpush3.bf16.msra.mxu1 %v5014_v1  ;;  %v5676_v6 = vpack.c.bf16 %v312_v4, %v311_v3  ;;  %v336_v7 = vld [vmem:[#allocation2 + $0xc8] sm:$0xff]  ;;  %v5016_v13 = vld [vmem:[%s7625_s1 + $0x18] sm:$0xff]   ;;  %p4440_p1 = scmp.ne.s32.totalorder %s5364_s15, 7 }
  0x50   : > { %v315_v9 = vld [vmem:[#allocation2 + $0x20] sm:$0xff]  ;;  %4611 = vmatprep.subr.bf16.mxu0 %v5015_v2  ;;  %4934 = vmatprep.subr.bf16.mxu1 %v5015_v2  ;;  %v5678_v10 = vpack.c.bf16 %v336_v7, %v335_v5  ;;  %v5017_v16 = vld [vmem:[%s7625_s1 + $0x28] sm:$0xff]   ;;  %v317_v17 = vld [vmem:[#allocation2 + $0x30] sm:$0xff] }
  0x51   : > { %v339_v12 = vld [vmem:[#allocation2 + $0xe0] sm:$0xff]  ;;  %4613 = vmatprep.mubr.msk.bf16.mxu0 %vm461_vm2, %v5676_v6  ;;  %v5687_v14 = vpack.c.bf16 %v315_v9, %v314_v8  ;;  %v318_v18 = vld [vmem:[#allocation2 + $0x38] sm:$0xff]  ;;  %v341_v19 = vld [vmem:[#allocation2 + $0xf0] sm:$0xff]  ;;  %v722_v49 = vshll.u32 %v5676_v6, 16  ;;  %v720_v54 = vshrl.u32 %v5676_v6, 16  ;;  %v1182_v3 = vrot.slane %v5676_v6, 1 }
  0x52   : > { %4629 = vmatprep.mubr.msk.bf16.mxu1 %vm461_vm2, %v5678_v10  ;;  %v5689_v15 = vpack.c.bf16 %v339_v12, %v338_v11  ;;  %v342_v20 = vld [vmem:[#allocation2 + $0xf8] sm:$0xff]  ;;  %v5694_v21 = vpack.c.bf16 %v318_v18, %v317_v17  ;;  %v320_v23 = vld [vmem:[#allocation2 + $0x48] sm:$0xff]  ;;  %v321_v24 = vld [vmem:[#allocation2 + $0x50] sm:$0xff] }
  0x53   : > { %4612 = vmatpush3.bf16.msra.mxu0 %v5015_v2  ;;  %4936 = vmatpush3.bf16.msra.mxu1 %v5015_v2  ;;  %v5696_v22 = vpack.c.bf16 %v342_v20, %v341_v19  ;;  %v344_v25 = vld [vmem:[#allocation2 + $0x108] sm:$0xff]  ;;  %v345_v26 = vld [vmem:[#allocation2 + $0x110] sm:$0xff]  ;;  %v323_v27 = vld [vmem:[#allocation2 + $0x60] sm:$0xff]  ;;  %v5712_v33 = vpack.c.bf16 %v321_v24, %v320_v23  ;;  %v724_v55 = vrot.slane %v722_v49, 1  ;;  %v733_v0 = vshll.u32 %v5687_v14, 16 }
  0x54   : > { %4645 = vmatprep.subr.bf16.mxu1 %v5016_v13  ;;  %4681 = vmatprep.subr.bf16.mxu0 %v5017_v16  ;;  %v324_v28 = vld [vmem:[#allocation2 + $0x68] sm:$0xff]  ;;  %v347_v29 = vld [vmem:[#allocation2 + $0x120] sm:$0xff]  ;;  %v5018_v31 = vld [vmem:[%s7625_s1 + $0x10] sm:$0xff]   ;;  %v5714_v34 = vpack.c.bf16 %v345_v26, %v344_v25  ;;  %v744_v7 = vshll.u32 %v5694_v21, 16  ;;  %v731_v11 = vshrl.u32 %v5687_v14, 16  ;;  %v1185_v24 = vrot.slane %v5687_v14, 1 }
  0x55   : > { %v348_v30 = vld [vmem:[#allocation2 + $0x128] sm:$0xff]  ;;  %v5019_v32 = vld [vmem:[%s7625_s1 + $0x20] sm:$0xff]   ;;  %v5716_v35 = vpack.c.bf16 %v324_v28, %v323_v27  ;;  %v326_v37 = vld [vmem:[#allocation2 + $0x78] sm:$0xff]  ;;  %v725_v1 = vor.u32 %v724_v55, %v720_v54  ;;  %v735_v12 = vrot.slane %v733_v0, 1  ;;  %v755_v25 = vshll.u32 %v5712_v33, 16 }
  0x56   : > { %4614 = vmatmul.mubr.msk.bf16.vlgmr.msra.gmra.mxu0 %vm461_vm2, %v5687_v14  ;;  %4630 = vmatmul.mubr.msk.bf16.vlgmr.msra.gmra.mxu1 %vm461_vm2, %v5689_v15  ;;  %v5718_v36 = vpack.c.bf16 %v348_v30, %v347_v29  ;;  %v327_v38 = vld [vmem:[#allocation2 + $0x80] sm:$0xff]  ;;  %v350_v39 = vld [vmem:[#allocation2 + $0x138] sm:$0xff]  ;;  %v313_v40 = vld [vmem:[#allocation2 + $0x10] sm:$0x3]  ;;  %v746_v19 = vrot.slane %v744_v7, 1  ;;  %v1188_v30 = vrot.slane %v5694_v21, 1 }
  0x57   : > { %4646 = vmatpush3.bf16.msra.mxu1 %v5016_v13  ;;  %4682 = vmatpush3.bf16.msra.mxu0 %v5017_v16  ;;  %v5727_v41 = vld [vmem:[%s7625_s1 + $0x38] sm:$0xff]   ;;  %v351_v42 = vld [vmem:[#allocation2 + $0x140] sm:$0xff]  ;;  %v329_v43 = vld [vmem:[#allocation2 + $0x90] sm:$0xff]  ;;  %v703_v48 = vpack.c.bf16 %v313_v40, %v313_v40  ;;  %v5741_v50 = vpack.c.bf16 %v327_v38, %v326_v37  ;;  %v742_v16 = vshrl.u32 %v5694_v21, 16  ;;  %v736_v26 = vor.u32 %v735_v12, %v731_v11 }
  0x58   : > { %4617 = vmatprep.mubr.msk.bf16.mxu0 %vm461_vm2, %v5694_v21  ;;  %4633 = vmatprep.mubr.msk.bf16.mxu1 %vm461_vm2, %v5696_v22  ;;  %v5736_v44 = vld [vmem:[%s7625_s1 + $0x48] sm:$0xff]   ;;  %v330_v45 = vld [vmem:[#allocation2 + $0x98] sm:$0xff]  ;;  %v353_v46 = vld [vmem:[#allocation2 + $0x150] sm:$0xff]  ;;  %v5743_v51 = vpack.c.bf16 %v351_v42, %v350_v39  ;;  %v753_v40 = vshrl.u32 %v5712_v33, 16  ;;  %v757_v42 = vrot.slane %v755_v25, 1 }
  0x59   : > { %4647 = vmatprep.subr.bf16.mxu1 %v5018_v31  ;;  %4683 = vmatprep.subr.bf16.mxu0 %v5019_v32  ;;  %v354_v47 = vld [vmem:[#allocation2 + $0x158] sm:$0xff]  ;;  %v5745_v52 = vpack.c.bf16 %v330_v45, %v329_v43  ;;  %v727_v56 = vshll.u32 %v703_v48, 16  ;;  %v316_v57 = vld [vmem:[#allocation2 + $0x28] sm:$0x3]  ;;  %v319_v59 = vld [vmem:[#allocation2 + $0x40] sm:$0x3]  ;;  %v747_v37 = vor.u32 %v746_v19, %v742_v16 }
  0x5a   : > { %v5747_v53 = vpack.c.bf16 %v354_v47, %v353_v46  ;;  %v332_v58 = vld [vmem:[#allocation2 + $0xa8] sm:$0xff]  ;;  %v333_v60 = vld [vmem:[#allocation2 + $0xb0] sm:$0xff]  ;;  %v704_v63 = vpack.c.bf16 %v316_v57, %v316_v57  ;;  %v1183_v4 = vrot.slane %v703_v48, 1  ;;  %v705_v5 = vpack.c.bf16 %v319_v59, %v319_v59  ;;  %v322_v18 = vld [vmem:[#allocation2 + $0x58] sm:$0x3] }
  0x5b   : > { %4648 = vmatpush3.bf16.msra.mxu1 %v5018_v31  ;;  %4684 = vmatpush3.bf16.msra.mxu0 %v5019_v32  ;;  %v356_v61 = vld [vmem:[#allocation2 + $0x168] sm:$0xff]  ;;  %v357_v62 = vld [vmem:[#allocation2 + $0x170] sm:$0xff]  ;;  %v729_v2 = vrot.slane %v727_v56, 1  ;;  %v5761_v8 = vpack.c.bf16 %v333_v60, %v332_v58  ;;  %v706_v29 = vpack.c.bf16 %v322_v18, %v322_v18  ;;  %v766_v32 = vshll.u32 %v5716_v35, 16  ;;  %v331_v49 = vld [vmem:[#allocation2 + $0xa0] sm:$0x3] }
  0x5c   : > { %4717 = vmatprep.subr.bf16.mxu1 %v5727_v41  ;;  %4753 = vmatprep.subr.bf16.mxu0 %v5736_v44  ;;  %v5763_v9 = vpack.c.bf16 %v357_v62, %v356_v61  ;;  %v738_v13 = vshll.u32 %v704_v63, 16  ;;  %v1184_v6 = vsel %vm1181_vm4, %v1182_v3, %v1183_v4  ;;  %v749_v20 = vshll.u32 %v705_v5, 16  ;;  %v325_v23 = vld [vmem:[#allocation2 + $0x70] sm:$0x3]  ;;  %v328_v43 = vld [vmem:[#allocation2 + $0x88] sm:$0x3] }
  0x5d   : > { %v730_v17 = vsel %vm719_vm3, %v725_v1, %v729_v2  ;;  %v1186_v28 = vrot.slane %v704_v63, 1  ;;  %v707_v31 = vpack.c.bf16 %v325_v23, %v325_v23  ;;  %v1189_v39 = vrot.slane %v705_v5, 1  ;;  %v5022_v58 = vld [vmem:[%s7625_s1 + $0x30] sm:$0xff]   ;;  %v5023_v59 = vld [vmem:[%s7625_s1 + $0x40] sm:$0xff]   ;;  %v334_v25 = vld [vmem:[#allocation2 + $0xb8] sm:$0x3] }
  0x5e   : > { %4618 = vmatmul.mubr.msk.bf16.gmra.mxu0 %vm461_vm2, %v5712_v33  ;;  %4634 = vmatmul.mubr.msk.bf16.gmra.mxu1 %vm461_vm2, %v5714_v34  ;;  %v740_v27 = vrot.slane %v738_v13, 1  ;;  %v751_v38 = vrot.slane %v749_v20, 1  ;;  %v760_v47 = vshll.u32 %v706_v29, 16  ;;  %v764_v48 = vshrl.u32 %v5716_v35, 16 }
  0x5f   : > { %4621 = vmatprep.mubr.msk.bf16.mxu0 %vm461_vm2, %v5716_v35  ;;  %4637 = vmatprep.mubr.msk.bf16.mxu1 %vm461_vm2, %v5718_v36  ;;  %v5784_v46 = vsel %vm1181_vm4, %v1185_v24, %v1186_v28  ;;  %v768_v54 = vrot.slane %v766_v32, 1  ;;  %v771_v55 = vshll.u32 %v707_v31, 16  ;;  %v5791_v57 = vsel %vm1181_vm4, %v1188_v30, %v1189_v39 }
  0x60   : > { %v5781_v45 = vsel %vm719_vm3, %v736_v26, %v740_v27  ;;  %v5788_v56 = vsel %vm719_vm3, %v747_v37, %v751_v38  ;;  %v758_v60 = vor.u32 %v757_v42, %v753_v40  ;;  %v1191_v61 = vrot.slane %v5712_v33, 1  ;;  %v337_v26 = vld [vmem:[#allocation2 + $0xd0] sm:$0x3] }
  0x61   : > { %v1194_v62 = vrot.slane %v5716_v35, 1  ;;  %v777_v63 = vshll.u32 %v5741_v50, 16  ;;  %v762_v0 = vrot.slane %v760_v47, 1  ;;  %v1192_v1 = vrot.slane %v706_v29, 1 }
  0x62   : > { %v1195_v2 = vrot.slane %v707_v31, 1  ;;  %v708_v3 = vpack.c.bf16 %v328_v43, %v328_v43  ;;  %v769_v4 = vor.u32 %v768_v54, %v764_v48  ;;  %v773_v5 = vrot.slane %v771_v55, 1 }
  0x63   : > { %v709_v7 = vpack.c.bf16 %v331_v49, %v331_v49  ;;  %v788_v11 = vshll.u32 %v5745_v52, 16  ;;  %v775_v12 = vshrl.u32 %v5741_v50, 16  ;;  %v779_v13 = vrot.slane %v777_v63, 1 }
  0x64   : > { %v5825_v16 = vsel %vm719_vm3, %v758_v60, %v762_v0  ;;  %v782_v18 = vshll.u32 %v708_v3, 16  ;;  %v5834_v19 = vsel %vm719_vm3, %v769_v4, %v773_v5  ;;  %v786_v20 = vshrl.u32 %v5745_v52, 16  ;;  %v343_v0 = vld [vmem:[#allocation2 + $0x100] sm:$0x3] }
  0x65   : > { %v790_v23 = vrot.slane %v788_v11, 1  ;;  %v793_v24 = vshll.u32 %v709_v7, 16  ;;  %v780_v27 = vor.u32 %v779_v13, %v775_v12  ;;  %v1197_v28 = vrot.slane %v5741_v50, 1 }
  0x66   : > { %4622 = vmatmul.mubr.msk.bf16.gmra.mxu0 %vm461_vm2, %v5741_v50  ;;  %4638 = vmatmul.mubr.msk.bf16.gmra.mxu1 %vm461_vm2, %v5743_v51  ;;  %v1198_v29 = vrot.slane %v708_v3, 1  ;;  %v810_v30 = vshll.u32 %v5678_v10, 16  ;;  %v784_v31 = vrot.slane %v782_v18, 1  ;;  %v1200_v32 = vrot.slane %v5745_v52, 1 }
  0x67   : > { %4625 = vmatprep.mubr.msk.bf16.mxu0 %vm461_vm2, %v5745_v52  ;;  %4641 = vmatprep.mubr.msk.bf16.mxu1 %vm461_vm2, %v5747_v53  ;;  %v710_v37 = vpack.c.bf16 %v334_v25, %v334_v25  ;;  %v799_v38 = vshll.u32 %v5761_v8, 16  ;;  %v791_v39 = vor.u32 %v790_v23, %v786_v20  ;;  %v795_v40 = vrot.slane %v793_v24, 1 }
  0x68   : > { %v1201_v42 = vrot.slane %v709_v7, 1  ;;  %v711_v43 = vpack.c.bf16 %v337_v26, %v337_v26  ;;  %v5852_v47 = vsel %vm1181_vm4, %v1197_v28, %v1198_v29  ;;  %v808_v48 = vshrl.u32 %v5678_v10, 16 }
  0x69   : > { %v5856_v49 = vsel %vm719_vm3, %v780_v27, %v784_v31  ;;  %v797_v54 = vshrl.u32 %v5761_v8, 16  ;;  %v801_v55 = vrot.slane %v799_v38, 1  ;;  %v5860_v60 = vsel %vm719_vm3, %v791_v39, %v795_v40  ;;  %v349_v39 = vld [vmem:[#allocation2 + $0x130] sm:$0x3] }
  0x6a   : > { %v815_v63 = vshll.u32 %v711_v43, 16  ;;  %v1206_v3 = vrot.slane %v5678_v10, 1  ;;  %v1207_v11 = vrot.slane %v711_v43, 1  ;;  %v821_v12 = vshll.u32 %v5689_v15, 16 }
  0x6b   : > { %v802_v5 = vor.u32 %v801_v55, %v797_v54  ;;  %v713_v20 = vpack.c.bf16 %v343_v0, %v343_v0  ;;  %v832_v23 = vshll.u32 %v5696_v22, 16  ;;  %v819_v28 = vshrl.u32 %v5689_v15, 16 }
  0x6c   : > { %v817_v18 = vrot.slane %v815_v63, 1  ;;  %v5884_v27 = vsel %vm1181_vm4, %v1206_v3, %v1207_v11  ;;  %v823_v29 = vrot.slane %v821_v12, 1  ;;  %v1212_v55 = vrot.slane %v5696_v22, 1 }
  0x6d   : > { %v837_v38 = vshll.u32 %v713_v20, 16  ;;  %v715_v0 = vpack.c.bf16 %v349_v39, %v349_v39 }
  0x6e   : > { %4626 = vmatmul.mubr.msk.bf16.gmra.mxu0 %vm461_vm2, %v5761_v8  ;;  %4642 = vmatmul.mubr.msk.bf16.gmra.mxu1 %vm461_vm2, %v5763_v9  ;;  %v824_v54 = vor.u32 %v823_v29, %v819_v28  ;;  %v1215_v29 = vrot.slane %v5714_v34, 1 }
  0x6f   : > { %4649 = vmatprep.mubr.msk.bf16.mxu1 %vm461_vm2, %v730_v17  ;;  %4685 = vmatprep.mubr.msk.bf16.mxu0 %vm461_vm2, %v1184_v6  ;;  %v5828_v17 = vsel %vm1181_vm4, %v1191_v61, %v1192_v1  ;;  %v5831_v6 = vsel %vm1181_vm4, %v1194_v62, %v1195_v2  ;;  %v5863_v61 = vsel %vm1181_vm4, %v1200_v32, %v1201_v42  ;;  %v812_v62 = vrot.slane %v810_v30, 1  ;;  %v346_v30 = vld [vmem:[#allocation2 + $0x118] sm:$0x3] }
  0x70   : > { %v1203_v1 = vrot.slane %v5761_v8, 1  ;;  %v1204_v2 = vrot.slane %v710_v37, 1  ;;  %v830_v32 = vshrl.u32 %v5696_v22, 16  ;;  %v1209_v42 = vrot.slane %v5689_v15, 1 }
  0x71   : > { %v813_v13 = vor.u32 %v812_v62, %v808_v48  ;;  %v714_v48 = vpack.c.bf16 %v346_v30, %v346_v30  ;;  %v839_v63 = vrot.slane %v837_v38, 1  ;;  %v1219_v38 = vrot.slane %v715_v0, 1 }
  0x72   : > { %v5878_v24 = vsel %vm1181_vm4, %v1203_v1, %v1204_v2  ;;  %v854_v1 = vshll.u32 %v5718_v36, 16 }
  0x73   : > { %v5888_v31 = vsel %vm719_vm3, %v813_v13, %v817_v18  ;;  %v848_v3 = vshll.u32 %v714_v48, 16  ;;  %v852_v13 = vshrl.u32 %v5718_v36, 16  ;;  %v1216_v30 = vrot.slane %v714_v48, 1 }
  0x74   : > { %v856_v18 = vrot.slane %v854_v1, 1 }
  0x75   : > { %v850_v28 = vrot.slane %v848_v3, 1  ;;  %v5930_v48 = vsel %vm1181_vm4, %v1215_v29, %v1216_v30  ;;  %v874_v3 = vshrl.u32 %v5747_v53, 16  ;;  %v887_v29 = vshll.u32 %v5763_v9, 16 }
  0x76   : > { %4650 = vmatmul.mubr.msk.bf16.vlgmr.msra.gmra.mxu1 %vm461_vm2, %v5781_v45  ;;  %4686 = vmatmul.mubr.msk.bf16.vlgmr.msra.gmra.mxu0 %vm461_vm2, %v5784_v46 }
  0x77   : > { %4718 = vmatpush3.bf16.msra.mxu1 %v5727_v41  ;;  %4754 = vmatpush3.bf16.msra.mxu0 %v5736_v44  ;;  %v5816_v41 = vld [vmem:[%s7625_s1 + $0x58] sm:$0xff]   ;;  %v5821_v44 = vld [vmem:[%s7625_s1 + $0x68] sm:$0xff]  }
  0x78   : > { %4653 = vmatprep.mubr.msk.bf16.mxu1 %vm461_vm2, %v5788_v56  ;;  %4689 = vmatprep.mubr.msk.bf16.mxu0 %vm461_vm2, %v5791_v57 }
  0x79   : > { %4719 = vmatprep.subr.bf16.mxu1 %v5022_v58  ;;  %4755 = vmatprep.subr.bf16.mxu0 %v5023_v59 }
  0x7b   : > { %4720 = vmatpush3.bf16.msra.mxu1 %v5022_v58  ;;  %4756 = vmatpush3.bf16.msra.mxu0 %v5023_v59  ;;  %v804_v58 = vshll.u32 %v710_v37, 16  ;;  %v340_v59 = vld [vmem:[#allocation2 + $0xe8] sm:$0x3]  ;;  %v834_v37 = vrot.slane %v832_v23, 1 }
  0x7c   : > { %4789 = vmatprep.subr.bf16.mxu1 %v5816_v41  ;;  %4825 = vmatprep.subr.bf16.mxu0 %v5821_v44  ;;  %v712_v4 = vpack.c.bf16 %v340_v59, %v340_v59  ;;  %v843_v59 = vshll.u32 %v5714_v34, 16  ;;  %v352_v23 = vld [vmem:[#allocation2 + $0x148] sm:$0x3] }
  0x7d   : > { %v806_v7 = vrot.slane %v804_v58, 1  ;;  %v1213_v58 = vrot.slane %v713_v20, 1  ;;  %v835_v62 = vor.u32 %v834_v37, %v830_v32  ;;  %v859_v20 = vshll.u32 %v715_v0, 16 }
  0x7e   : > { %4654 = vmatmul.mubr.msk.bf16.gmra.mxu1 %vm461_vm2, %v5825_v16  ;;  %4690 = vmatmul.mubr.msk.bf16.gmra.mxu0 %vm461_vm2, %v5828_v17  ;;  %v826_v25 = vshll.u32 %v712_v4, 16  ;;  %v1210_v43 = vrot.slane %v712_v4, 1  ;;  %v845_v11 = vrot.slane %v843_v59, 1  ;;  %v1218_v32 = vrot.slane %v5718_v36, 1 }
  0x7f   : > { %4657 = vmatprep.mubr.msk.bf16.mxu1 %vm461_vm2, %v5834_v19  ;;  %4693 = vmatprep.mubr.msk.bf16.mxu0 %vm461_vm2, %v5831_v6  ;;  %v5881_v26 = vsel %vm719_vm3, %v802_v5, %v806_v7  ;;  %v5910_v5 = vsel %vm1181_vm4, %v1212_v55, %v1213_v58  ;;  %v841_v7 = vshrl.u32 %v5714_v34, 16  ;;  %v5914_v12 = vsel %vm719_vm3, %v835_v62, %v839_v63 }
  0x80   : > { %v828_v40 = vrot.slane %v826_v25, 1  ;;  %v5904_v2 = vsel %vm1181_vm4, %v1209_v42, %v1210_v43  ;;  %v355_v25 = vld [vmem:[#allocation2 + $0x160] sm:$0x3]  ;;  %v716_v39 = vpack.c.bf16 %v352_v23, %v352_v23  ;;  %v857_v42 = vor.u32 %v856_v18, %v852_v13  ;;  %v358_v13 = vld [vmem:[#allocation2 + $0x178] sm:$0x3] }
  0x81   : > { %v846_v37 = vor.u32 %v845_v11, %v841_v7  ;;  %v861_v43 = vrot.slane %v859_v20, 1  ;;  %v876_v55 = vshll.u32 %v5747_v53, 16  ;;  %v863_v58 = vshrl.u32 %v5743_v51, 16 }
  0x82   : > { %v5907_v4 = vsel %vm719_vm3, %v824_v54, %v828_v40  ;;  %v865_v40 = vshll.u32 %v5743_v51, 16  ;;  %v717_v54 = vpack.c.bf16 %v355_v25, %v355_v25  ;;  %v5937_v62 = vsel %vm1181_vm4, %v1218_v32, %v1219_v38 }
  0x83   : > { %v5934_v59 = vsel %vm719_vm3, %v846_v37, %v850_v28  ;;  %v870_v0 = vshll.u32 %v716_v39, 16  ;;  %v5940_v1 = vsel %vm719_vm3, %v857_v42, %v861_v43  ;;  %v878_v7 = vrot.slane %v876_v55, 1 }
  0x84   : > { %v867_v63 = vrot.slane %v865_v40, 1  ;;  %v881_v11 = vshll.u32 %v717_v54, 16  ;;  %v1221_v18 = vrot.slane %v5743_v51, 1  ;;  %v1222_v20 = vrot.slane %v716_v39, 1 }
  0x85   : > { %v872_v25 = vrot.slane %v870_v0, 1  ;;  %v718_v28 = vpack.c.bf16 %v358_v13, %v358_v13  ;;  %v879_v30 = vor.u32 %v878_v7, %v874_v3  ;;  %v1224_v37 = vrot.slane %v5747_v53, 1 }
  0x86   : > { %4658 = vmatmul.mubr.msk.bf16.gmra.mxu1 %vm461_vm2, %v5856_v49  ;;  %4694 = vmatmul.mubr.msk.bf16.gmra.mxu0 %vm461_vm2, %v5852_v47  ;;  %v868_v23 = vor.u32 %v867_v63, %v863_v58  ;;  %v883_v32 = vrot.slane %v881_v11, 1  ;;  %v1225_v38 = vrot.slane %v717_v54, 1  ;;  %v5955_v40 = vsel %vm1181_vm4, %v1221_v18, %v1222_v20  ;;  %v5026_v18 = vld [vmem:[%s7625_s1 + $0x50] sm:$0xff]   ;;  %v5027_v20 = vld [vmem:[%s7625_s1 + $0x60] sm:$0xff]  }
  0x87   : > { %4661 = vmatprep.mubr.msk.bf16.mxu1 %vm461_vm2, %v5860_v60  ;;  %4697 = vmatprep.mubr.msk.bf16.mxu0 %vm461_vm2, %v5863_v61  ;;  %v885_v42 = vshrl.u32 %v5763_v9, 16  ;;  %v889_v43 = vrot.slane %v887_v29, 1  ;;  %v892_v55 = vshll.u32 %v718_v28, 16  ;;  %v1227_v3 = vrot.slane %v5763_v9, 1 }
  0x88   : > { %v5958_v39 = vsel %vm719_vm3, %v868_v23, %v872_v25  ;;  %v5962_v58 = vsel %vm719_vm3, %v879_v30, %v883_v32  ;;  %v5965_v63 = vsel %vm1181_vm4, %v1224_v37, %v1225_v38  ;;  %v1228_v7 = vrot.slane %v718_v28, 1  ;;  %v361_v25 = vld [vmem:[#allocation2 + $0x190] sm:$0x3] }
  0x89   : > { %v890_v54 = vor.u32 %v889_v43, %v885_v42  ;;  %v894_v0 = vrot.slane %v892_v55, 1  ;;  %v6054_v28 = vpack.c.bf16 %v361_v25, %v361_v25  ;;  %v5030_v55 = vld [vmem:[%s7625_s1 + $0x70] sm:$0xff]   ;;  %v2993_v25 = vld [vmem:[#allocation3 + $0x10] sm:$0xff] }
  0x8a   : > { %v5980_v13 = vsel %vm1181_vm4, %v1227_v3, %v1228_v7  ;;  %v2991_v7 = vld [vmem:[#allocation3] sm:$0xff]  ;;  %3059 = vrot.lane.b32.xlu1 %v2993_v25, %s5383_s6 }
  0x8b   : > { %v5977_v11 = vsel %vm719_vm3, %v890_v54, %v894_v0  ;;  %7645 = vst [vmem:[#allocation9_spill] sm:$0xff] %v5980_v13  ;;  %v1700_v37 = vshll.u32 %v6054_v28, 16  ;;  %v5031_v54 = vld [vmem:[%s7625_s1 + $0x80] sm:$0xff]   ;;  %3055 = vrot.lane.b32.xlu0 %v2991_v7, %s5383_s6 }
  0x8c   : > { %7644 = vst [vmem:[#allocation8_spill] sm:$0xff] %v5977_v11 }
  0x8d   : > { %v1702_v42 = vrot.slane %v1700_v37, 1 }
  0x8e   : > { %4662 = vmatmul.mubr.msk.bf16.gmra.mxu1 %vm461_vm2, %v5881_v26  ;;  %4698 = vmatmul.mubr.msk.bf16.gmra.mxu0 %vm461_vm2, %v5878_v24 }
  0x8f   : > { %4665 = vmatprep.mubr.msk.bf16.mxu1 %vm461_vm2, %v5888_v31  ;;  %4701 = vmatprep.mubr.msk.bf16.mxu0 %vm461_vm2, %v5884_v27 }
  0x96   : > { %4666 = vmatmul.mubr.msk.bf16.gmra.mxu1 %vm461_vm2, %v5907_v4  ;;  %4702 = vmatmul.mubr.msk.bf16.gmra.mxu0 %vm461_vm2, %v5904_v2 }
  0x97   : > { %4669 = vmatprep.mubr.msk.bf16.mxu1 %vm461_vm2, %v5914_v12  ;;  %4705 = vmatprep.mubr.msk.bf16.mxu0 %vm461_vm2, %v5910_v5 }
  0x9e   : > { %4670 = vmatmul.mubr.msk.bf16.gmra.mxu1 %vm461_vm2, %v5934_v59  ;;  %4706 = vmatmul.mubr.msk.bf16.gmra.mxu0 %vm461_vm2, %v5930_v48 }
  0x9f   : > { %4673 = vmatprep.mubr.msk.bf16.mxu1 %vm461_vm2, %v5940_v1  ;;  %4709 = vmatprep.mubr.msk.bf16.mxu0 %vm461_vm2, %v5937_v62 }
  0xa6   : > { %4674 = vmatmul.mubr.msk.bf16.gmra.mxu1 %vm461_vm2, %v5958_v39  ;;  %4710 = vmatmul.mubr.msk.bf16.gmra.mxu0 %vm461_vm2, %v5955_v40 }
  0xa7   : > { %4677 = vmatprep.mubr.msk.bf16.mxu1 %vm461_vm2, %v5962_v58  ;;  %4713 = vmatprep.mubr.msk.bf16.mxu0 %vm461_vm2, %v5965_v63 }
  0xae   : > { %4678 = vmatmul.mubr.msk.bf16.gmra.mxu1 %vm461_vm2, %v5977_v11  ;;  %4714 = vmatmul.mubr.msk.bf16.gmra.mxu0 %vm461_vm2, %v5980_v13 }
  0xaf   : > { %4721 = vmatprep.mubr.msk.bf16.mxu1 %vm461_vm2, %v5687_v14  ;;  %4757 = vmatprep.mubr.msk.bf16.mxu0 %vm461_vm2, %v5781_v45  ;;  %v5028_v14 = vld [vmem:[%s7625_s1 + $0x78] sm:$0xff]   ;;  %v5029_v45 = vld [vmem:[%s7625_s1 + $0x88] sm:$0xff]  }
  0xb6   : > { %4722 = vmatmul.mubr.msk.bf16.vlgmr.msra.gmra.mxu1 %vm461_vm2, %v5694_v21  ;;  %4758 = vmatmul.mubr.msk.bf16.vlgmr.msra.gmra.mxu0 %vm461_vm2, %v5788_v56 }
  0xb7   : > { %4790 = vmatpush3.bf16.msra.mxu1 %v5816_v41  ;;  %4826 = vmatpush3.bf16.msra.mxu0 %v5821_v44  ;;  %v359_v41 = vld [vmem:[#allocation2 + $0x180] sm:$0xff]  ;;  %v360_v44 = vld [vmem:[#allocation2 + $0x188] sm:$0xff] }
  0xb8   : > { %4725 = vmatprep.mubr.msk.bf16.mxu1 %vm461_vm2, %v5712_v33  ;;  %4761 = vmatprep.mubr.msk.bf16.mxu0 %vm461_vm2, %v5825_v16  ;;  %v6044_v23 = vpack.c.bf16 %v360_v44, %v359_v41  ;;  %v1915_v41 = vrot.slane %v6054_v28, 1  ;;  %v363_v44 = vld [vmem:[#allocation2 + $0x1a0] sm:$0xff]  ;;  %v2994_v28 = vld [vmem:[#allocation3 + $0x18] sm:$0xff] }
  0xb9   : > { %4791 = vmatprep.subr.bf16.mxu1 %v5026_v18  ;;  %4827 = vmatprep.subr.bf16.mxu0 %v5027_v20 }
  0xba   : > { %v1695_v29 = vshll.u32 %v6044_v23, 16  ;;  %v1693_v30 = vshrl.u32 %v6044_v23, 16  ;;  %3061 = vrot.lane.b32.xlu1 %v2994_v28, %s5383_s6 }
  0xbb   : > { %4792 = vmatpush3.bf16.msra.mxu1 %v5026_v18  ;;  %4828 = vmatpush3.bf16.msra.mxu0 %v5027_v20 }
  0xbc   : > { %4861 = vmatprep.subr.bf16.mxu1 %v5028_v14  ;;  %4897 = vmatprep.subr.bf16.mxu0 %v5029_v45  ;;  %v1697_v32 = vrot.slane %v1695_v29, 1  ;;  %v2992_v29 = vld [vmem:[#allocation3 + $0x8] sm:$0xff] }
  0xbd   : > { %3057 = vrot.lane.b32.xlu0 %v2992_v29, %s5383_s6  ;;  %v403_v29 = vld [vmem:[%s5488_s20 + $0x10] sm:$0xff] }
  0xbe   : > { %4726 = vmatmul.mubr.msk.bf16.gmra.mxu1 %vm461_vm2, %v5716_v35  ;;  %4762 = vmatmul.mubr.msk.bf16.gmra.mxu0 %vm461_vm2, %v5834_v19  ;;  %v1698_v38 = vor.u32 %v1697_v32, %v1693_v30 }
  0xbf   : > { %4729 = vmatprep.mubr.msk.bf16.mxu1 %vm461_vm2, %v5741_v50  ;;  %4765 = vmatprep.mubr.msk.bf16.mxu0 %vm461_vm2, %v5856_v49 }
  0xc0   : > { %v6068_v43 = vsel %vm719_vm3, %v1698_v38, %v1702_v42  ;;  %v2995_v42 = vld [vmem:[#allocation3 + $0x20] sm:$0xff] }
  0xc1   : > { %7646 = vst [vmem:[#allocation10_spill] sm:$0xff] %v6068_v43  ;;  %3063 = vrot.lane.b32.xlu0 %v2995_v42, %s5383_s6 }
  0xc6   : > { %4730 = vmatmul.mubr.msk.bf16.gmra.mxu1 %vm461_vm2, %v5745_v52  ;;  %4766 = vmatmul.mubr.msk.bf16.gmra.mxu0 %vm461_vm2, %v5860_v60 }
  0xc7   : > { %4733 = vmatprep.mubr.msk.bf16.mxu1 %vm461_vm2, %v5761_v8  ;;  %4769 = vmatprep.mubr.msk.bf16.mxu0 %vm461_vm2, %v5881_v26 }
  0xce   : > { %4734 = vmatmul.mubr.msk.bf16.gmra.mxu1 %vm461_vm2, %v5678_v10  ;;  %4770 = vmatmul.mubr.msk.bf16.gmra.mxu0 %vm461_vm2, %v5888_v31 }
  0xcf   : > { %4737 = vmatprep.mubr.msk.bf16.mxu1 %vm461_vm2, %v5689_v15  ;;  %4773 = vmatprep.mubr.msk.bf16.mxu0 %vm461_vm2, %v5907_v4 }
  0xd6   : > { %4738 = vmatmul.mubr.msk.bf16.gmra.mxu1 %vm461_vm2, %v5696_v22  ;;  %4774 = vmatmul.mubr.msk.bf16.gmra.mxu0 %vm461_vm2, %v5914_v12 }
  0xd7   : > { %4741 = vmatprep.mubr.msk.bf16.mxu1 %vm461_vm2, %v5714_v34  ;;  %4777 = vmatprep.mubr.msk.bf16.mxu0 %vm461_vm2, %v5934_v59 }
  0xde   : > { %4742 = vmatmul.mubr.msk.bf16.gmra.mxu1 %vm461_vm2, %v5718_v36  ;;  %4778 = vmatmul.mubr.msk.bf16.gmra.mxu0 %vm461_vm2, %v5940_v1 }
  0xdf   : > { %4745 = vmatprep.mubr.msk.bf16.mxu1 %vm461_vm2, %v5743_v51  ;;  %4781 = vmatprep.mubr.msk.bf16.mxu0 %vm461_vm2, %v5958_v39 }
  0xe6   : > { %4746 = vmatmul.mubr.msk.bf16.gmra.mxu1 %vm461_vm2, %v5747_v53  ;;  %4782 = vmatmul.mubr.msk.bf16.gmra.mxu0 %vm461_vm2, %v5962_v58 }
  0xe7   : > { %4749 = vmatprep.mubr.msk.bf16.mxu1 %vm461_vm2, %v5763_v9  ;;  %4785 = vmatprep.mubr.msk.bf16.mxu0 %vm461_vm2, %v5977_v11  ;;  %v3003_v11 = vld [vmem:[#allocation3 + $0x60] sm:$0xff] }
  0xee   : > { %4750 = vmatmul.mubr.msk.bf16.gmra.mxu1 %vm461_vm2, %v6044_v23  ;;  %4786 = vmatmul.mubr.msk.bf16.gmra.mxu0 %vm461_vm2, %v6068_v43 }
  0xef   : > { %4793 = vmatprep.mubr.msk.bf16.mxu1 %vm461_vm2, %v5784_v46  ;;  %4829 = vmatprep.mubr.msk.bf16.mxu0 %vm461_vm2, %v5694_v21 }
  0xf6   : > { %4794 = vmatmul.mubr.msk.bf16.vlgmr.msra.gmra.mxu1 %vm461_vm2, %v5791_v57  ;;  %4830 = vmatmul.mubr.msk.bf16.vlgmr.msra.gmra.mxu0 %vm461_vm2, %v5712_v33 }
  0xf7   : > { %4862 = vmatpush3.bf16.msra.mxu1 %v5028_v14  ;;  %4898 = vmatpush3.bf16.msra.mxu0 %v5029_v45  ;;  %v1914_v45 = vrot.slane %v6044_v23, 1 }
  0xf8   : > { %4797 = vmatprep.mubr.msk.bf16.mxu1 %vm461_vm2, %v5828_v17  ;;  %4833 = vmatprep.mubr.msk.bf16.mxu0 %vm461_vm2, %v5716_v35 }
  0xf9   : > { %4863 = vmatprep.subr.bf16.mxu1 %v5030_v55  ;;  %4899 = vmatprep.subr.bf16.mxu0 %v5031_v54 }
  0xfb   : > { %4864 = vmatpush3.bf16.msra.mxu1 %v5030_v55  ;;  %4900 = vmatpush3.bf16.msra.mxu0 %v5031_v54 }
  0xfe   : > { %4798 = vmatmul.mubr.msk.bf16.gmra.mxu1 %vm461_vm2, %v5831_v6  ;;  %4834 = vmatmul.mubr.msk.bf16.gmra.mxu0 %vm461_vm2, %v5741_v50 }
  0xff   : > { %4801 = vmatprep.mubr.msk.bf16.mxu1 %vm461_vm2, %v5852_v47  ;;  %4837 = vmatprep.mubr.msk.bf16.mxu0 %vm461_vm2, %v5745_v52 }
 0x106   : > { %4802 = vmatmul.mubr.msk.bf16.gmra.mxu1 %vm461_vm2, %v5863_v61  ;;  %4838 = vmatmul.mubr.msk.bf16.gmra.mxu0 %vm461_vm2, %v5761_v8 }
 0x107   : > { %4805 = vmatprep.mubr.msk.bf16.mxu1 %vm461_vm2, %v5878_v24  ;;  %4841 = vmatprep.mubr.msk.bf16.mxu0 %vm461_vm2, %v5678_v10 }
 0x10e   : > { %4806 = vmatmul.mubr.msk.bf16.gmra.mxu1 %vm461_vm2, %v5884_v27  ;;  %4842 = vmatmul.mubr.msk.bf16.gmra.mxu0 %vm461_vm2, %v5689_v15 }
 0x10f   : > { %4809 = vmatprep.mubr.msk.bf16.mxu1 %vm461_vm2, %v5904_v2  ;;  %4845 = vmatprep.mubr.msk.bf16.mxu0 %vm461_vm2, %v5696_v22 }
 0x116   : > { %v6116_v21 = vpop.f32.mrf.mxu0  ;;  %v6118_v33 = vpop.f32.mrf.mxu1  ;;  %4810 = vmatmul.mubr.msk.bf16.gmra.mxu1 %vm461_vm2, %v5910_v5  ;;  %4846 = vmatmul.mubr.msk.bf16.gmra.mxu0 %vm461_vm2, %v5714_v34 }
 0x117   : > { %4813 = vmatprep.mubr.msk.bf16.mxu1 %vm461_vm2, %v5930_v48  ;;  %4849 = vmatprep.mubr.msk.bf16.mxu0 %vm461_vm2, %v5718_v36 }
 0x118   : > { %v6128_v10 = vpop.f32.mrf.mxu0  ;;  %v6130_v15 = vpop.f32.mrf.mxu1 }
 0x11a   : > { %v6132_v22 = vpop.f32.mrf.mxu0  ;;  %v6134_v35 = vpop.f32.mrf.mxu1 }
 0x11c   : > { %v6136_v50 = vpop.f32.mrf.mxu0  ;;  %v6138_v52 = vpop.f32.mrf.mxu1 }
 0x11e   : > { %v6140_v8 = vpop.f32.mrf.mxu0  ;;  %v6142_v34 = vpop.f32.mrf.mxu1  ;;  %4814 = vmatmul.mubr.msk.bf16.gmra.mxu1 %vm461_vm2, %v5937_v62  ;;  %4850 = vmatmul.mubr.msk.bf16.gmra.mxu0 %vm461_vm2, %v5743_v51 }
 0x11f   : > { %4817 = vmatprep.mubr.msk.bf16.mxu1 %vm461_vm2, %v5955_v40  ;;  %4853 = vmatprep.mubr.msk.bf16.mxu0 %vm461_vm2, %v5747_v53  ;;  %v362_v53 = vld [vmem:[#allocation2 + $0x198] sm:$0xff] }
 0x120   : > { %v6152_v36 = vpop.f32.mrf.mxu0  ;;  %v6154_v46 = vpop.f32.mrf.mxu1  ;;  %v6189_v38 = vpack.c.bf16 %v363_v44, %v362_v53  ;;  %v2996_v53 = vld [vmem:[#allocation3 + $0x28] sm:$0xff] }
 0x121   : > { %3065 = vrot.lane.b32.xlu1 %v2996_v53, %s5383_s6  ;;  %v673_v53 = vadd.f32 %v6116_v21, %v403_v29  ;;  %v3000_v21 = vld [vmem:[#allocation3 + $0x48] sm:$0xff]  ;;  %v402_v29 = vld [vmem:[%s5488_s20 + $0x8] sm:$0xff] }
 0x122   : > { %v6156_v0 = vpop.f32.mrf.mxu0  ;;  %v6158_v3 = vpop.f32.mrf.mxu1 }
 0x124   : > { %v6160_v18 = vpop.f32.mrf.mxu0  ;;  %v6162_v20 = vpop.f32.mrf.mxu1 }
 0x125   : > { %7647 = vst [vmem:[#allocation11_spill] sm:$0xff] %v6162_v20 }
 0x126   : > { %v6165_v51 = vpop.f32.mrf.mxu0  ;;  %v6167_v14 = vpop.f32.mrf.mxu1  ;;  %4818 = vmatmul.mubr.msk.bf16.gmra.mxu1 %vm461_vm2, %v5965_v63  ;;  %4854 = vmatmul.mubr.msk.bf16.gmra.mxu0 %vm461_vm2, %v5763_v9 }
 0x127   : > { %7648 = vst [vmem:[#allocation12_spill] sm:$0xff] %v6167_v14  ;;  %4821 = vmatprep.mubr.msk.bf16.mxu1 %vm461_vm2, %v5980_v13  ;;  %4857 = vmatprep.mubr.msk.bf16.mxu0 %vm461_vm2, %v6044_v23  ;;  %v6192_v23 = vsel %vm1181_vm4, %v1914_v45, %v1915_v41  ;;  %v2997_v45 = vld [vmem:[#allocation3 + $0x30] sm:$0xff]  ;;  %v3002_v13 = vld [vmem:[#allocation3 + $0x58] sm:$0xff] }
 0x128   : > { %v6179_v30 = vpop.f32.mrf.mxu0  ;;  %v6181_v32 = vpop.f32.mrf.mxu1  ;;  %7651 = vst [vmem:[#allocation15_spill] sm:$0xff] %v6192_v23  ;;  %3067 = vrot.lane.b32.xlu0 %v2997_v45, %s5383_s6  ;;  %v404_v45 = vld [vmem:[%s5488_s20 + $0x18] sm:$0xff]  ;;  %v405_v14 = vld [vmem:[%s5488_s20 + $0x20] sm:$0xff] }
 0x129   : > { %7649 = vst [vmem:[#allocation13_spill] sm:$0xff] %v6181_v32 }
 0x12a   : > { %v6185_v9 = vpop.f32.mrf.mxu0  ;;  %v6187_v37 = vpop.f32.mrf.mxu1 }
 0x12b   : > { %7650 = vst [vmem:[#allocation14_spill] sm:$0xff] %v6187_v37 }
 0x12c   : > { %v6194_v55 = vpop.f32.mrf.mxu0  ;;  %v6196_v54 = vpop.f32.mrf.mxu1 }
 0x12d   : > { %7652 = vst [vmem:[#allocation16_spill] sm:$0xff] %v6196_v54  ;;  %v401_v54 = vld [vmem:[%s5488_s20] sm:$0xff] }
 0x12e   : > { %v6200_v7 = vpop.f32.mrf.mxu0  ;;  %v6202_v25 = vpop.f32.mrf.mxu1  ;;  %4822 = vmatmul.mubr.msk.bf16.gmra.mxu1 %vm461_vm2, %v6192_v23  ;;  %4858 = vmatmul.mubr.msk.bf16.gmra.mxu0 %vm461_vm2, %v6189_v38 }
 0x12f   : > { %7653 = vst [vmem:[#allocation17_spill] sm:$0xff] %v6202_v25  ;;  %4865 = vmatprep.mubr.msk.bf16.mxu1 %vm461_vm2, %v5788_v56  ;;  %4901 = vmatprep.mubr.msk.bf16.mxu0 %vm461_vm2, %v5791_v57  ;;  %v2998_v56 = vld [vmem:[#allocation3 + $0x38] sm:$0xff]  ;;  %v2999_v25 = vld [vmem:[#allocation3 + $0x40] sm:$0xff] }
 0x130   : > { %v6212_v41 = vpop.f32.mrf.mxu0  ;;  %v6214_v44 = vpop.f32.mrf.mxu1  ;;  %3069 = vrot.lane.b32.xlu1 %v2998_v56, %s5383_s6  ;;  %3071 = vrot.lane.b32.xlu0 %v2999_v25, %s5383_s6  ;;  %v3001_v25 = vld [vmem:[#allocation3 + $0x50] sm:$0xff] }
 0x131   : > { %7654 = vst [vmem:[#allocation18_spill] sm:$0xff] %v6214_v44 }
 0x132   : > { %v6219_v28 = vpop.f32.mrf.mxu0  ;;  %v6221_v42 = vpop.f32.mrf.mxu1 }
 0x133   : > { %7655 = vst [vmem:[#allocation19_spill] sm:$0xff] %v6221_v42  ;;  %v671_v42 = vadd.f32 %v6128_v10, %v401_v54  ;;  %v407_v54 = vld [vmem:[%s5488_s20 + $0x30] sm:$0xff] }
 0x134   : > { %v6224_v57 = vpop.f32.mrf.mxu0  ;;  %v6226_v37 = vpop.f32.mrf.mxu1  ;;  %3073 = vrot.lane.b32.xlu1 %v3000_v21, %s5383_s6  ;;  %3075 = vrot.lane.b32.xlu0 %v3001_v25, %s5383_s6  ;;  %v406_v25 = vld [vmem:[%s5488_s20 + $0x28] sm:$0xff] }
 0x135   : > { %7656 = vst [vmem:[#allocation20_spill] sm:$0xff] %v6226_v37 }
 0x136   : > { %v4651_v44 = vpop.f32.mrf.mxu1  ;;  %v4687_v23 = vpop.f32.mrf.mxu0  ;;  %4866 = vmatmul.mubr.msk.bf16.vlgmr.msra.gmra.mxu1 %vm461_vm2, %v5825_v16  ;;  %4902 = vmatmul.mubr.msk.bf16.vlgmr.msra.gmra.mxu0 %vm461_vm2, %v5828_v17  ;;  %v674_v16 = vadd.f32 %v6132_v22, %v404_v45 }
 0x137   : > { %v1119_v43 = vadd.f32 %v4651_v44, %v673_v53  ;;  %4869 = vmatprep.mubr.msk.bf16.mxu1 %vm461_vm2, %v5834_v19  ;;  %4905 = vmatprep.mubr.msk.bf16.mxu0 %vm461_vm2, %v5831_v6  ;;  %v672_v6 = vadd.f32 %v6136_v50, %v402_v29 }
 0x138   : > { %v990_v56 = vpop.f32.mrf.mxu1  ;;  %v1324_v37 = vpop.f32.mrf.mxu0  ;;  %3077 = vrot.lane.b32.xlu1 %v3002_v13, %s5383_s6  ;;  %3079 = vrot.lane.b32.xlu0 %v3003_v11, %s5383_s6  ;;  %v675_v13 = vadd.f32 %v6152_v36, %v405_v14  ;;  %v411_v14 = vld [vmem:[%s5488_s20 + $0x50] sm:$0xff] }
 0x139   : > { %v6245_v17 = vadd.f32 %v4687_v23, %v1119_v43  ;;  %v1117_v10 = vadd.f32 %v990_v56, %v671_v42  ;;  %v677_v43 = vadd.f32 %v6140_v8, %v407_v54  ;;  %v408_v42 = vld [vmem:[%s5488_s20 + $0x38] sm:$0xff]  ;;  %v3006_v54 = vld [vmem:[#allocation3 + $0x78] sm:$0xff] }
 0x13a   : > { %v4652_v19 = vpop.f32.mrf.mxu1  ;;  %v4688_v44 = vpop.f32.mrf.mxu0  ;;  %v3004_v8 = vld [vmem:[#allocation3 + $0x68] sm:$0xff] }
 0x13b   : > { %v6249_v53 = vadd.f32 %v1324_v37, %v1117_v10  ;;  %v1120_v32 = vadd.f32 %v4652_v19, %v674_v16  ;;  %v3007_v19 = vld [vmem:[#allocation3 + $0x80] sm:$0xff] }
 0x13c   : > { %v993_v21 = vpop.f32.mrf.mxu1  ;;  %v1327_v20 = vpop.f32.mrf.mxu0  ;;  %3081 = vrot.lane.b32.xlu1 %v3004_v8, %s5383_s6  ;;  %v3009_v8 = vld [vmem:[#allocation3 + $0x90] sm:$0xff] }
 0x13d   : > { %v6255_v22 = vadd.f32 %v4688_v44, %v1120_v32  ;;  %v1118_v23 = vadd.f32 %v993_v21, %v672_v6  ;;  %v3005_v32 = vld [vmem:[#allocation3 + $0x70] sm:$0xff] }
 0x13e   : > { %v4655_v50 = vpop.f32.mrf.mxu1  ;;  %v4691_v37 = vpop.f32.mrf.mxu0  ;;  %4870 = vmatmul.mubr.msk.bf16.gmra.mxu1 %vm461_vm2, %v5856_v49  ;;  %4906 = vmatmul.mubr.msk.bf16.gmra.mxu0 %vm461_vm2, %v5852_v47  ;;  %v678_v47 = vadd.f32 %v6156_v0, %v408_v42  ;;  %v409_v44 = vld [vmem:[%s5488_s20 + $0x40] sm:$0xff]  ;;  %v681_v0 = vadd.f32 %v6165_v51, %v411_v14  ;;  %v412_v42 = vld [vmem:[%s5488_s20 + $0x58] sm:$0xff] }
 0x13f   : > { %v6263_v45 = vadd.f32 %v1327_v20, %v1118_v23  ;;  %v1123_v11 = vadd.f32 %v4655_v50, %v677_v43  ;;  %4873 = vmatprep.mubr.msk.bf16.mxu1 %vm461_vm2, %v5860_v60  ;;  %4909 = vmatprep.mubr.msk.bf16.mxu0 %vm461_vm2, %v5863_v61  ;;  %v676_v61 = vadd.f32 %v6160_v18, %v406_v25  ;;  %v3008_v51 = vld [vmem:[#allocation3 + $0x88] sm:$0xff] }
 0x140   : > { %v1006_v49 = vpop.f32.mrf.mxu1  ;;  %v1340_v29 = vpop.f32.mrf.mxu0  ;;  %3083 = vrot.lane.b32.xlu0 %v3005_v32, %s5383_s6  ;;  %3085 = vrot.lane.b32.xlu1 %v3006_v54, %s5383_s6  ;;  %v410_v32 = vld [vmem:[%s5488_s20 + $0x48] sm:$0xff] }
 0x141   : > { %v6273_v36 = vadd.f32 %v4691_v37, %v1123_v11  ;;  %v1121_v20 = vadd.f32 %v1006_v49, %v675_v13  ;;  %v679_v37 = vadd.f32 %v6179_v30, %v409_v44 }
 0x142   : > { %v4656_v60 = vpop.f32.mrf.mxu1  ;;  %v4692_v56 = vpop.f32.mrf.mxu0 }
 0x143   : > { %v6277_v16 = vadd.f32 %v1340_v29, %v1121_v20  ;;  %v1124_v10 = vadd.f32 %v4656_v60, %v678_v47  ;;  %v415_v29 = vld [vmem:[%s5488_s20 + $0x70] sm:$0xff]  ;;  %v3010_v60 = vld [vmem:[#allocation3 + $0x98] sm:$0xff] }
 0x144   : > { %v1009_v6 = vpop.f32.mrf.mxu1  ;;  %v1343_v21 = vpop.f32.mrf.mxu0  ;;  %3087 = vrot.lane.b32.xlu0 %v3007_v19, %s5383_s6  ;;  %3089 = vrot.lane.b32.xlu1 %v3008_v51, %s5383_s6  ;;  %v419_v51 = vld [vmem:[%s5488_s20 + $0x90] sm:$0xff] }
 0x145   : > { %v6283_v43 = vadd.f32 %v4692_v56, %v1124_v10  ;;  %v1122_v23 = vadd.f32 %v1009_v6, %v676_v61  ;;  %v3011_v56 = vld [vmem:[#allocation3 + $0xa0] sm:$0xff]  ;;  %v413_v61 = vld [vmem:[%s5488_s20 + $0x60] sm:$0xff]  ;;  %v416_v6 = vld [vmem:[%s5488_s20 + $0x78] sm:$0xff] }
 0x146   : > { %v4659_v18 = vpop.f32.mrf.mxu1  ;;  %v4695_v50 = vpop.f32.mrf.mxu0  ;;  %4874 = vmatmul.mubr.msk.bf16.gmra.mxu1 %vm461_vm2, %v5881_v26  ;;  %4910 = vmatmul.mubr.msk.bf16.gmra.mxu0 %vm461_vm2, %v5878_v24  ;;  %v682_v24 = vadd.f32 %v6185_v9, %v412_v42  ;;  %v685_v9 = vadd.f32 %v6200_v7, %v415_v29  ;;  %v3012_v7 = vld [vmem:[#allocation3 + $0xa8] sm:$0xff] }
 0x147   : > { %v6291_v13 = vadd.f32 %v1343_v21, %v1122_v23  ;;  %v1127_v11 = vadd.f32 %v4659_v18, %v681_v0  ;;  %4877 = vmatprep.mubr.msk.bf16.mxu1 %vm461_vm2, %v5888_v31  ;;  %4913 = vmatprep.mubr.msk.bf16.mxu0 %vm461_vm2, %v5884_v27  ;;  %v680_v27 = vadd.f32 %v6194_v55, %v410_v32  ;;  %v3013_v18 = vld [vmem:[#allocation3 + $0xb0] sm:$0xff] }
 0x148   : > { %v1022_v26 = vpop.f32.mrf.mxu1  ;;  %v1356_v25 = vpop.f32.mrf.mxu0  ;;  %3091 = vrot.lane.b32.xlu0 %v3009_v8, %s5383_s6  ;;  %3093 = vrot.lane.b32.xlu1 %v3010_v60, %s5383_s6  ;;  %v683_v0 = vadd.f32 %v6212_v41, %v413_v61 }
 0x149   : > { %v6301_v30 = vadd.f32 %v4695_v50, %v1127_v11  ;;  %v1125_v49 = vadd.f32 %v1022_v26, %v679_v37  ;;  %v414_v50 = vld [vmem:[%s5488_s20 + $0x68] sm:$0xff] }
 0x14a   : > { %v4660_v31 = vpop.f32.mrf.mxu1  ;;  %v4696_v47 = vpop.f32.mrf.mxu0 }
 0x14b   : > { %v6305_v20 = vadd.f32 %v1356_v25, %v1125_v49  ;;  %v1128_v14 = vadd.f32 %v4660_v31, %v682_v24  ;;  %v3014_v25 = vld [vmem:[#allocation3 + $0xb8] sm:$0xff]  ;;  %v3015_v24 = vld [vmem:[#allocation3 + $0xc0] sm:$0xff]  ;;  %v417_v49 = vld [vmem:[%s5488_s20 + $0x80] sm:$0xff] }
 0x14c   : > { %v1025_v10 = vpop.f32.mrf.mxu1  ;;  %v1359_v54 = vpop.f32.mrf.mxu0  ;;  %3095 = vrot.lane.b32.xlu0 %v3011_v56, %s5383_s6  ;;  %3097 = vrot.lane.b32.xlu1 %v3012_v7, %s5383_s6  ;;  %v687_v56 = vadd.f32 %v6130_v15, %v417_v49  ;;  %v364_v7 = vld [vmem:[#allocation2 + $0x1a8] sm:$0x3]  ;;  %v3021_v49 = vld [vmem:[#allocation3 + $0xf0] sm:$0xff] }
 0x14d   : > { %v6311_v19 = vadd.f32 %v4696_v47, %v1128_v14  ;;  %v1126_v44 = vadd.f32 %v1025_v10, %v680_v27  ;;  %v420_v14 = vld [vmem:[%s5488_s20 + $0x98] sm:$0xff] }
 0x14e   : > { %v4663_v55 = vpop.f32.mrf.mxu1  ;;  %v4699_v21 = vpop.f32.mrf.mxu0  ;;  %4878 = vmatmul.mubr.msk.bf16.gmra.mxu1 %vm461_vm2, %v5907_v4  ;;  %4914 = vmatmul.mubr.msk.bf16.gmra.mxu0 %vm461_vm2, %v5904_v2  ;;  %v686_v2 = vadd.f32 %v6219_v28, %v416_v6  ;;  %v689_v28 = vadd.f32 %v6118_v33, %v419_v51  ;;  %v3016_v33 = vld [vmem:[#allocation3 + $0xc8] sm:$0xff] }
 0x14f   : > { %v6319_v23 = vadd.f32 %v1359_v54, %v1126_v44  ;;  %v1131_v42 = vadd.f32 %v4663_v55, %v685_v9  ;;  %4881 = vmatprep.mubr.msk.bf16.mxu1 %vm461_vm2, %v5914_v12  ;;  %4917 = vmatprep.mubr.msk.bf16.mxu0 %vm461_vm2, %v5910_v5  ;;  %v684_v5 = vadd.f32 %v6224_v57, %v414_v50  ;;  %v3017_v54 = vld [vmem:[#allocation3 + $0xd0] sm:$0xff]  ;;  %v418_v9 = vld [vmem:[%s5488_s20 + $0x88] sm:$0xff]  ;;  %v423_v55 = vld [vmem:[%s5488_s20 + $0xb0] sm:$0xff] }
 0x150   : > { %v1038_v4 = vpop.f32.mrf.mxu1  ;;  %v1372_v37 = vpop.f32.mrf.mxu0  ;;  %3099 = vrot.lane.b32.xlu0 %v3013_v18, %s5383_s6  ;;  %3101 = vrot.lane.b32.xlu1 %v3014_v25, %s5383_s6  ;;  %v3018_v18 = vld [vmem:[#allocation3 + $0xd8] sm:$0xff]  ;;  %v3019_v50 = vld [vmem:[#allocation3 + $0xe0] sm:$0xff] }
 0x151   : > { %v6329_v41 = vadd.f32 %v4699_v21, %v1131_v42  ;;  %v1129_v11 = vadd.f32 %v1038_v4, %v683_v0  ;;  %v421_v4 = vld [vmem:[%s5488_s20 + $0xa0] sm:$0xff] }
 0x152   : > { %v4664_v12 = vpop.f32.mrf.mxu1  ;;  %v4700_v8 = vpop.f32.mrf.mxu0 }
 0x153   : > { %v6333_v32 = vadd.f32 %v1372_v37, %v1129_v11  ;;  %v1132_v26 = vadd.f32 %v4664_v12, %v686_v2 }
 0x154   : > { %v1041_v29 = vpop.f32.mrf.mxu1  ;;  %v1375_v31 = vpop.f32.mrf.mxu0  ;;  %3103 = vrot.lane.b32.xlu0 %v3015_v24, %s5383_s6  ;;  %3105 = vrot.lane.b32.xlu1 %v3016_v33, %s5383_s6 }
 0x155   : > { %v6339_v47 = vadd.f32 %v4700_v8, %v1132_v26  ;;  %v1130_v27 = vadd.f32 %v1041_v29, %v684_v5  ;;  %v6374_v5 = vpack.c.bf16 %v364_v7, %v364_v7  ;;  %v2337_v26 = vshll.u32 %v6189_v38, 16  ;;  %v422_v29 = vld [vmem:[%s5488_s20 + $0xa8] sm:$0xff] }
 0x156   : > { %v4667_v57 = vpop.f32.mrf.mxu1  ;;  %v4703_v60 = vpop.f32.mrf.mxu0  ;;  %4882 = vmatmul.mubr.msk.bf16.gmra.mxu1 %vm461_vm2, %v5934_v59  ;;  %4918 = vmatmul.mubr.msk.bf16.gmra.mxu0 %vm461_vm2, %v5930_v48  ;;  %v690_v48 = vadd.f32 %v6134_v35, %v420_v14  ;;  %v693_v35 = vadd.f32 %v6142_v34, %v423_v55  ;;  %v691_v34 = vadd.f32 %v6154_v46, %v421_v4  ;;  %v427_v14 = vld [vmem:[%s5488_s20 + $0xd0] sm:$0xff] }
 0x157   : > { %v6347_v61 = vadd.f32 %v1375_v31, %v1130_v27  ;;  %v1135_v10 = vadd.f32 %v4667_v57, %v689_v28  ;;  %4885 = vmatprep.mubr.msk.bf16.mxu1 %vm461_vm2, %v5940_v1  ;;  %4921 = vmatprep.mubr.msk.bf16.mxu0 %vm461_vm2, %v5937_v62  ;;  %v688_v62 = vadd.f32 %v6138_v52, %v418_v9  ;;  %v424_v52 = vld [vmem:[%s5488_s20 + $0xb8] sm:$0xff] }
 0x158   : > { %v1054_v44 = vpop.f32.mrf.mxu1  ;;  %v1388_v59 = vpop.f32.mrf.mxu0  ;;  %3107 = vrot.lane.b32.xlu0 %v3017_v54, %s5383_s6  ;;  %3109 = vrot.lane.b32.xlu1 %v3018_v18, %s5383_s6  ;;  %v694_v46 = vadd.f32 %v6158_v3, %v424_v52  ;;  %v7659_v18 = vld [vmem:[#allocation8_spill] sm:$0xff] }
 0x159   : > { %v6357_v15 = vadd.f32 %v4703_v60, %v1135_v10  ;;  %v1133_v6 = vadd.f32 %v1054_v44, %v687_v56  ;;  %v2339_v60 = vrot.slane %v2337_v26, 1  ;;  %v2342_v56 = vshll.u32 %v6374_v5, 16  ;;  %v7657_v10 = vld [vmem:[#allocation11_spill] sm:$0xff] }
 0x15a   : > { %v4668_v1 = vpop.f32.mrf.mxu1  ;;  %v4704_v21 = vpop.f32.mrf.mxu0  ;;  %v692_v33 = vadd.f32 %v7657_v10, %v422_v29  ;;  %v3022_v44 = vld [vmem:[#allocation3 + $0xf8] sm:$0xff]  ;;  %v7664_v29 = vld [vmem:[#allocation14_spill] sm:$0xff] }
 0x15b   : > { %v6361_v0 = vadd.f32 %v1388_v59, %v1133_v6  ;;  %v1136_v42 = vadd.f32 %v4668_v1, %v690_v48  ;;  %v425_v59 = vld [vmem:[%s5488_s20 + $0xc0] sm:$0xff]  ;;  %v7658_v6 = vld [vmem:[#allocation12_spill] sm:$0xff]  ;;  %v7663_v26 = vld [vmem:[#allocation15_spill] sm:$0xff] }
 0x15c   : > { %v1057_v37 = vpop.f32.mrf.mxu1  ;;  %v1391_v2 = vpop.f32.mrf.mxu0  ;;  %3111 = vrot.lane.b32.xlu0 %v3019_v50, %s5383_s6  ;;  %v697_v55 = vadd.f32 %v7658_v6, %v427_v14  ;;  %v7660_v50 = vld [vmem:[#allocation9_spill] sm:$0xff]  ;;  %v429_v10 = vld [vmem:[%s5488_s20 + $0xe0] sm:$0xff] }
 0x15d   : > { %v6367_v11 = vadd.f32 %v4704_v21, %v1136_v42  ;;  %v1134_v51 = vadd.f32 %v1057_v37, %v688_v62  ;;  %v428_v62 = vld [vmem:[%s5488_s20 + $0xd8] sm:$0xff]  ;;  %v2344_v37 = vrot.slane %v2342_v56, 1 }
 0x15e   : > { %v4671_v12 = vpop.f32.mrf.mxu1  ;;  %v4707_v8 = vpop.f32.mrf.mxu0  ;;  %4886 = vmatmul.mubr.msk.bf16.gmra.mxu1 %vm461_vm2, %v5958_v39  ;;  %4922 = vmatmul.mubr.msk.bf16.gmra.mxu0 %vm461_vm2, %v5955_v40  ;;  %v3020_v39 = vld [vmem:[#allocation3 + $0xe8] sm:$0xff] }
 0x15f   : > { %v6378_v25 = vadd.f32 %v1391_v2, %v1134_v51  ;;  %v1139_v24 = vadd.f32 %v4671_v12, %v693_v35  ;;  %4889 = vmatprep.mubr.msk.bf16.mxu1 %vm461_vm2, %v5962_v58  ;;  %4925 = vmatprep.mubr.msk.bf16.mxu0 %vm461_vm2, %v5965_v63  ;;  %v2335_v63 = vshrl.u32 %v6189_v38, 16  ;;  %v2556_v2 = vrot.slane %v6189_v38, 1  ;;  %v7661_v35 = vld [vmem:[#allocation13_spill] sm:$0xff] }
 0x160   : > { %v1070_v40 = vpop.f32.mrf.mxu1  ;;  %v1404_v31 = vpop.f32.mrf.mxu0  ;;  %3113 = vrot.lane.b32.xlu1 %v3020_v39, %s5383_s6  ;;  %3115 = vrot.lane.b32.xlu0 %v3021_v49, %s5383_s6  ;;  %v695_v51 = vadd.f32 %v7661_v35, %v425_v59  ;;  %v432_v6 = vld [vmem:[%s5488_s20 + $0xf8] sm:$0xff] }
 0x161   : > { %v6388_v28 = vadd.f32 %v4707_v8, %v1139_v24  ;;  %v1137_v27 = vadd.f32 %v1070_v40, %v691_v34  ;;  %v2340_v4 = vor.u32 %v2339_v60, %v2335_v63  ;;  %v7662_v8 = vld [vmem:[#allocation10_spill] sm:$0xff]  ;;  %v2557_v34 = vrot.slane %v6374_v5, 1  ;;  %v426_v24 = vld [vmem:[%s5488_s20 + $0xc8] sm:$0xff] }
 0x162   : > { %v4672_v58 = vpop.f32.mrf.mxu1  ;;  %v4708_v57 = vpop.f32.mrf.mxu0  ;;  %v698_v40 = vadd.f32 %v7664_v29, %v428_v62  ;;  %v7667_v62 = vld [vmem:[#allocation18_spill] sm:$0xff] }
 0x163   : > { %v6394_v54 = vadd.f32 %v1404_v31, %v1137_v27  ;;  %v1140_v9 = vadd.f32 %v4672_v58, %v694_v46  ;;  %v431_v46 = vld [vmem:[%s5488_s20 + $0xf0] sm:$0xff]  ;;  %v2345_v58 = vsel %vm719_vm3, %v2340_v4, %v2344_v37  ;;  %v2558_v5 = vsel %vm1181_vm4, %v2556_v2, %v2557_v34  ;;  %v7668_v2 = vld [vmem:[#allocation19_spill] sm:$0xff] }
 0x164   : > { %v1073_v3 = vpop.f32.mrf.mxu1  ;;  %v1407_v48 = vpop.f32.mrf.mxu0  ;;  %3117 = vrot.lane.b32.xlu1 %v3022_v44, %s5383_s6  ;;  %v7666_v44 = vld [vmem:[#allocation17_spill] sm:$0xff]  ;;  %v702_v35 = vadd.f32 %v7668_v2, %v432_v6  ;;  %v7669_v34 = vld [vmem:[#allocation20_spill] sm:$0xff] }
 0x165   : > { %v6399_v1 = vadd.f32 %v4708_v57, %v1140_v9  ;;  %v1138_v21 = vadd.f32 %v1073_v3, %v692_v33  ;;  %v7665_v57 = vld [vmem:[#allocation16_spill] sm:$0xff]  ;;  %v701_v59 = vadd.f32 %v7666_v44, %v431_v46 }
 0x166   : > { %v4675_v42 = vpop.f32.mrf.mxu1  ;;  %v4711_v7 = vpop.f32.mrf.mxu0  ;;  %4890 = vmatmul.mubr.msk.bf16.gmra.mxu1 %vm461_vm2, %v7659_v18  ;;  %4926 = vmatmul.mubr.msk.bf16.gmra.mxu0 %vm461_vm2, %v7660_v50  ;;  %v696_v63 = vadd.f32 %v7665_v57, %v426_v24  ;;  %v430_v50 = vld [vmem:[%s5488_s20 + $0xe8] sm:$0xff]  ;;  %s5384_s20 = smov 96  }
 0x167   : > { %v6408_v52 = vadd.f32 %v1407_v48, %v1138_v21  ;;  %v1143_v12 = vadd.f32 %v4675_v42, %v697_v55  ;;  %4893 = vmatprep.mubr.msk.bf16.mxu1 %vm461_vm2, %v7662_v8  ;;  %4929 = vmatprep.mubr.msk.bf16.mxu0 %vm461_vm2, %v7663_v26  ;;  %v699_v42 = vadd.f32 %v7667_v62, %v429_v10 }
 0x168   : > { %v1086_v39 = vpop.f32.mrf.mxu1  ;;  %v1420_v49 = vpop.f32.mrf.mxu0  ;;  %v700_v24 = vadd.f32 %v7669_v34, %v430_v50 }
 0x169   : > { %v6417_v38 = vadd.f32 %v4711_v7, %v1143_v12  ;;  %v1141_v31 = vadd.f32 %v1086_v39, %v695_v51 }
 0x16a   : > { %v4676_v27 = vpop.f32.mrf.mxu1  ;;  %v4712_v14 = vpop.f32.mrf.mxu0 }
 0x16b   : > { %v6422_v60 = vadd.f32 %v1420_v49, %v1141_v31  ;;  %v1144_v56 = vadd.f32 %v4676_v27, %v698_v40 }
 0x16c   : > { %v1089_v33 = vpop.f32.mrf.mxu1  ;;  %v1423_v9 = vpop.f32.mrf.mxu0 }
 0x16d   : > { %v6427_v3 = vadd.f32 %v4712_v14, %v1144_v56  ;;  %v1142_v48 = vadd.f32 %v1089_v33, %v696_v63 }
 0x16e   : > { %v4679_v55 = vpop.f32.mrf.mxu1  ;;  %v4715_v21 = vpop.f32.mrf.mxu0  ;;  %4894 = vmatmul.mubr.msk.bf16.gmra.mxu1 %vm461_vm2, %v2345_v58  ;;  %4930 = vmatmul.mubr.msk.bf16.gmra.mxu0 %vm461_vm2, %v2558_v5 }
 0x16f   : > { %v6433_v7 = vadd.f32 %v1423_v9, %v1142_v48  ;;  %v1147_v18 = vadd.f32 %v4679_v55, %v701_v59 }
 0x170   : > { %v1102_v4 = vpop.f32.mrf.mxu1  ;;  %v1436_v37 = vpop.f32.mrf.mxu0 }
 0x171   : > { %v6437_v51 = vadd.f32 %v4715_v21, %v1147_v18  ;;  %v1145_v12 = vadd.f32 %v1102_v4, %v699_v42 }
 0x172   : > { %v4680_v8 = vpop.f32.mrf.mxu1  ;;  %v4716_v26 = vpop.f32.mrf.mxu0 }
 0x173   : > { %v6440_v39 = vadd.f32 %v1436_v37, %v1145_v12  ;;  %v1148_v49 = vadd.f32 %v4680_v8, %v702_v35 }
 0x174   : > { %v1105_v29 = vpop.f32.mrf.mxu1  ;;  %v1439_v40 = vpop.f32.mrf.mxu0 }
 0x175   : > { %v6442_v31 = vadd.f32 %v4716_v26, %v1148_v49  ;;  %v1146_v46 = vadd.f32 %v1105_v29, %v700_v24 }
 0x176   : > { %v4723_v27 = vpop.f32.mrf.mxu1  ;;  %v4759_v14 = vpop.f32.mrf.mxu0 }
 0x177   : > { %v6444_v58 = vadd.f32 %v1439_v40, %v1146_v46  ;;  %v1662_v57 = vadd.f32 %v4723_v27, %v6245_v17 }
 0x178   : > { %v1533_v63 = vpop.f32.mrf.mxu1  ;;  %v1753_v56 = vpop.f32.mrf.mxu0 }
 0x179   : > { %v6447_v5 = vadd.f32 %v4759_v14, %v1662_v57  ;;  %v1660_v10 = vadd.f32 %v1533_v63, %v6249_v53 }
 0x17a   : > { %v4724_v33 = vpop.f32.mrf.mxu1  ;;  %v4760_v9 = vpop.f32.mrf.mxu0 }
 0x17b   : > { %v6450_v44 = vadd.f32 %v1753_v56, %v1660_v10  ;;  %v1663_v59 = vadd.f32 %v4724_v33, %v6255_v22 }
 0x17c   : > { %v1536_v48 = vpop.f32.mrf.mxu1  ;;  %v1756_v6 = vpop.f32.mrf.mxu0 }
 0x17d   : > { %v6453_v55 = vadd.f32 %v4760_v9, %v1663_v59  ;;  %v1661_v21 = vadd.f32 %v1536_v48, %v6263_v45 }
 0x17e   : > { %v4727_v62 = vpop.f32.mrf.mxu1  ;;  %v4763_v17 = vpop.f32.mrf.mxu0 }
 0x17f   : > { %v6456_v42 = vadd.f32 %v1756_v6, %v1661_v21  ;;  %v1666_v18 = vadd.f32 %v4727_v62, %v6273_v36 }
 0x180   : > { %v1549_v50 = vpop.f32.mrf.mxu1  ;;  %v1769_v53 = vpop.f32.mrf.mxu0 }
 0x181   : > { %v6459_v4 = vadd.f32 %v4763_v17, %v1666_v18  ;;  %v1664_v37 = vadd.f32 %v1549_v50, %v6277_v16 }
 0x182   : > { %v4728_v2 = vpop.f32.mrf.mxu1  ;;  %v4764_v22 = vpop.f32.mrf.mxu0 }
 0x183   : > { %v6462_v35 = vadd.f32 %v1769_v53, %v1664_v37  ;;  %v1667_v12 = vadd.f32 %v4728_v2, %v6283_v43 }
 0x184   : > { %v1552_v8 = vpop.f32.mrf.mxu1  ;;  %v1772_v45 = vpop.f32.mrf.mxu0 }
 0x185   : > { %v6465_v26 = vadd.f32 %v4764_v22, %v1667_v12  ;;  %v1665_v34 = vadd.f32 %v1552_v8, %v6291_v13 }
 0x186   : > { %v4731_v24 = vpop.f32.mrf.mxu1  ;;  %v4767_v36 = vpop.f32.mrf.mxu0 }
 0x187   : > { %v6468_v49 = vadd.f32 %v1772_v45, %v1665_v34  ;;  %v1670_v29 = vadd.f32 %v4731_v24, %v6301_v30 }
 0x188   : > { %v1565_v40 = vpop.f32.mrf.mxu1  ;;  %v1785_v16 = vpop.f32.mrf.mxu0 }
 0x189   : > { %v6471_v46 = vadd.f32 %v4767_v36, %v1670_v29  ;;  %v1668_v27 = vadd.f32 %v1565_v40, %v6305_v20 }
 0x18a   : > { %v4732_v14 = vpop.f32.mrf.mxu1  ;;  %v4768_v43 = vpop.f32.mrf.mxu0 }
 0x18b   : > { %v6474_v57 = vadd.f32 %v1785_v16, %v1668_v27  ;;  %v1671_v63 = vadd.f32 %v4732_v14, %v6311_v19 }
 0x18c   : > { %v1568_v56 = vpop.f32.mrf.mxu1  ;;  %v1788_v13 = vpop.f32.mrf.mxu0 }
 0x18d   : > { %v6477_v10 = vadd.f32 %v4768_v43, %v1671_v63  ;;  %v1669_v33 = vadd.f32 %v1568_v56, %v6319_v23 }
 0x18e   : > { %v4735_v9 = vpop.f32.mrf.mxu1  ;;  %v4771_v30 = vpop.f32.mrf.mxu0 }
 0x18f   : > { %v6480_v59 = vadd.f32 %v1788_v13, %v1669_v33  ;;  %v1674_v48 = vadd.f32 %v4735_v9, %v6329_v41 }
 0x190   : > { %v1581_v6 = vpop.f32.mrf.mxu1  ;;  %v1801_v20 = vpop.f32.mrf.mxu0 }
 0x191   : > { %v6483_v21 = vadd.f32 %v4771_v30, %v1674_v48  ;;  %v1672_v62 = vadd.f32 %v1581_v6, %v6333_v32 }
 0x192   : > { %v4736_v17 = vpop.f32.mrf.mxu1  ;;  %v4772_v19 = vpop.f32.mrf.mxu0 }
 0x193   : > { %v6486_v18 = vadd.f32 %v1801_v20, %v1672_v62  ;;  %v1675_v50 = vadd.f32 %v4736_v17, %v6339_v47 }
 0x194   : > { %v1584_v53 = vpop.f32.mrf.mxu1  ;;  %v1804_v23 = vpop.f32.mrf.mxu0 }
 0x195   : > { %v6489_v37 = vadd.f32 %v4772_v19, %v1675_v50  ;;  %v1673_v2 = vadd.f32 %v1584_v53, %v6347_v61 }
 0x196   : > { %v4739_v22 = vpop.f32.mrf.mxu1  ;;  %v4775_v41 = vpop.f32.mrf.mxu0 }
 0x197   : > { %v6492_v12 = vadd.f32 %v1804_v23, %v1673_v2  ;;  %v1678_v8 = vadd.f32 %v4739_v22, %v6357_v15 }
 0x198   : > { %v1597_v45 = vpop.f32.mrf.mxu1  ;;  %v1817_v32 = vpop.f32.mrf.mxu0 }
 0x199   : > { %v6495_v34 = vadd.f32 %v4775_v41, %v1678_v8  ;;  %v1676_v24 = vadd.f32 %v1597_v45, %v6361_v0 }
 0x19a   : > { %v4740_v36 = vpop.f32.mrf.mxu1  ;;  %v4776_v47 = vpop.f32.mrf.mxu0 }
 0x19b   : > { %v6498_v29 = vadd.f32 %v1817_v32, %v1676_v24  ;;  %v1679_v40 = vadd.f32 %v4740_v36, %v6367_v11 }
 0x19c   : > { %v1600_v16 = vpop.f32.mrf.mxu1  ;;  %v1820_v61 = vpop.f32.mrf.mxu0 }
 0x19d   : > { %v6501_v27 = vadd.f32 %v4776_v47, %v1679_v40  ;;  %v1677_v14 = vadd.f32 %v1600_v16, %v6378_v25 }
 0x19e   : > { %v4743_v43 = vpop.f32.mrf.mxu1  ;;  %v4779_v15 = vpop.f32.mrf.mxu0 }
 0x19f   : > { %v6504_v63 = vadd.f32 %v1820_v61, %v1677_v14  ;;  %v1682_v56 = vadd.f32 %v4743_v43, %v6388_v28 }
 0x1a0   : > { %v1613_v13 = vpop.f32.mrf.mxu1  ;;  %v1833_v0 = vpop.f32.mrf.mxu0 }
 0x1a1   : > { %v6507_v33 = vadd.f32 %v4779_v15, %v1682_v56  ;;  %v1680_v9 = vadd.f32 %v1613_v13, %v6394_v54 }
 0x1a2   : > { %v4744_v30 = vpop.f32.mrf.mxu1  ;;  %v4780_v11 = vpop.f32.mrf.mxu0 }
 0x1a3   : > { %v6510_v48 = vadd.f32 %v1833_v0, %v1680_v9  ;;  %v1683_v6 = vadd.f32 %v4744_v30, %v6399_v1 }
 0x1a4   : > { %v1616_v20 = vpop.f32.mrf.mxu1  ;;  %v1836_v25 = vpop.f32.mrf.mxu0 }
 0x1a5   : > { %v6513_v62 = vadd.f32 %v4780_v11, %v1683_v6  ;;  %v1681_v17 = vadd.f32 %v1616_v20, %v6408_v52 }
 0x1a6   : > { %v4747_v19 = vpop.f32.mrf.mxu1  ;;  %v4783_v28 = vpop.f32.mrf.mxu0 }
 0x1a7   : > { %v6516_v50 = vadd.f32 %v1836_v25, %v1681_v17  ;;  %v1686_v53 = vadd.f32 %v4747_v19, %v6417_v38 }
 0x1a8   : > { %v1629_v23 = vpop.f32.mrf.mxu1  ;;  %v1849_v54 = vpop.f32.mrf.mxu0 }
 0x1a9   : > { %v6519_v2 = vadd.f32 %v4783_v28, %v1686_v53  ;;  %v1684_v22 = vadd.f32 %v1629_v23, %v6422_v60 }
 0x1aa   : > { %v4748_v41 = vpop.f32.mrf.mxu1  ;;  %v4784_v1 = vpop.f32.mrf.mxu0 }
 0x1ab   : > { %v6522_v8 = vadd.f32 %v1849_v54, %v1684_v22  ;;  %v1687_v45 = vadd.f32 %v4748_v41, %v6427_v3 }
 0x1ac   : > { %v1632_v32 = vpop.f32.mrf.mxu1  ;;  %v1852_v52 = vpop.f32.mrf.mxu0 }
 0x1ad   : > { %v6525_v24 = vadd.f32 %v4784_v1, %v1687_v45  ;;  %v1685_v36 = vadd.f32 %v1632_v32, %v6433_v7 }
 0x1ae   : > { %v4751_v47 = vpop.f32.mrf.mxu1  ;;  %v4787_v38 = vpop.f32.mrf.mxu0 }
 0x1af   : > { %v6528_v40 = vadd.f32 %v1852_v52, %v1685_v36  ;;  %v1690_v16 = vadd.f32 %v4751_v47, %v6437_v51 }
 0x1b0   : > { %v1645_v61 = vpop.f32.mrf.mxu1  ;;  %v1865_v60 = vpop.f32.mrf.mxu0 }
 0x1b1   : > { %v6531_v14 = vadd.f32 %v4787_v38, %v1690_v16  ;;  %v1688_v43 = vadd.f32 %v1645_v61, %v6440_v39 }
 0x1b2   : > { %v4752_v15 = vpop.f32.mrf.mxu1  ;;  %v4788_v3 = vpop.f32.mrf.mxu0 }
 0x1b3   : > { %v6534_v56 = vadd.f32 %v1865_v60, %v1688_v43  ;;  %v1691_v13 = vadd.f32 %v4752_v15, %v6442_v31 }
 0x1b4   : > { %v1648_v0 = vpop.f32.mrf.mxu1  ;;  %v1868_v7 = vpop.f32.mrf.mxu0 }
 0x1b5   : > { %v6537_v9 = vadd.f32 %v4788_v3, %v1691_v13  ;;  %v1689_v30 = vadd.f32 %v1648_v0, %v6444_v58 }
 0x1b6   : > { %v6540_v11 = vpop.f32.mrf.mxu1  ;;  %v6542_v51 = vpop.f32.mrf.mxu0 }
 0x1b7   : > { %v6544_v6 = vadd.f32 %v1868_v7, %v1689_v30 }
 0x1b8   : > { %v6546_v20 = vpop.f32.mrf.mxu1  ;;  %v6548_v39 = vpop.f32.mrf.mxu0 }
 0x1ba   : > { %v6550_v25 = vpop.f32.mrf.mxu1  ;;  %v6552_v17 = vpop.f32.mrf.mxu0 }
 0x1bc   : > { %v6554_v31 = vpop.f32.mrf.mxu1  ;;  %v6556_v19 = vpop.f32.mrf.mxu0 }
 0x1be   : > { %v6558_v28 = vpop.f32.mrf.mxu1  ;;  %v6560_v58 = vpop.f32.mrf.mxu0 }
 0x1c0   : > { %v6562_v53 = vpop.f32.mrf.mxu1  ;;  %v6564_v23 = vpop.f32.mrf.mxu0 }
 0x1c2   : > { %v6566_v54 = vpop.f32.mrf.mxu1  ;;  %v6568_v22 = vpop.f32.mrf.mxu0 }
 0x1c4   : > { %v6570_v41 = vpop.f32.mrf.mxu1  ;;  %v6572_v1 = vpop.f32.mrf.mxu0 }
 0x1c5   : > { %7670 = vst [vmem:[#allocation11_spill] sm:$0xff] %v6572_v1 }
 0x1c6   : > { %v6574_v45 = vpop.f32.mrf.mxu1  ;;  %v6576_v32 = vpop.f32.mrf.mxu0 }
 0x1c7   : > { %7671 = vst [vmem:[#allocation12_spill] sm:$0xff] %v6576_v32 }
 0x1c8   : > { %v1998_v52 = vpop.f32.mrf.mxu1  ;;  %v2207_v36 = vpop.f32.mrf.mxu0 }
 0x1c9   : > { %v2101_v47 = vadd.f32 %v1998_v52, %v6474_v57 }
 0x1ca   : > { %v4804_v38 = vpop.f32.mrf.mxu1  ;;  %v4840_v16 = vpop.f32.mrf.mxu0 }
 0x1cb   : > { %v6579_v61 = vadd.f32 %v2207_v36, %v2101_v47  ;;  %v2104_v60 = vadd.f32 %v4804_v38, %v6477_v10 }
 0x1cc   : > { %v2001_v43 = vpop.f32.mrf.mxu1  ;;  %v2210_v15 = vpop.f32.mrf.mxu0 }
 0x1cd   : > { %v6582_v3 = vadd.f32 %v4840_v16, %v2104_v60  ;;  %v2102_v13 = vadd.f32 %v2001_v43, %v6480_v59 }
 0x1ce   : > { %v4807_v0 = vpop.f32.mrf.mxu1  ;;  %v4843_v7 = vpop.f32.mrf.mxu0 }
 0x1cf   : > { %v6585_v30 = vadd.f32 %v2210_v15, %v2102_v13  ;;  %v2107_v32 = vadd.f32 %v4807_v0, %v6483_v21 }
 0x1d0   : > { %v2014_v1 = vpop.f32.mrf.mxu1  ;;  %v2223_v57 = vpop.f32.mrf.mxu0 }
 0x1d1   : > { %v6588_v52 = vadd.f32 %v4843_v7, %v2107_v32  ;;  %v2105_v36 = vadd.f32 %v2014_v1, %v6486_v18 }
 0x1d2   : > { %v4808_v47 = vpop.f32.mrf.mxu1  ;;  %v4844_v10 = vpop.f32.mrf.mxu0 }
 0x1d3   : > { %v6591_v38 = vadd.f32 %v2223_v57, %v2105_v36  ;;  %v2108_v16 = vadd.f32 %v4808_v47, %v6489_v37 }
 0x1d4   : > { %v2017_v60 = vpop.f32.mrf.mxu1  ;;  %v2226_v59 = vpop.f32.mrf.mxu0 }
 0x1d5   : > { %v6594_v43 = vadd.f32 %v4844_v10, %v2108_v16  ;;  %v2106_v15 = vadd.f32 %v2017_v60, %v6492_v12 }
 0x1d6   : > { %v4811_v13 = vpop.f32.mrf.mxu1  ;;  %v4847_v21 = vpop.f32.mrf.mxu0 }
 0x1d7   : > { %v6597_v0 = vadd.f32 %v2226_v59, %v2106_v15  ;;  %v2111_v32 = vadd.f32 %v4811_v13, %v6495_v34 }
 0x1d8   : > { %v2030_v7 = vpop.f32.mrf.mxu1  ;;  %v2239_v18 = vpop.f32.mrf.mxu0 }
 0x1d9   : > { %v6600_v1 = vadd.f32 %v4847_v21, %v2111_v32  ;;  %v2109_v57 = vadd.f32 %v2030_v7, %v6498_v29 }
 0x1da   : > { %v4812_v36 = vpop.f32.mrf.mxu1  ;;  %v4848_v37 = vpop.f32.mrf.mxu0 }
 0x1db   : > { %v6603_v47 = vadd.f32 %v2239_v18, %v2109_v57  ;;  %v2112_v10 = vadd.f32 %v4812_v36, %v6501_v27 }
 0x1dc   : > { %v2033_v16 = vpop.f32.mrf.mxu1  ;;  %v2242_v12 = vpop.f32.mrf.mxu0 }
 0x1dd   : > { %v6606_v60 = vadd.f32 %v4848_v37, %v2112_v10  ;;  %v2110_v59 = vadd.f32 %v2033_v16, %v6504_v63 }
 0x1de   : > { %v4815_v15 = vpop.f32.mrf.mxu1  ;;  %v4851_v34 = vpop.f32.mrf.mxu0 }
 0x1df   : > { %v6609_v13 = vadd.f32 %v2242_v12, %v2110_v59  ;;  %v2115_v21 = vadd.f32 %v4815_v15, %v6507_v33 }
 0x1e0   : > { %v2046_v32 = vpop.f32.mrf.mxu1  ;;  %v2255_v29 = vpop.f32.mrf.mxu0 }
 0x1e1   : > { %v6612_v7 = vadd.f32 %v4851_v34, %v2115_v21  ;;  %v2113_v18 = vadd.f32 %v2046_v32, %v6510_v48 }
 0x1e2   : > { %v4816_v57 = vpop.f32.mrf.mxu1  ;;  %v4852_v27 = vpop.f32.mrf.mxu0 }
 0x1e3   : > { %v6615_v36 = vadd.f32 %v2255_v29, %v2113_v18  ;;  %v2116_v37 = vadd.f32 %v4816_v57, %v6513_v62 }
 0x1e4   : > { %v2049_v10 = vpop.f32.mrf.mxu1  ;;  %v2258_v63 = vpop.f32.mrf.mxu0 }
 0x1e5   : > { %v6618_v16 = vadd.f32 %v4852_v27, %v2116_v37  ;;  %v2114_v12 = vadd.f32 %v2049_v10, %v6516_v50 }
 0x1e6   : > { %v4819_v59 = vpop.f32.mrf.mxu1  ;;  %v4855_v33 = vpop.f32.mrf.mxu0 }
 0x1e7   : > { %v6621_v15 = vadd.f32 %v2258_v63, %v2114_v12  ;;  %v2119_v34 = vadd.f32 %v4819_v59, %v6519_v2 }
 0x1e8   : > { %v2062_v21 = vpop.f32.mrf.mxu1  ;;  %v2271_v48 = vpop.f32.mrf.mxu0 }
 0x1e9   : > { %v6624_v32 = vadd.f32 %v4855_v33, %v2119_v34  ;;  %v2117_v29 = vadd.f32 %v2062_v21, %v6522_v8  ;;  %v2095_v21 = vadd.f32 %v6540_v11, %v6447_v5  ;;  %v2096_v5 = vadd.f32 %v6550_v25, %v6453_v55 }
 0x1ea   : > { %v4820_v18 = vpop.f32.mrf.mxu1  ;;  %v4856_v62 = vpop.f32.mrf.mxu0  ;;  %v2099_v55 = vadd.f32 %v6558_v28, %v6459_v4  ;;  %v2100_v4 = vadd.f32 %v6566_v54, %v6465_v26  ;;  %v2103_v54 = vadd.f32 %v6574_v45, %v6471_v46 }
 0x1eb   : > { %v6627_v57 = vadd.f32 %v2271_v48, %v2117_v29  ;;  %v2120_v27 = vadd.f32 %v4820_v18, %v6525_v24 }
 0x1ec   : > { %v2065_v37 = vpop.f32.mrf.mxu1  ;;  %v2274_v50 = vpop.f32.mrf.mxu0  ;;  %v2309_v26 = vadd.f32 %v6568_v22, %v2100_v4  ;;  %v7673_v22 = vld [vmem:[#allocation12_spill] sm:$0xff] }
 0x1ed   : > { %v6630_v10 = vadd.f32 %v4856_v62, %v2120_v27  ;;  %v2118_v63 = vadd.f32 %v2065_v37, %v6528_v40  ;;  %v2093_v40 = vadd.f32 %v6546_v20, %v6450_v44  ;;  %v2094_v44 = vadd.f32 %v6554_v31, %v6456_v42 }
 0x1ee   : > { %v4823_v12 = vpop.f32.mrf.mxu1  ;;  %v4859_v2 = vpop.f32.mrf.mxu0 }
 0x1ef   : > { %v6633_v59 = vadd.f32 %v2274_v50, %v2118_v63  ;;  %v2123_v33 = vadd.f32 %v4823_v12, %v6531_v14  ;;  %v2304_v50 = vadd.f32 %v6542_v51, %v2095_v21  ;;  %v2305_v51 = vadd.f32 %v6552_v17, %v2096_v5 }
 0x1f0   : > { %v2078_v34 = vpop.f32.mrf.mxu1  ;;  %v2287_v8 = vpop.f32.mrf.mxu0  ;;  %v2303_v42 = vadd.f32 %v6556_v19, %v2094_v44  ;;  %v2098_v19 = vadd.f32 %v6570_v41, %v6468_v49  ;;  %v7672_v49 = vld [vmem:[#allocation11_spill] sm:$0xff] }
 0x1f1   : > { %v6638_v48 = vadd.f32 %v4859_v2, %v2123_v33  ;;  %v2121_v24 = vadd.f32 %v2078_v34, %v6534_v56  ;;  %v2302_v2 = vadd.f32 %v6548_v39, %v2093_v40 }
 0x1f2   : > { %v4824_v29 = vpop.f32.mrf.mxu1  ;;  %v4860_v18 = vpop.f32.mrf.mxu0  ;;  %v2307_v41 = vadd.f32 %v7672_v49, %v2098_v19 }
 0x1f3   : > { %v6643_v62 = vadd.f32 %v2287_v8, %v2121_v24  ;;  %v2124_v27 = vadd.f32 %v4824_v29, %v6537_v9  ;;  %v2097_v8 = vadd.f32 %v6562_v53, %v6462_v35 }
 0x1f4   : > { %v2081_v37 = vpop.f32.mrf.mxu1  ;;  %v2290_v14 = vpop.f32.mrf.mxu0 }
 0x1f5   : > { %v6649_v11 = vadd.f32 %v4860_v18, %v2124_v27  ;;  %v2122_v56 = vadd.f32 %v2081_v37, %v6544_v6  ;;  %v2308_v18 = vadd.f32 %v6560_v58, %v2099_v55  ;;  %v2306_v35 = vadd.f32 %v6564_v23, %v2097_v8 }
 0x1f6   : > { %v4867_v63 = vpop.f32.mrf.mxu1  ;;  %v4903_v12 = vpop.f32.mrf.mxu0 }
 0x1f7   : > { %v6655_v20 = vadd.f32 %v2290_v14, %v2122_v56  ;;  %v2524_v9 = vadd.f32 %v4867_v63, %v2304_v50 }
 0x1f8   : > { %v2395_v33 = vpop.f32.mrf.mxu1  ;;  %v2608_v34 = vpop.f32.mrf.mxu0 }
 0x1f9   : > { %v6660_v25 = vadd.f32 %v4903_v12, %v2524_v9  ;;  %v2522_v6 = vadd.f32 %v2395_v33, %v2302_v2  ;;  %v2312_v33 = vadd.f32 %v7673_v22, %v2103_v54 }
 0x1fa   : > { %v4868_v39 = vpop.f32.mrf.mxu1  ;;  %v4904_v21 = vpop.f32.mrf.mxu0 }
 0x1fb   : > { %5032 = vtanh.f32 %v6660_v25  ;;  %v6666_v31 = vadd.f32 %v2608_v34, %v2522_v6  ;;  %v2525_v24 = vadd.f32 %v4868_v39, %v2305_v51 }
 0x1fc   : > { %v2398_v29 = vpop.f32.mrf.mxu1  ;;  %v2611_v17 = vpop.f32.mrf.mxu0 }
 0x1fd   : > { %v6671_v28 = vadd.f32 %v4904_v21, %v2525_v24  ;;  %v2523_v40 = vadd.f32 %v2398_v29, %v2303_v42  ;;  %5034 = vtanh.f32 %v6666_v31 }
 0x1fe   : > { %v4871_v53 = vpop.f32.mrf.mxu1  ;;  %v4907_v27 = vpop.f32.mrf.mxu0 }
 0x1ff   : > { %v6677_v37 = vadd.f32 %v2611_v17, %v2523_v40  ;;  %v2528_v14 = vadd.f32 %v4871_v53, %v2308_v18  ;;  %5036 = vtanh.f32 %v6671_v28 }
 0x200   : > { %v2411_v58 = vpop.f32.mrf.mxu1  ;;  %v2624_v50 = vpop.f32.mrf.mxu0 }
 0x201   : > { %v6683_v23 = vadd.f32 %v4907_v27, %v2528_v14  ;;  %v2526_v5 = vadd.f32 %v2411_v58, %v2306_v35  ;;  %5038 = vtanh.f32 %v6677_v37 }
 0x202   : > { %v4872_v56 = vpop.f32.mrf.mxu1  ;;  %v4908_v63 = vpop.f32.mrf.mxu0 }
 0x203   : > { %v6687_v12 = vadd.f32 %v2624_v50, %v2526_v5  ;;  %v2529_v2 = vadd.f32 %v4872_v56, %v2309_v26  ;;  %5040 = vtanh.f32 %v6683_v23 }
 0x204   : > { %v2414_v44 = vpop.f32.mrf.mxu1  ;;  %v2627_v9 = vpop.f32.mrf.mxu0 }
 0x205   : > { %v6691_v34 = vadd.f32 %v4908_v63, %v2529_v2  ;;  %v2527_v46 = vadd.f32 %v2414_v44, %v2307_v41  ;;  %5042 = vtanh.f32 %v6687_v12 }
 0x206   : > { %v4875_v45 = vpop.f32.mrf.mxu1  ;;  %v4911_v51 = vpop.f32.mrf.mxu0 }
 0x207   : > { %v6694_v55 = vadd.f32 %v2627_v9, %v2527_v46  ;;  %v2532_v6 = vadd.f32 %v4875_v45, %v2312_v33  ;;  %5044 = vtanh.f32 %v6691_v34 }
 0x208   : > { %v5033_v8 = vpop.eup %5032  ;;  %v2427_v39 = vpop.f32.mrf.mxu1 }
 0x209   : > { %v2640_v21 = vpop.f32.mrf.mxu0  ;;  %v6697_v42 = vadd.f32 %v4911_v51, %v2532_v6  ;;  %3219 = vrot.lane.b32.xlu0 %v5033_v8, %s5383_s6  ;;  %v2530_v24 = vadd.f32 %v2427_v39, %v6579_v61  ;;  %5046 = vtanh.f32 %v6694_v55 }
 0x20a   : > { %v4876_v29 = vpop.f32.mrf.mxu1  ;;  %v5035_v18 = vpop.eup %5034 }
 0x20b   : > { %v4912_v17 = vpop.f32.mrf.mxu0  ;;  %5048 = vtanh.f32 %v6697_v42  ;;  %v2533_v53 = vadd.f32 %v4876_v29, %v6582_v3  ;;  %v6705_v27 = vadd.f32 %v2640_v21, %v2530_v24 }
 0x20c   : > { %v2430_v4 = vpop.f32.mrf.mxu1  ;;  %v5037_v35 = vpop.eup %5036 }
 0x20d   : > { %v2643_v40 = vpop.f32.mrf.mxu0  ;;  %3215 = vrot.lane.b32.xlu0 %v5035_v18, %s5383_s6  ;;  %3221 = vrot.lane.b32.xlu1 %v5037_v35, %s5383_s6  ;;  %5050 = vtanh.f32 %v6705_v27  ;;  %v2531_v54 = vadd.f32 %v2430_v4, %v6585_v30  ;;  %v6710_v5 = vadd.f32 %v4912_v17, %v2533_v53  ;;  %v6730_v17 = vpop.permute.xlu0 %3055 }
 0x20e   : > { %v4879_v19 = vpop.f32.mrf.mxu1  ;;  %v5039_v14 = vpop.eup %5038 }
 0x20f   : > { %v4915_v61 = vpop.f32.mrf.mxu0  ;;  %v2536_v44 = vadd.f32 %v4879_v19, %v6588_v52  ;;  %5052 = vtanh.f32 %v6710_v5  ;;  %v6716_v9 = vadd.f32 %v2643_v40, %v2531_v54  ;;  %v6738_v53 = vpop.permute.xlu1 %3059 }
 0x210   : > { %v2443_v58 = vpop.f32.mrf.mxu1  ;;  %v5041_v26 = vpop.eup %5040 }
 0x211   : > { %v2656_v50 = vpop.f32.mrf.mxu0  ;;  %3217 = vrot.lane.b32.xlu1 %v5039_v14, %s5383_s6  ;;  %3227 = vrot.lane.b32.xlu0 %v5041_v26, %s5383_s6  ;;  %v2534_v6 = vadd.f32 %v2443_v58, %v6591_v38  ;;  %v6721_v8 = vadd.f32 %v4915_v61, %v2536_v44  ;;  %5054 = vtanh.f32 %v6716_v9  ;;  %v6743_v14 = vpop.permute.xlu0 %3057 }
 0x212   : > { %v4880_v3 = vpop.f32.mrf.mxu1  ;;  %v5043_v63 = vpop.eup %5042 }
 0x213   : > { %v4916_v56 = vpop.f32.mrf.mxu0  ;;  %v2537_v39 = vadd.f32 %v4880_v3, %v6594_v43  ;;  %5056 = vtanh.f32 %v6721_v8  ;;  %v6728_v29 = vadd.f32 %v2656_v50, %v2534_v6  ;;  %v6751_v3 = vpop.permute.xlu1 %3061 }
 0x214   : > { %v2446_v49 = vpop.f32.mrf.mxu1  ;;  %v5045_v2 = vpop.eup %5044 }
 0x215   : > { %v2659_v41 = vpop.f32.mrf.mxu0  ;;  %3223 = vrot.lane.b32.xlu0 %v5043_v63, %s5383_s6  ;;  %3229 = vrot.lane.b32.xlu1 %v5045_v2, %s5383_s6  ;;  %v2535_v18 = vadd.f32 %v2446_v49, %v6597_v0  ;;  %v6733_v4 = vadd.f32 %v4916_v56, %v2537_v39  ;;  %5058 = vtanh.f32 %v6728_v29 }
 0x216   : > { %v4883_v30 = vpop.f32.mrf.mxu1  ;;  %v5047_v33 = vpop.eup %5046 }
 0x217   : > { %v4919_v22 = vpop.f32.mrf.mxu0  ;;  %v2540_v43 = vadd.f32 %v4883_v30, %v6600_v1  ;;  %5060 = vtanh.f32 %v6733_v4  ;;  %v6741_v61 = vadd.f32 %v2659_v41, %v2535_v18  ;;  %v6757_v41 = vpop.permute.xlu0 %3063 }
 0x218   : > { %v2459_v46 = vpop.f32.mrf.mxu1  ;;  %v5049_v51 = vpop.eup %5048 }
 0x219   : > { %v2672_v45 = vpop.f32.mrf.mxu0  ;;  %3225 = vrot.lane.b32.xlu1 %v5047_v33, %s5383_s6  ;;  %3235 = vrot.lane.b32.xlu0 %v5049_v51, %s5383_s6  ;;  %v2538_v50 = vadd.f32 %v2459_v46, %v6603_v47  ;;  %v6747_v26 = vadd.f32 %v4919_v22, %v2540_v43  ;;  %5062 = vtanh.f32 %v6741_v61  ;;  %v6765_v33 = vpop.permute.xlu1 %3065 }
 0x21a   : > { %v4884_v52 = vpop.f32.mrf.mxu1  ;;  %v5051_v38 = vpop.eup %5050 }
 0x21b   : > { %v4920_v24 = vpop.f32.mrf.mxu0  ;;  %v2541_v54 = vadd.f32 %v4884_v52, %v6606_v60  ;;  %5064 = vtanh.f32 %v6747_v26  ;;  %v6755_v49 = vadd.f32 %v2672_v45, %v2538_v50  ;;  %v6770_v51 = vpop.permute.xlu0 %3067 }
 0x21c   : > { %v2462_v21 = vpop.f32.mrf.mxu1  ;;  %v5053_v19 = vpop.eup %5052 }
 0x21d   : > { %3231 = vrot.lane.b32.xlu0 %v5051_v38, %s5383_s6  ;;  %v2675_v35 = vpop.f32.mrf.mxu0  ;;  %3237 = vrot.lane.b32.xlu1 %v5053_v19, %s5383_s6  ;;  %v2539_v2 = vadd.f32 %v2462_v21, %v6609_v13  ;;  %v6760_v44 = vadd.f32 %v4920_v24, %v2541_v54  ;;  %5066 = vtanh.f32 %v6755_v49  ;;  %v6779_v24 = vpop.permute.xlu1 %3069 }
 0x21e   : > { %v4887_v40 = vpop.f32.mrf.mxu1  ;;  %v5055_v1 = vpop.eup %5054 }
 0x21f   : > { %v4923_v58 = vpop.f32.mrf.mxu0  ;;  %v2544_v60 = vadd.f32 %v4887_v40, %v6612_v7  ;;  %5068 = vtanh.f32 %v6760_v44  ;;  %v6768_v45 = vadd.f32 %v2675_v35, %v2539_v2 }
 0x220   : > { %v2475_v0 = vpop.f32.mrf.mxu1  ;;  %v5057_v47 = vpop.eup %5056 }
 0x221   : > { %3233 = vrot.lane.b32.xlu1 %v5055_v1, %s5383_s6  ;;  %v2688_v63 = vpop.f32.mrf.mxu0  ;;  %3243 = vrot.lane.b32.xlu0 %v5057_v47, %s5383_s6  ;;  %v2542_v6 = vadd.f32 %v2475_v0, %v6615_v36  ;;  %v6774_v52 = vadd.f32 %v4923_v58, %v2544_v60  ;;  %5070 = vtanh.f32 %v6768_v45  ;;  %v6784_v36 = vpop.permute.xlu0 %3071 }
 0x222   : > { %v4888_v56 = vpop.f32.mrf.mxu1  ;;  %v5059_v46 = vpop.eup %5058 }
 0x223   : > { %v4924_v22 = vpop.f32.mrf.mxu0  ;;  %v2545_v21 = vadd.f32 %v4888_v56, %v6618_v16  ;;  %5072 = vtanh.f32 %v6774_v52  ;;  %v6782_v18 = vadd.f32 %v2688_v63, %v2542_v6  ;;  %v6793_v54 = vpop.permute.xlu1 %3073 }
 0x224   : > { %v2478_v30 = vpop.f32.mrf.mxu1  ;;  %v5061_v13 = vpop.eup %5060 }
 0x225   : > { %3239 = vrot.lane.b32.xlu0 %v5059_v46, %s5383_s6  ;;  %v2691_v39 = vpop.f32.mrf.mxu0  ;;  %3245 = vrot.lane.b32.xlu1 %v5061_v13, %s5383_s6  ;;  %v2543_v19 = vadd.f32 %v2478_v30, %v6621_v15  ;;  %v6788_v0 = vadd.f32 %v4924_v22, %v2545_v21  ;;  %5074 = vtanh.f32 %v6782_v18  ;;  %v6798_v47 = vpop.permute.xlu0 %3075 }
 0x226   : > { %v4891_v7 = vpop.f32.mrf.mxu1  ;;  %v5063_v38 = vpop.eup %5062 }
 0x227   : > { %v4927_v35 = vpop.f32.mrf.mxu0  ;;  %v2548_v50 = vadd.f32 %v4891_v7, %v6624_v32  ;;  %5076 = vtanh.f32 %v6788_v0  ;;  %v6796_v63 = vadd.f32 %v2691_v39, %v2543_v19  ;;  %v6807_v46 = vpop.permute.xlu1 %3077 }
 0x228   : > { %v2491_v40 = vpop.f32.mrf.mxu1  ;;  %v5065_v43 = vpop.eup %5064 }
 0x229   : > { %3241 = vrot.lane.b32.xlu1 %v5063_v38, %s5383_s6  ;;  %3251 = vrot.lane.b32.xlu0 %v5065_v43, %s5383_s6  ;;  %v2704_v58 = vpop.f32.mrf.mxu0  ;;  %v2546_v60 = vadd.f32 %v2491_v40, %v6627_v57  ;;  %v6803_v30 = vadd.f32 %v4927_v35, %v2548_v50  ;;  %5078 = vtanh.f32 %v6796_v63  ;;  %v6813_v21 = vpop.permute.xlu0 %3079 }
 0x22a   : > { %v4892_v16 = vpop.f32.mrf.mxu1  ;;  %v5067_v1 = vpop.eup %5066 }
 0x22b   : > { %v4928_v2 = vpop.f32.mrf.mxu0  ;;  %v2549_v22 = vadd.f32 %v4892_v16, %v6630_v10  ;;  %5080 = vtanh.f32 %v6803_v30  ;;  %v6811_v39 = vadd.f32 %v2704_v58, %v2546_v60  ;;  %v6821_v19 = vpop.permute.xlu1 %3081 }
 0x22c   : > { %v5069_v56 = vpop.eup %5068  ;;  %v2494_v15 = vpop.f32.mrf.mxu1 }
 0x22d   : > { %3247 = vrot.lane.b32.xlu0 %v5067_v1, %s5383_s6  ;;  %3253 = vrot.lane.b32.xlu1 %v5069_v56, %s5383_s6  ;;  %v2707_v6 = vpop.f32.mrf.mxu0  ;;  %v2547_v57 = vadd.f32 %v2494_v15, %v6633_v59  ;;  %v6817_v38 = vadd.f32 %v4928_v2, %v2549_v22  ;;  %5082 = vtanh.f32 %v6811_v39  ;;  %v6827_v58 = vpop.permute.xlu0 %3083 }
 0x22e   : > { %v5071_v32 = vpop.eup %5070  ;;  %v4895_v13 = vpop.f32.mrf.mxu1 }
 0x22f   : > { %v4931_v40 = vpop.f32.mrf.mxu0  ;;  %v2552_v43 = vadd.f32 %v4895_v13, %v6638_v48  ;;  %5084 = vtanh.f32 %v6817_v38  ;;  %v6825_v16 = vadd.f32 %v2707_v6, %v2547_v57  ;;  %v6835_v2 = vpop.permute.xlu1 %3085 }
 0x230   : > { %v5073_v7 = vpop.eup %5072  ;;  %v2507_v10 = vpop.f32.mrf.mxu1 }
 0x231   : > { %3249 = vrot.lane.b32.xlu1 %v5071_v32, %s5383_s6  ;;  %3259 = vrot.lane.b32.xlu0 %v5073_v7, %s5383_s6  ;;  %v2720_v1 = vpop.f32.mrf.mxu0  ;;  %v2550_v56 = vadd.f32 %v2507_v10, %v6643_v62  ;;  %v6830_v15 = vadd.f32 %v4931_v40, %v2552_v43  ;;  %5086 = vtanh.f32 %v6825_v16  ;;  %v6840_v6 = vpop.permute.xlu0 %3087 }
 0x232   : > { %v5075_v35 = vpop.eup %5074  ;;  %v4896_v50 = vpop.f32.mrf.mxu1 }
 0x233   : > { %v2553_v48 = vadd.f32 %v4896_v50, %v6649_v11  ;;  %v4932_v22 = vpop.f32.mrf.mxu0  ;;  %5088 = vtanh.f32 %v6830_v15  ;;  %v6838_v13 = vadd.f32 %v2720_v1, %v2550_v56  ;;  %v6848_v40 = vpop.permute.xlu1 %3089 }
 0x234   : > { %v5077_v59 = vpop.eup %5076  ;;  %v2510_v32 = vpop.f32.mrf.mxu1 }
 0x235   : > { %3255 = vrot.lane.b32.xlu0 %v5075_v35, %s5383_s6  ;;  %3261 = vrot.lane.b32.xlu1 %v5077_v59, %s5383_s6  ;;  %v2551_v7 = vadd.f32 %v2510_v32, %v6655_v20  ;;  %v6844_v57 = vadd.f32 %v4932_v22, %v2553_v48  ;;  %v2723_v11 = vpop.f32.mrf.mxu0  ;;  %5090 = vtanh.f32 %v6838_v13  ;;  %v6853_v43 = vpop.permute.xlu0 %3091  ;;  %v4410_v20 = vmul.f32 -1.442695, %v6660_v25 }
 0x236   : > { %v5079_v60 = vpop.eup %5078  ;;  %v4411_v32 = vmul.f32 -1.442695, %v6671_v28  ;;  %v4409_v25 = vmul.f32 -1.442695, %v6677_v37  ;;  %v4415_v28 = vmul.f32 -1.442695, %v6691_v34 }
 0x237   : > { %5092 = vtanh.f32 %v6844_v57  ;;  %v6851_v35 = vadd.f32 %v2723_v11, %v2551_v7  ;;  %v6859_v1 = vpop.permute.xlu1 %3093  ;;  %v4414_v7 = vmul.f32 -1.442695, %v6683_v23  ;;  %v4413_v23 = vmul.f32 -1.442695, %v6694_v55 }
 0x238   : > { %v5081_v62 = vpop.eup %5080 }
 0x239   : > { %3257 = vrot.lane.b32.xlu1 %v5079_v60, %s5383_s6  ;;  %3267 = vrot.lane.b32.xlu0 %v5081_v62, %s5383_s6  ;;  %5094 = vtanh.f32 %v6851_v35  ;;  %v6861_v56 = vpop.permute.xlu0 %3095  ;;  %v4408_v60 = vmul.f32 -1.442695, %v6666_v31  ;;  %v4412_v31 = vmul.f32 -1.442695, %v6687_v12 }
 0x23a   : > { %v5083_v10 = vpop.eup %5082  ;;  %5096 = vpow2.f32 %v4410_v20 }
 0x23b   : > { %5098 = vpow2.f32 %v4408_v60  ;;  %v6868_v62 = vpop.permute.xlu1 %3097 }
 0x23c   : > { %v5085_v59 = vpop.eup %5084  ;;  %5100 = vpow2.f32 %v4411_v32 }
 0x23d   : > { %3263 = vrot.lane.b32.xlu0 %v5083_v10, %s5383_s6  ;;  %3269 = vrot.lane.b32.xlu1 %v5085_v59, %s5383_s6  ;;  %v6871_v11 = vpop.permute.xlu0 %3099  ;;  %5102 = vpow2.f32 %v4409_v25  ;;  %v4416_v25 = vmul.f32 -1.442695, %v6705_v27  ;;  %v4417_v27 = vmul.f32 -1.442695, %v6716_v9 }
 0x23e   : > { %v5087_v50 = vpop.eup %5086  ;;  %5104 = vpow2.f32 %v4414_v7 }
 0x23f   : > { %v6877_v37 = vpop.permute.xlu1 %3101  ;;  %5106 = vpow2.f32 %v4412_v31 }
 0x240   : > { %v5089_v48 = vpop.eup %5088  ;;  %5108 = vpow2.f32 %v4415_v28 }
 0x241   : > { %3265 = vrot.lane.b32.xlu1 %v5087_v50, %s5383_s6  ;;  %3275 = vrot.lane.b32.xlu0 %v5089_v48, %s5383_s6  ;;  %v6879_v20 = vpop.permute.xlu0 %3103  ;;  %v4418_v48 = vmul.f32 -1.442695, %v6697_v42  ;;  %5110 = vpow2.f32 %v4413_v23  ;;  %v4419_v42 = vmul.f32 -1.442695, %v6710_v5 }
 0x242   : > { %v5091_v22 = vpop.eup %5090 }
 0x243   : > { %v6884_v12 = vpop.permute.xlu1 %3105  ;;  %5112 = vpow2.f32 %v4418_v48 }
 0x244   : > { %v5093_v10 = vpop.eup %5092  ;;  %7674 = vst [vmem:[#allocation8_spill] sm:$0xff] %v6884_v12 }
 0x245   : > { %3271 = vrot.lane.b32.xlu0 %v5091_v22, %s5383_s6  ;;  %3277 = vrot.lane.b32.xlu1 %v5093_v10, %s5383_s6  ;;  %v6886_v34 = vpop.permute.xlu0 %3107 }
 0x246   : > { %v5095_v59 = vpop.eup %5094 }
 0x247   : > { %v5097_v50 = vpop.eup %5096  ;;  %v6889_v28 = vpop.permute.xlu1 %3109 }
 0x248   : > { %v2865_v60 = vadd.f32 1.0, %v5097_v50  ;;  %v5099_v32 = vpop.eup %5098  ;;  %7675 = vst [vmem:[#allocation9_spill] sm:$0xff] %v6889_v28 }
 0x249   : > { %3273 = vrot.lane.b32.xlu1 %v5095_v59, %s5383_s6  ;;  %v5101_v22 = vpop.eup %5100  ;;  %v2863_v7 = vadd.f32 1.0, %v5099_v32  ;;  %v6892_v59 = vpop.permute.xlu0 %3111 }
 0x24a   : > { %5114 = vrcp.f32 %v2865_v60  ;;  %v5103_v10 = vpop.eup %5102  ;;  %v2866_v31 = vadd.f32 1.0, %v5101_v22  ;;  %7676 = vst [vmem:[#allocation13_spill] sm:$0xff] %v6892_v59 }
 0x24b   : > { %v5105_v55 = vpop.eup %5104  ;;  %5116 = vpow2.f32 %v4416_v25  ;;  %v2864_v23 = vadd.f32 1.0, %v5103_v10  ;;  %v6895_v32 = vpop.permute.xlu1 %3113 }
 0x24c   : > { %5118 = vrcp.f32 %v2863_v7  ;;  %v5107_v50 = vpop.eup %5106  ;;  %v2869_v48 = vadd.f32 1.0, %v5105_v55  ;;  %7677 = vst [vmem:[#allocation10_spill] sm:$0xff] %v6895_v32  ;;  %v4422_v7 = vmul.f32 -1.442695, %v6721_v8 }
 0x24d   : > { %5120 = vrcp.f32 %v2866_v31  ;;  %v5109_v12 = vpop.eup %5108  ;;  %v2867_v60 = vadd.f32 1.0, %v5107_v50  ;;  %v6897_v28 = vpop.permute.xlu0 %3115 }
 0x24e   : > { %5122 = vpow2.f32 %v4419_v42  ;;  %v5111_v22 = vpop.eup %5110  ;;  %v2870_v25 = vadd.f32 1.0, %v5109_v12  ;;  %7678 = vst [vmem:[#allocation15_spill] sm:$0xff] %v6897_v28  ;;  %v4420_v42 = vmul.f32 -1.442695, %v6728_v29 }
 0x24f   : > { %5124 = vrcp.f32 %v2864_v23  ;;  %v2868_v10 = vadd.f32 1.0, %v5111_v22  ;;  %v6903_v23 = vpop.permute.xlu1 %3117 }
 0x250   : > { %5126 = vrcp.f32 %v2869_v48  ;;  %v5113_v5 = vpop.eup %5112  ;;  %7679 = vst [vmem:[#allocation14_spill] sm:$0xff] %v6903_v23  ;;  %v4423_v48 = vmul.f32 -1.442695, %v6733_v4 }
 0x251   : > { %5128 = vpow2.f32 %v4417_v27  ;;  %v2873_v9 = vadd.f32 1.0, %v5113_v5  ;;  %v4421_v5 = vmul.f32 -1.442695, %v6741_v61 }
 0x252   : > { %5130 = vrcp.f32 %v2867_v60 }
 0x253   : > { %5132 = vrcp.f32 %v2870_v25 }
 0x254   : > { %5134 = vpow2.f32 %v4422_v7 }
 0x255   : > { %5136 = vrcp.f32 %v2868_v10 }
 0x256   : > { %5138 = vrcp.f32 %v2873_v9 }
 0x257   : > { %v6900_v31 = vpop.eup %5114  ;;  %5140 = vpow2.f32 %v4420_v42 }
 0x258   : > { %v5117_v50 = vpop.eup %5116  ;;  %5142 = vpow2.f32 %v4423_v48 }
 0x259   : > { %v6908_v8 = vpop.eup %5118  ;;  %v2871_v22 = vadd.f32 1.0, %v5117_v50 }
 0x25a   : > { %v6910_v60 = vpop.eup %5120 }
 0x25b   : > { %v5123_v10 = vpop.eup %5122  ;;  %5144 = vrcp.f32 %v2871_v22 }
 0x25c   : > { %v6916_v4 = vpop.eup %5124  ;;  %5146 = vpow2.f32 %v4421_v5  ;;  %v4427_v5 = vmul.f32 -1.442695, %v6760_v44  ;;  %v4425_v44 = vmul.f32 -1.442695, %v6768_v45  ;;  %v4428_v45 = vmul.f32 -1.442695, %v6782_v18 }
 0x25d   : > { %v6919_v9 = vpop.eup %5126  ;;  %v4429_v18 = vmul.f32 -1.442695, %v6796_v63 }
 0x25e   : > { %v5129_v50 = vpop.eup %5128 }
 0x27b   : > { %v3220_v55 = vpop.permute.xlu0 %3219 }
 0x27c   : > { %v3313_v12 = vmul.f32 %v6900_v31, %v3220_v55  ;;  %v4426_v55 = vmul.f32 -1.442695, %v6747_v26  ;;  %v2872_v26 = vadd.f32 1.0, %v5129_v50 }
 0x27e   : > { %3379 = vrot.lane.b32.xlu0 %v3313_v12, %s5383_s6  ;;  %5148 = vpow2.f32 %v4426_v55 }
 0x27f   : > { %v3216_v27 = vpop.permute.xlu0 %3215  ;;  %v3222_v25 = vpop.permute.xlu1 %3221 }
 0x280   : > { %v3311_v29 = vmul.f32 %v6908_v8, %v3216_v27  ;;  %v3314_v7 = vmul.f32 %v6910_v60, %v3222_v25  ;;  %v2874_v27 = vadd.f32 1.0, %v5123_v10  ;;  %v6924_v25 = vpop.eup %5130 }
 0x281   : > { %v6929_v22 = vpop.eup %5132 }
 0x282   : > { %3375 = vrot.lane.b32.xlu0 %v3311_v29, %s5383_s6  ;;  %3381 = vrot.lane.b32.xlu1 %v3314_v7, %s5383_s6  ;;  %v4424_v29 = vmul.f32 -1.442695, %v6755_v49  ;;  %v5135_v10 = vpop.eup %5134  ;;  %5150 = vrcp.f32 %v2874_v27 }
 0x283   : > { %v3218_v42 = vpop.permute.xlu1 %3217  ;;  %v3228_v12 = vpop.permute.xlu0 %3227  ;;  %v2877_v55 = vadd.f32 1.0, %v5135_v10 }
 0x284   : > { %v3312_v61 = vmul.f32 %v6916_v4, %v3218_v42  ;;  %v3317_v48 = vmul.f32 %v6919_v9, %v3228_v12  ;;  %v6934_v23 = vpop.eup %5136  ;;  %5152 = vpow2.f32 %v4424_v29  ;;  %v4430_v29 = vmul.f32 -1.442695, %v6774_v52 }
 0x285   : > { %v6938_v49 = vpop.eup %5138  ;;  %5154 = vrcp.f32 %v2872_v26 }
 0x286   : > { %3387 = vrot.lane.b32.xlu0 %v3317_v48, %s5383_s6  ;;  %3377 = vrot.lane.b32.xlu1 %v3312_v61, %s5383_s6  ;;  %v5141_v27 = vpop.eup %5140  ;;  %5156 = vpow2.f32 %v4427_v5 }
 0x287   : > { %v3224_v7 = vpop.permute.xlu0 %3223  ;;  %v3230_v32 = vpop.permute.xlu1 %3229  ;;  %5158 = vrcp.f32 %v2877_v55  ;;  %v2875_v26 = vadd.f32 1.0, %v5141_v27  ;;  %v4431_v55 = vmul.f32 -1.442695, %v6788_v0  ;;  %v4434_v0 = vmul.f32 -1.442695, %v6803_v30 }
 0x288   : > { %v3315_v42 = vmul.f32 %v6924_v25, %v3224_v7  ;;  %v3318_v12 = vmul.f32 %v6929_v22, %v3230_v32  ;;  %v5143_v7 = vpop.eup %5142  ;;  %5160 = vpow2.f32 %v4425_v44 }
 0x289   : > { %v6946_v10 = vpop.eup %5144  ;;  %v2878_v5 = vadd.f32 1.0, %v5143_v7  ;;  %5162 = vpow2.f32 %v4430_v29 }
 0x28a   : > { %3383 = vrot.lane.b32.xlu0 %v3315_v42, %s5383_s6  ;;  %3389 = vrot.lane.b32.xlu1 %v3318_v12, %s5383_s6  ;;  %v5147_v42 = vpop.eup %5146  ;;  %5164 = vrcp.f32 %v2875_v26 }
 0x28b   : > { %v3226_v50 = vpop.permute.xlu1 %3225  ;;  %v3236_v61 = vpop.permute.xlu0 %3235  ;;  %v2876_v52 = vadd.f32 1.0, %v5147_v42  ;;  %5166 = vrcp.f32 %v2878_v5 }
 0x28c   : > { %v3316_v48 = vmul.f32 %v6934_v23, %v3226_v50  ;;  %v3321_v32 = vmul.f32 %v6938_v49, %v3236_v61  ;;  %v5149_v61 = vpop.eup %5148  ;;  %5168 = vpow2.f32 %v4428_v45 }
 0x28d   : > { %v2881_v7 = vadd.f32 1.0, %v5149_v61  ;;  %5170 = vrcp.f32 %v2876_v52 }
 0x28e   : > { %3395 = vrot.lane.b32.xlu0 %v3321_v32, %s5383_s6  ;;  %3385 = vrot.lane.b32.xlu1 %v3316_v48, %s5383_s6  ;;  %5172 = vpow2.f32 %v4431_v55  ;;  %v4432_v55 = vmul.f32 -1.442695, %v6811_v39 }
 0x28f   : > { %v3232_v12 = vpop.permute.xlu0 %3231  ;;  %v6951_v32 = vpop.eup %5150  ;;  %5174 = vrcp.f32 %v2881_v7  ;;  %v4435_v7 = vmul.f32 -1.442695, %v6817_v38 }
 0x290   : > { %v3319_v50 = vmul.f32 %v6946_v10, %v3232_v12  ;;  %v3238_v27 = vpop.permute.xlu1 %3237  ;;  %5176 = vpow2.f32 %v4429_v18 }
 0x291   : > { %v3322_v44 = vmul.f32 %v6951_v32, %v3238_v27  ;;  %v5153_v48 = vpop.eup %5152 }
 0x292   : > { %3391 = vrot.lane.b32.xlu0 %v3319_v50, %s5383_s6  ;;  %v6955_v29 = vpop.eup %5154  ;;  %v2879_v12 = vadd.f32 1.0, %v5153_v48 }
 0x293   : > { %3397 = vrot.lane.b32.xlu1 %v3322_v44, %s5383_s6  ;;  %v5157_v26 = vpop.eup %5156  ;;  %v3244_v61 = vpop.permute.xlu0 %3243 }
 0x294   : > { %v3234_v42 = vpop.permute.xlu1 %3233  ;;  %v6961_v45 = vpop.eup %5158  ;;  %v2882_v50 = vadd.f32 1.0, %v5157_v26  ;;  %5178 = vrcp.f32 %v2879_v12 }
 0x295   : > { %v3320_v5 = vmul.f32 %v6955_v29, %v3234_v42  ;;  %v5161_v52 = vpop.eup %5160  ;;  %v3325_v63 = vmul.f32 %v6961_v45, %v3244_v61  ;;  %5180 = vpow2.f32 %v4434_v0 }
 0x296   : > { %v5163_v27 = vpop.eup %5162  ;;  %5182 = vrcp.f32 %v2882_v50  ;;  %v2880_v30 = vadd.f32 1.0, %v5161_v52  ;;  %v4433_v50 = vmul.f32 -1.442695, %v6825_v16 }
 0x297   : > { %3393 = vrot.lane.b32.xlu1 %v3320_v5, %s5383_s6  ;;  %3403 = vrot.lane.b32.xlu0 %v3325_v63, %s5383_s6  ;;  %v6967_v44 = vpop.eup %5164  ;;  %v3240_v48 = vpop.permute.xlu0 %3239  ;;  %v2885_v42 = vadd.f32 1.0, %v5163_v27  ;;  %5184 = vpow2.f32 %v4432_v55  ;;  %v4438_v63 = vmul.f32 -1.442695, %v6830_v15 }
 0x298   : > { %v3323_v18 = vmul.f32 %v6967_v44, %v3240_v48  ;;  %v6971_v26 = vpop.eup %5166  ;;  %v3246_v5 = vpop.permute.xlu1 %3245  ;;  %5186 = vrcp.f32 %v2880_v30 }
 0x299   : > { %v5169_v12 = vpop.eup %5168  ;;  %v3326_v0 = vmul.f32 %v6971_v26, %v3246_v5  ;;  %5188 = vpow2.f32 %v4435_v7 }
 0x29a   : > { %v6975_v39 = vpop.eup %5170  ;;  %5190 = vrcp.f32 %v2885_v42  ;;  %v2883_v61 = vadd.f32 1.0, %v5169_v12  ;;  %v4436_v42 = vmul.f32 -1.442695, %v6838_v13 }
 0x29b   : > { %3399 = vrot.lane.b32.xlu0 %v3323_v18, %s5383_s6  ;;  %3405 = vrot.lane.b32.xlu1 %v3326_v0, %s5383_s6  ;;  %v5173_v38 = vpop.eup %5172  ;;  %v3252_v48 = vpop.permute.xlu0 %3251  ;;  %5192 = vpow2.f32 %v4433_v50  ;;  %v4439_v50 = vmul.f32 -1.442695, %v6844_v57 }
 0x29c   : > { %v3242_v52 = vpop.permute.xlu1 %3241  ;;  %v6981_v55 = vpop.eup %5174  ;;  %v2886_v30 = vadd.f32 1.0, %v5173_v38  ;;  %5194 = vrcp.f32 %v2883_v61 }
 0x29d   : > { %v3324_v27 = vmul.f32 %v6975_v39, %v3242_v52  ;;  %v5177_v18 = vpop.eup %5176  ;;  %v3329_v7 = vmul.f32 %v6981_v55, %v3252_v48  ;;  %5196 = vpow2.f32 %v4438_v63  ;;  %v4437_v48 = vmul.f32 -1.442695, %v6851_v35 }
 0x29e   : > { %v2884_v5 = vadd.f32 1.0, %v5177_v18  ;;  %5198 = vrcp.f32 %v2886_v30 }
 0x29f   : > { %3401 = vrot.lane.b32.xlu1 %v3324_v27, %s5383_s6  ;;  %3411 = vrot.lane.b32.xlu0 %v3329_v7, %s5383_s6  ;;  %v3248_v12 = vpop.permute.xlu0 %3247  ;;  %5200 = vpow2.f32 %v4436_v42 }
 0x2a0   : > { %v3254_v52 = vpop.permute.xlu1 %3253  ;;  %5202 = vrcp.f32 %v2884_v5 }
 0x2a1   : > { %v6985_v16 = vpop.eup %5178  ;;  %5204 = vpow2.f32 %v4439_v50 }
 0x2a2   : > { %v5181_v15 = vpop.eup %5180  ;;  %v3327_v38 = vmul.f32 %v6985_v16, %v3248_v12 }
 0x2a3   : > { %v6989_v0 = vpop.eup %5182  ;;  %v2889_v27 = vadd.f32 1.0, %v5181_v15  ;;  %v3260_v42 = vpop.permute.xlu0 %3259 }
 0x2a4   : > { %v3330_v61 = vmul.f32 %v6989_v0, %v3254_v52  ;;  %3407 = vrot.lane.b32.xlu0 %v3327_v38, %s5383_s6  ;;  %v5185_v13 = vpop.eup %5184  ;;  %v3250_v18 = vpop.permute.xlu1 %3249 }
 0x2a5   : > { %v6996_v63 = vpop.eup %5186  ;;  %5206 = vrcp.f32 %v2889_v27  ;;  %v2887_v15 = vadd.f32 1.0, %v5185_v13 }
 0x2a6   : > { %3413 = vrot.lane.b32.xlu1 %v3330_v61, %s5383_s6  ;;  %v5189_v57 = vpop.eup %5188  ;;  %v3328_v30 = vmul.f32 %v6996_v63, %v3250_v18  ;;  %5208 = vpow2.f32 %v4437_v48 }
 0x2a7   : > { %v7000_v7 = vpop.eup %5190  ;;  %v2890_v5 = vadd.f32 1.0, %v5189_v57  ;;  %5210 = vrcp.f32 %v2887_v15  ;;  %v3256_v35 = vpop.permute.xlu0 %3255 }
 0x2a8   : > { %v3333_v12 = vmul.f32 %v7000_v7, %v3260_v42  ;;  %v5193_v38 = vpop.eup %5192  ;;  %v3262_v18 = vpop.permute.xlu1 %3261 }
 0x2a9   : > { %v7005_v50 = vpop.eup %5194  ;;  %5212 = vrcp.f32 %v2890_v5  ;;  %v2888_v27 = vadd.f32 1.0, %v5193_v38 }
 0x2aa   : > { %3409 = vrot.lane.b32.xlu1 %v3328_v30, %s5383_s6  ;;  %3419 = vrot.lane.b32.xlu0 %v3333_v12, %s5383_s6  ;;  %v5197_v52 = vpop.eup %5196  ;;  %v3331_v61 = vmul.f32 %v7005_v50, %v3256_v35 }
 0x2ab   : > { %v7008_v13 = vpop.eup %5198  ;;  %v2893_v30 = vadd.f32 1.0, %v5197_v52  ;;  %5214 = vrcp.f32 %v2888_v27  ;;  %v3268_v59 = vpop.permute.xlu0 %3267 }
 0x2ac   : > { %v3334_v48 = vmul.f32 %v7008_v13, %v3262_v18  ;;  %v5201_v57 = vpop.eup %5200  ;;  %v3258_v12 = vpop.permute.xlu1 %3257 }
 0x2ad   : > { %v7012_v42 = vpop.eup %5202  ;;  %5216 = vrcp.f32 %v2893_v30  ;;  %v2891_v35 = vadd.f32 1.0, %v5201_v57 }
 0x2ae   : > { %3415 = vrot.lane.b32.xlu0 %v3331_v61, %s5383_s6  ;;  %3421 = vrot.lane.b32.xlu1 %v3334_v48, %s5383_s6  ;;  %v5205_v15 = vpop.eup %5204  ;;  %v3332_v5 = vmul.f32 %v7012_v42, %v3258_v12 }
 0x2af   : > { %v2894_v28 = vadd.f32 1.0, %v5205_v15  ;;  %5218 = vrcp.f32 %v2891_v35  ;;  %v3264_v18 = vpop.permute.xlu0 %3263 }
 0x2b0   : > { %v3270_v12 = vpop.permute.xlu1 %3269 }
 0x2b1   : > { %5220 = vrcp.f32 %v2894_v28 }
 0x2b2   : > { %v7016_v38 = vpop.eup %5206  ;;  %3417 = vrot.lane.b32.xlu1 %v3332_v5, %s5383_s6 }
 0x2b3   : > { %v3337_v52 = vmul.f32 %v7016_v38, %v3268_v59  ;;  %v5209_v61 = vpop.eup %5208  ;;  %v3276_v28 = vpop.permute.xlu0 %3275 }
 0x2b4   : > { %v7021_v27 = vpop.eup %5210  ;;  %v2892_v30 = vadd.f32 1.0, %v5209_v61  ;;  %v3266_v35 = vpop.permute.xlu1 %3265 }
 0x2b5   : > { %3427 = vrot.lane.b32.xlu0 %v3337_v52, %s5383_s6  ;;  %v3335_v48 = vmul.f32 %v7021_v27, %v3264_v18 }
 0x2b6   : > { %v7024_v57 = vpop.eup %5212  ;;  %5222 = vrcp.f32 %v2892_v30 }
 0x2b7   : > { %7680 = vst [vmem:[#allocation16_spill] sm:$0xff] %v7024_v57  ;;  %v3338_v15 = vmul.f32 %v7024_v57, %v3270_v12 }
 0x2b8   : > { %v7029_v59 = vpop.eup %5214 }
 0x2b9   : > { %3423 = vrot.lane.b32.xlu0 %v3335_v48, %s5383_s6  ;;  %3429 = vrot.lane.b32.xlu1 %v3338_v15, %s5383_s6  ;;  %v3336_v5 = vmul.f32 %v7029_v59, %v3266_v35  ;;  %v3272_v48 = vpop.permute.xlu0 %3271  ;;  %v3278_v15 = vpop.permute.xlu1 %3277 }
 0x2ba   : > { %v7032_v52 = vpop.eup %5216 }
 0x2bb   : > { %7681 = vst [vmem:[#allocation17_spill] sm:$0xff] %v7032_v52  ;;  %v3341_v61 = vmul.f32 %v7032_v52, %v3276_v28  ;;  %v3151_v52 = vmul.f32 %v6908_v8, %v6730_v17 }
 0x2bc   : > { %v7037_v18 = vpop.eup %5218 }
 0x2bd   : > { %3425 = vrot.lane.b32.xlu1 %v3336_v5, %s5383_s6  ;;  %3435 = vrot.lane.b32.xlu0 %v3341_v61, %s5383_s6  ;;  %7682 = vst [vmem:[#allocation18_spill] sm:$0xff] %v7037_v18  ;;  %v3339_v30 = vmul.f32 %v7037_v18, %v3272_v48  ;;  %v3274_v28 = vpop.permute.xlu1 %3273  ;;  %v3153_v61 = vmul.f32 %v6900_v31, %v6738_v53 }
 0x2be   : > { %v7040_v12 = vpop.eup %5220  ;;  %v3152_v53 = vmul.f32 %v6916_v4, %v6743_v14 }
 0x2bf   : > { %7683 = vst [vmem:[#allocation19_spill] sm:$0xff] %v7040_v12  ;;  %v3342_v57 = vmul.f32 %v7040_v12, %v3278_v15 }
 0x2c1   : > { %3431 = vrot.lane.b32.xlu0 %v3339_v30, %s5383_s6  ;;  %3437 = vrot.lane.b32.xlu1 %v3342_v57, %s5383_s6  ;;  %v3154_v57 = vmul.f32 %v6910_v60, %v6751_v3 }
 0x2c3   : > { %v7045_v35 = vpop.eup %5222 }
 0x2c4   : > { %v3340_v5 = vmul.f32 %v7045_v35, %v3274_v28 }
 0x2c6   : > { %3433 = vrot.lane.b32.xlu1 %v3340_v5, %s5383_s6  ;;  %v3157_v5 = vmul.f32 %v6919_v9, %v6770_v51 }
 0x2f0   : > { %v3380_v48 = vpop.permute.xlu0 %3379 }
 0x2f1   : > { %v3473_v18 = vadd.f32 %v3380_v48, %v3153_v61 }
 0x2f3   : > { %3731 = vrot.lane.b32.xlu0 %v3473_v18, %s5384_s20  ;;  %5224 = vtanh.f32 %v3473_v18  ;;  %v3158_v18 = vmul.f32 %v6929_v22, %v6779_v24 }
 0x2f4   : > { %v3376_v30 = vpop.permute.xlu0 %3375  ;;  %v3382_v12 = vpop.permute.xlu1 %3381 }
 0x2f5   : > { %v3471_v15 = vadd.f32 %v3376_v30, %v3151_v52  ;;  %v3474_v28 = vadd.f32 %v3382_v12, %v3154_v57  ;;  %v3155_v52 = vmul.f32 %v6924_v25, %v6757_v41  ;;  %v3156_v30 = vmul.f32 %v6934_v23, %v6765_v33 }
 0x2f7   : > { %3727 = vrot.lane.b32.xlu0 %v3471_v15, %s5384_s20  ;;  %3733 = vrot.lane.b32.xlu1 %v3474_v28, %s5384_s20  ;;  %5226 = vtanh.f32 %v3471_v15 }
 0x2f8   : > { %v3388_v17 = vpop.permute.xlu0 %3387  ;;  %v3378_v61 = vpop.permute.xlu1 %3377  ;;  %5228 = vtanh.f32 %v3474_v28 }
 0x2f9   : > { %v3477_v3 = vadd.f32 %v3388_v17, %v3157_v5  ;;  %v3472_v48 = vadd.f32 %v3378_v61, %v3152_v53  ;;  %v3161_v17 = vmul.f32 %v6938_v49, %v6798_v47 }
 0x2fb   : > { %3739 = vrot.lane.b32.xlu0 %v3477_v3, %s5384_s20  ;;  %3729 = vrot.lane.b32.xlu1 %v3472_v48, %s5384_s20  ;;  %5230 = vtanh.f32 %v3472_v48 }
 0x2fc   : > { %v3384_v14 = vpop.permute.xlu0 %3383  ;;  %v3390_v51 = vpop.permute.xlu1 %3389  ;;  %5232 = vtanh.f32 %v3477_v3  ;;  %v3162_v3 = vmul.f32 %v6951_v32, %v6807_v46 }
 0x2fd   : > { %v3475_v12 = vadd.f32 %v3384_v14, %v3155_v52  ;;  %v3478_v57 = vadd.f32 %v3390_v51, %v3158_v18  ;;  %v3159_v18 = vmul.f32 %v6946_v10, %v6784_v36 }
 0x2ff   : > { %3735 = vrot.lane.b32.xlu0 %v3475_v12, %s5384_s20  ;;  %3741 = vrot.lane.b32.xlu1 %v3478_v57, %s5384_s20  ;;  %5234 = vtanh.f32 %v3475_v12  ;;  %v3160_v12 = vmul.f32 %v6955_v29, %v6793_v54 }
 0x300   : > { %v3386_v41 = vpop.permute.xlu1 %3385  ;;  %v5225_v28 = vpop.eup %5224  ;;  %5236 = vtanh.f32 %v3478_v57 }
 0x301   : > { %v3476_v15 = vadd.f32 %v3386_v41, %v3156_v30  ;;  %v3396_v24 = vpop.permute.xlu0 %3395 }
 0x302   : > { %v3481_v33 = vadd.f32 %v3396_v24, %v3161_v17  ;;  %v3166_v17 = vmul.f32 %v6971_v26, %v6835_v2 }
 0x303   : > { %3571 = vrot.lane.b32.xlu0 %v5225_v28, %s5383_s6  ;;  %3737 = vrot.lane.b32.xlu1 %v3476_v15, %s5384_s20  ;;  %5238 = vtanh.f32 %v3476_v15  ;;  %v3165_v15 = vmul.f32 %v6961_v45, %v6827_v58 }
 0x304   : > { %v5227_v53 = vpop.eup %5226  ;;  %5240 = vtanh.f32 %v3481_v33 }
 0x305   : > { %v5229_v5 = vpop.eup %5228  ;;  %v3392_v48 = vpop.permute.xlu0 %3391 }
 0x306   : > { %v3398_v52 = vpop.permute.xlu1 %3397  ;;  %v3479_v47 = vadd.f32 %v3392_v48, %v3159_v18  ;;  %v3164_v48 = vmul.f32 %v6975_v39, %v6821_v19 }
 0x307   : > { %3567 = vrot.lane.b32.xlu0 %v5227_v53, %s5383_s6  ;;  %3573 = vrot.lane.b32.xlu1 %v5229_v5, %s5383_s6  ;;  %v3482_v14 = vadd.f32 %v3398_v52, %v3162_v3  ;;  %v3163_v5 = vmul.f32 %v6967_v44, %v6813_v21 }
 0x308   : > { %v5231_v61 = vpop.eup %5230  ;;  %5242 = vtanh.f32 %v3479_v47 }
 0x309   : > { %v5233_v36 = vpop.eup %5232  ;;  %v3404_v46 = vpop.permute.xlu0 %3403  ;;  %5244 = vtanh.f32 %v3482_v14 }
 0x30a   : > { %v3394_v51 = vpop.permute.xlu1 %3393  ;;  %v3485_v28 = vadd.f32 %v3404_v46, %v3165_v15 }
 0x30b   : > { %3747 = vrot.lane.b32.xlu0 %v3481_v33, %s5384_s20  ;;  %3569 = vrot.lane.b32.xlu1 %v5231_v61, %s5383_s6  ;;  %v3480_v57 = vadd.f32 %v3394_v51, %v3160_v12 }
 0x30c   : > { %v5235_v30 = vpop.eup %5234 }
 0x30d   : > { %v5237_v41 = vpop.eup %5236  ;;  %v3400_v53 = vpop.permute.xlu0 %3399  ;;  %5246 = vtanh.f32 %v3480_v57 }
 0x30e   : > { %v3406_v54 = vpop.permute.xlu1 %3405  ;;  %v3483_v58 = vadd.f32 %v3400_v53, %v3163_v5  ;;  %5248 = vtanh.f32 %v3485_v28 }
 0x30f   : > { %3743 = vrot.lane.b32.xlu0 %v3479_v47, %s5384_s20  ;;  %3749 = vrot.lane.b32.xlu1 %v3482_v14, %s5384_s20  ;;  %v3486_v33 = vadd.f32 %v3406_v54, %v3166_v17  ;;  %v3169_v47 = vmul.f32 %v6981_v55, %v6853_v43 }
 0x310   : > { %v5239_v24 = vpop.eup %5238  ;;  %5250 = vtanh.f32 %v3483_v58 }
 0x311   : > { %v5241_v21 = vpop.eup %5240  ;;  %v3412_v2 = vpop.permute.xlu0 %3411  ;;  %5252 = vtanh.f32 %v3486_v33 }
 0x312   : > { %v3402_v61 = vpop.permute.xlu1 %3401  ;;  %v3489_v14 = vadd.f32 %v3412_v2, %v3169_v47 }
 0x313   : > { %3579 = vrot.lane.b32.xlu0 %v5233_v36, %s5383_s6  ;;  %3745 = vrot.lane.b32.xlu1 %v3480_v57, %s5384_s20  ;;  %v3484_v52 = vadd.f32 %v3402_v61, %v3164_v48  ;;  %v3167_v57 = vmul.f32 %v6985_v16, %v6840_v6  ;;  %v3170_v36 = vmul.f32 %v6989_v0, %v6859_v1 }
 0x315   : > { %v5243_v18 = vpop.eup %5242  ;;  %5254 = vtanh.f32 %v3484_v52 }
 0x316   : > { %v5245_v3 = vpop.eup %5244  ;;  %v3408_v12 = vpop.permute.xlu0 %3407  ;;  %5256 = vtanh.f32 %v3489_v14 }
 0x317   : > { %3575 = vrot.lane.b32.xlu0 %v5235_v30, %s5383_s6  ;;  %3581 = vrot.lane.b32.xlu1 %v5237_v41, %s5383_s6  ;;  %v3487_v43 = vadd.f32 %v3408_v12, %v3167_v57  ;;  %v3168_v41 = vmul.f32 %v6996_v63, %v6848_v40  ;;  %v7684_v12 = vld [vmem:[#allocation9_spill] sm:$0xff]  ;;  %v7685_v57 = vld [vmem:[#allocation16_spill] sm:$0xff] }
 0x318   : > { %v3414_v19 = vpop.permute.xlu1 %3413 }
 0x319   : > { %v3490_v46 = vadd.f32 %v3414_v19, %v3170_v36  ;;  %5258 = vtanh.f32 %v3487_v43  ;;  %v3178_v36 = vmul.f32 %v7685_v57, %v7684_v12 }
 0x31a   : > { %v5247_v51 = vpop.eup %5246 }
 0x31b   : > { %3755 = vrot.lane.b32.xlu0 %v3485_v28, %s5384_s20  ;;  %3577 = vrot.lane.b32.xlu1 %v5239_v24, %s5383_s6  ;;  %v5249_v6 = vpop.eup %5248  ;;  %v3173_v24 = vmul.f32 %v7000_v7, %v6871_v11  ;;  %5260 = vtanh.f32 %v3490_v46 }
 0x31c   : > { %v3410_v30 = vpop.permute.xlu1 %3409  ;;  %v3420_v1 = vpop.permute.xlu0 %3419 }
 0x31d   : > { %v3488_v15 = vadd.f32 %v3410_v30, %v3168_v41  ;;  %v5251_v54 = vpop.eup %5250  ;;  %v3493_v53 = vadd.f32 %v3420_v1, %v3173_v24  ;;  %v7686_v30 = vld [vmem:[#allocation8_spill] sm:$0xff]  ;;  %v7688_v24 = vld [vmem:[#allocation17_spill] sm:$0xff] }
 0x31e   : > { %v5253_v28 = vpop.eup %5252  ;;  %v3176_v41 = vmul.f32 %v7029_v59, %v7686_v30 }
 0x31f   : > { %3751 = vrot.lane.b32.xlu0 %v3483_v58, %s5384_s20  ;;  %3757 = vrot.lane.b32.xlu1 %v3486_v33, %s5384_s20  ;;  %v3171_v58 = vmul.f32 %v7005_v50, %v6861_v56  ;;  %v3174_v33 = vmul.f32 %v7008_v13, %v6877_v37  ;;  %5262 = vtanh.f32 %v3488_v15 }
 0x320   : > { %v3422_v40 = vpop.permute.xlu1 %3421  ;;  %v3416_v17 = vpop.permute.xlu0 %3415  ;;  %5264 = vtanh.f32 %v3493_v53 }
 0x321   : > { %v3491_v11 = vadd.f32 %v3416_v17, %v3171_v58  ;;  %v3494_v61 = vadd.f32 %v3422_v40, %v3174_v33  ;;  %v7689_v33 = vld [vmem:[#allocation13_spill] sm:$0xff] }
 0x322   : > { %v5255_v5 = vpop.eup %5254 }
 0x323   : > { %3587 = vrot.lane.b32.xlu0 %v5241_v21, %s5383_s6  ;;  %3753 = vrot.lane.b32.xlu1 %v3484_v52, %s5384_s20  ;;  %v3172_v52 = vmul.f32 %v7012_v42, %v6868_v62  ;;  %v5257_v56 = vpop.eup %5256  ;;  %5266 = vtanh.f32 %v3491_v11 }
 0x324   : > { %v3418_v48 = vpop.permute.xlu1 %3417  ;;  %5268 = vtanh.f32 %v3494_v61 }
 0x325   : > { %v3492_v21 = vadd.f32 %v3418_v48, %v3172_v52  ;;  %v7691_v48 = vld [vmem:[#allocation14_spill] sm:$0xff]  ;;  %v7692_v52 = vld [vmem:[#allocation19_spill] sm:$0xff] }
 0x326   : > { %v5259_v2 = vpop.eup %5258 }
 0x327   : > { %3583 = vrot.lane.b32.xlu0 %v5243_v18, %s5383_s6  ;;  %3589 = vrot.lane.b32.xlu1 %v5245_v3, %s5383_s6  ;;  %v3428_v37 = vpop.permute.xlu0 %3427  ;;  %v3177_v3 = vmul.f32 %v7016_v38, %v6886_v34  ;;  %5270 = vtanh.f32 %v3492_v21 }
 0x328   : > { %v5261_v18 = vpop.eup %5260 }
 0x329   : > { %v3497_v47 = vadd.f32 %v3428_v37, %v3177_v3 }
 0x32b   : > { %3763 = vrot.lane.b32.xlu0 %v3489_v14, %s5384_s20  ;;  %3585 = vrot.lane.b32.xlu1 %v5247_v51, %s5383_s6  ;;  %v3430_v62 = vpop.permute.xlu1 %3429  ;;  %v3424_v14 = vpop.permute.xlu0 %3423  ;;  %v3175_v51 = vmul.f32 %v7021_v27, %v6879_v20  ;;  %5272 = vtanh.f32 %v3497_v47 }
 0x32c   : > { %v5263_v19 = vpop.eup %5262 }
 0x32d   : > { %v3495_v34 = vadd.f32 %v3424_v14, %v3175_v51  ;;  %v5265_v20 = vpop.eup %5264 }
 0x32f   : > { %3759 = vrot.lane.b32.xlu0 %v3487_v43, %s5384_s20  ;;  %3765 = vrot.lane.b32.xlu1 %v3490_v46, %s5384_s20  ;;  %v3498_v43 = vadd.f32 %v3430_v62, %v3178_v36  ;;  %v3426_v46 = vpop.permute.xlu1 %3425  ;;  %5274 = vtanh.f32 %v3495_v34 }
 0x330   : > { %v5267_v1 = vpop.eup %5266 }
 0x331   : > { %5276 = vtanh.f32 %v3498_v43 }
 0x333   : > { %3595 = vrot.lane.b32.xlu0 %v5249_v6, %s5383_s6  ;;  %3761 = vrot.lane.b32.xlu1 %v3488_v15, %s5384_s20  ;;  %v3496_v15 = vadd.f32 %v3426_v46, %v3176_v41  ;;  %v3436_v6 = vpop.permute.xlu0 %3435 }
 0x335   : > { %5278 = vtanh.f32 %v3496_v15 }
 0x337   : > { %3591 = vrot.lane.b32.xlu0 %v5251_v54, %s5383_s6  ;;  %3597 = vrot.lane.b32.xlu1 %v5253_v28, %s5383_s6  ;;  %v5269_v54 = vpop.eup %5268  ;;  %v7687_v28 = vld [vmem:[#allocation15_spill] sm:$0xff]  ;;  %v3432_v17 = vpop.permute.xlu0 %3431 }
 0x338   : > { %v3181_v40 = vmul.f32 %v7688_v24, %v7687_v28  ;;  %v5271_v58 = vpop.eup %5270 }
 0x33b   : > { %3771 = vrot.lane.b32.xlu0 %v3493_v53, %s5384_s20  ;;  %3593 = vrot.lane.b32.xlu1 %v5255_v5, %s5383_s6  ;;  %v3438_v53 = vpop.permute.xlu1 %3437  ;;  %v3501_v5 = vadd.f32 %v3436_v6, %v3181_v40 }
 0x33d   : > { %5280 = vtanh.f32 %v3501_v5 }
 0x33f   : > { %3767 = vrot.lane.b32.xlu0 %v3491_v11, %s5384_s20  ;;  %3773 = vrot.lane.b32.xlu1 %v3494_v61, %s5384_s20  ;;  %v7690_v11 = vld [vmem:[#allocation18_spill] sm:$0xff] }
 0x340   : > { %v3179_v61 = vmul.f32 %v7690_v11, %v7689_v33 }
 0x343   : > { %3603 = vrot.lane.b32.xlu0 %v5257_v56, %s5383_s6  ;;  %3769 = vrot.lane.b32.xlu1 %v3492_v21, %s5384_s20  ;;  %v3182_v21 = vmul.f32 %v7692_v52, %v7691_v48  ;;  %v3499_v56 = vadd.f32 %v3432_v17, %v3179_v61 }
 0x345   : > { %v3502_v37 = vadd.f32 %v3438_v53, %v3182_v21  ;;  %5282 = vtanh.f32 %v3499_v56 }
 0x347   : > { %3599 = vrot.lane.b32.xlu0 %v5259_v2, %s5383_s6  ;;  %3605 = vrot.lane.b32.xlu1 %v5261_v18, %s5383_s6  ;;  %v3434_v2 = vpop.permute.xlu1 %3433  ;;  %v7693_v18 = vld [vmem:[#allocation10_spill] sm:$0xff]  ;;  %5284 = vtanh.f32 %v3502_v37 }
 0x348   : > { %v3180_v3 = vmul.f32 %v7045_v35, %v7693_v18 }
 0x34a   : > { %v3500_v62 = vadd.f32 %v3434_v2, %v3180_v3 }
 0x34b   : > { %3779 = vrot.lane.b32.xlu0 %v3497_v47, %s5384_s20  ;;  %3601 = vrot.lane.b32.xlu1 %v5263_v19, %s5383_s6  ;;  %v5273_v47 = vpop.eup %5272 }
 0x34c   : > { %v5275_v14 = vpop.eup %5274  ;;  %5286 = vtanh.f32 %v3500_v62 }
 0x34d   : > { %v5277_v51 = vpop.eup %5276 }
 0x34e   : > { %v5279_v36 = vpop.eup %5278 }
 0x34f   : > { %3775 = vrot.lane.b32.xlu0 %v3495_v34, %s5384_s20  ;;  %3781 = vrot.lane.b32.xlu1 %v3498_v43, %s5384_s20  ;;  %v5281_v43 = vpop.eup %5280 }
 0x352   : > { %v5283_v46 = vpop.eup %5282 }
 0x353   : > { %3611 = vrot.lane.b32.xlu0 %v5265_v20, %s5383_s6  ;;  %3777 = vrot.lane.b32.xlu1 %v3496_v15, %s5384_s20 }
 0x354   : > { %v5285_v15 = vpop.eup %5284 }
 0x357   : > { %3607 = vrot.lane.b32.xlu0 %v5267_v1, %s5383_s6  ;;  %3613 = vrot.lane.b32.xlu1 %v5269_v54, %s5383_s6 }
 0x359   : > { %v5287_v1 = vpop.eup %5286 }
 0x35b   : > { %3787 = vrot.lane.b32.xlu0 %v3501_v5, %s5384_s20  ;;  %3609 = vrot.lane.b32.xlu1 %v5271_v58, %s5383_s6 }
 0x35f   : > { %3783 = vrot.lane.b32.xlu0 %v3499_v56, %s5384_s20  ;;  %3789 = vrot.lane.b32.xlu1 %v3502_v37, %s5384_s20 }
 0x363   : > { %3619 = vrot.lane.b32.xlu0 %v5273_v47, %s5383_s6  ;;  %3785 = vrot.lane.b32.xlu1 %v3500_v62, %s5384_s20 }
 0x365   : > { %v7170_v19 = vpop.permute.xlu0 %3731 }
 0x366   : > { %3825 = vst.msk [vmem:[#allocation3 + $0x10] sm:$0xff] %vm461_vm2, %v7170_v19 }
 0x367   : > { %3615 = vrot.lane.b32.xlu0 %v5275_v14, %s5383_s6  ;;  %3621 = vrot.lane.b32.xlu1 %v5277_v51, %s5383_s6 }
 0x369   : > { %v7176_v12 = vpop.permute.xlu0 %3727  ;;  %v7180_v34 = vpop.permute.xlu1 %3733 }
 0x36a   : > { %3823 = vst.msk [vmem:[#allocation3] sm:$0xff] %vm461_vm2, %v7176_v12  ;;  %3826 = vst.msk [vmem:[#allocation3 + $0x18] sm:$0xff] %vm461_vm2, %v7180_v34 }
 0x36b   : > { %3627 = vrot.lane.b32.xlu0 %v5281_v43, %s5383_s6  ;;  %3617 = vrot.lane.b32.xlu1 %v5279_v36, %s5383_s6 }
 0x36d   : > { %v7186_v30 = vpop.permute.xlu0 %3739  ;;  %v7188_v41 = vpop.permute.xlu1 %3729 }
 0x36e   : > { %3829 = vst.msk [vmem:[#allocation3 + $0x30] sm:$0xff] %vm461_vm2, %v7186_v30  ;;  %3824 = vst.msk [vmem:[#allocation3 + $0x8] sm:$0xff] %vm461_vm2, %v7188_v41 }
 0x36f   : > { %3623 = vrot.lane.b32.xlu0 %v5283_v46, %s5383_s6  ;;  %3629 = vrot.lane.b32.xlu1 %v5285_v15, %s5383_s6 }
 0x371   : > { %v7196_v20 = vpop.permute.xlu0 %3735  ;;  %v7198_v6 = vpop.permute.xlu1 %3741 }
 0x372   : > { %3827 = vst.msk [vmem:[#allocation3 + $0x20] sm:$0xff] %vm461_vm2, %v7196_v20  ;;  %3830 = vst.msk [vmem:[#allocation3 + $0x38] sm:$0xff] %vm461_vm2, %v7198_v6 }
 0x373   : > { %3625 = vrot.lane.b32.xlu1 %v5287_v1, %s5383_s6 }
 0x375   : > { %v3572_v54 = vpop.permute.xlu0 %3571  ;;  %v7205_v28 = vpop.permute.xlu1 %3737 }
 0x376   : > { %v3665_v40 = vmul.f32 %v6900_v31, %v3572_v54  ;;  %3828 = vst.msk [vmem:[#allocation3 + $0x28] sm:$0xff] %vm461_vm2, %v7205_v28 }
 0x378   : > { %3891 = vrot.lane.b32.xlu0 %v3665_v40, %s5385_s7 }
 0x379   : > { %v3568_v53 = vpop.permute.xlu0 %3567  ;;  %v3574_v5 = vpop.permute.xlu1 %3573 }
 0x37a   : > { %v3663_v17 = vmul.f32 %v6908_v8, %v3568_v53  ;;  %v3666_v58 = vmul.f32 %v6910_v60, %v3574_v5 }
 0x37c   : > { %3887 = vrot.lane.b32.xlu0 %v3663_v17, %s5385_s7  ;;  %3893 = vrot.lane.b32.xlu1 %v3666_v58, %s5385_s7 }
 0x37d   : > { %v7215_v33 = vpop.permute.xlu0 %3747  ;;  %v3570_v61 = vpop.permute.xlu1 %3569 }
 0x37e   : > { %3833 = vst.msk [vmem:[#allocation3 + $0x50] sm:$0xff] %vm461_vm2, %v7215_v33  ;;  %v3664_v31 = vmul.f32 %v6916_v4, %v3570_v61 }
 0x380   : > { %3889 = vrot.lane.b32.xlu1 %v3664_v31, %s5385_s7 }
 0x381   : > { %v7221_v48 = vpop.permute.xlu0 %3743  ;;  %v7223_v21 = vpop.permute.xlu1 %3749 }
 0x382   : > { %3831 = vst.msk [vmem:[#allocation3 + $0x40] sm:$0xff] %vm461_vm2, %v7221_v48  ;;  %3834 = vst.msk [vmem:[#allocation3 + $0x58] sm:$0xff] %vm461_vm2, %v7223_v21 }
 0x385   : > { %v3580_v8 = vpop.permute.xlu0 %3579  ;;  %v7229_v60 = vpop.permute.xlu1 %3745 }
 0x386   : > { %v3669_v56 = vmul.f32 %v6919_v9, %v3580_v8  ;;  %3832 = vst.msk [vmem:[#allocation3 + $0x48] sm:$0xff] %vm461_vm2, %v7229_v60 }
 0x388   : > { %3899 = vrot.lane.b32.xlu0 %v3669_v56, %s5385_s7 }
 0x389   : > { %v3576_v4 = vpop.permute.xlu0 %3575  ;;  %v3582_v37 = vpop.permute.xlu1 %3581 }
 0x38a   : > { %v3667_v2 = vmul.f32 %v6924_v25, %v3576_v4  ;;  %v3670_v18 = vmul.f32 %v6929_v22, %v3582_v37 }
 0x38c   : > { %3895 = vrot.lane.b32.xlu0 %v3667_v2, %s5385_s7  ;;  %3901 = vrot.lane.b32.xlu1 %v3670_v18, %s5385_s7 }
 0x38d   : > { %v7239_v3 = vpop.permute.xlu0 %3755  ;;  %v3578_v62 = vpop.permute.xlu1 %3577 }
 0x38e   : > { %3837 = vst.msk [vmem:[#allocation3 + $0x70] sm:$0xff] %vm461_vm2, %v7239_v3  ;;  %v3668_v9 = vmul.f32 %v6934_v23, %v3578_v62 }
 0x390   : > { %3897 = vrot.lane.b32.xlu1 %v3668_v9, %s5385_s7 }
 0x391   : > { %v7245_v47 = vpop.permute.xlu0 %3751  ;;  %v7247_v14 = vpop.permute.xlu1 %3757 }
 0x392   : > { %3835 = vst.msk [vmem:[#allocation3 + $0x60] sm:$0xff] %vm461_vm2, %v7245_v47  ;;  %3838 = vst.msk [vmem:[#allocation3 + $0x78] sm:$0xff] %vm461_vm2, %v7247_v14 }
 0x395   : > { %v3588_v25 = vpop.permute.xlu0 %3587  ;;  %v7253_v22 = vpop.permute.xlu1 %3753 }
 0x396   : > { %v3673_v51 = vmul.f32 %v6938_v49, %v3588_v25  ;;  %3836 = vst.msk [vmem:[#allocation3 + $0x68] sm:$0xff] %vm461_vm2, %v7253_v22 }
 0x398   : > { %3907 = vrot.lane.b32.xlu0 %v3673_v51, %s5385_s7 }
 0x399   : > { %v3584_v23 = vpop.permute.xlu0 %3583  ;;  %v3590_v36 = vpop.permute.xlu1 %3589 }
 0x39a   : > { %v3671_v43 = vmul.f32 %v6946_v10, %v3584_v23  ;;  %v3674_v46 = vmul.f32 %v6951_v32, %v3590_v36 }
 0x39c   : > { %3903 = vrot.lane.b32.xlu0 %v3671_v43, %s5385_s7  ;;  %3909 = vrot.lane.b32.xlu1 %v3674_v46, %s5385_s7 }
 0x39d   : > { %v7263_v15 = vpop.permute.xlu0 %3763  ;;  %v3586_v1 = vpop.permute.xlu1 %3585 }
 0x39e   : > { %3841 = vst.msk [vmem:[#allocation3 + $0x90] sm:$0xff] %vm461_vm2, %v7263_v15  ;;  %v3672_v49 = vmul.f32 %v6955_v29, %v3586_v1 }
 0x3a0   : > { %3905 = vrot.lane.b32.xlu1 %v3672_v49, %s5385_s7 }
 0x3a1   : > { %v7269_v54 = vpop.permute.xlu0 %3759  ;;  %v7271_v40 = vpop.permute.xlu1 %3765 }
 0x3a2   : > { %3839 = vst.msk [vmem:[#allocation3 + $0x80] sm:$0xff] %vm461_vm2, %v7269_v54  ;;  %3842 = vst.msk [vmem:[#allocation3 + $0x98] sm:$0xff] %vm461_vm2, %v7271_v40 }
 0x3a5   : > { %v3596_v10 = vpop.permute.xlu0 %3595  ;;  %v7277_v32 = vpop.permute.xlu1 %3761 }
 0x3a6   : > { %v3677_v53 = vmul.f32 %v6961_v45, %v3596_v10  ;;  %3840 = vst.msk [vmem:[#allocation3 + $0x88] sm:$0xff] %vm461_vm2, %v7277_v32 }
 0x3a8   : > { %3915 = vrot.lane.b32.xlu0 %v3677_v53, %s5385_s7 }
 0x3a9   : > { %v3592_v29 = vpop.permute.xlu0 %3591  ;;  %v3598_v5 = vpop.permute.xlu1 %3597 }
 0x3aa   : > { %v3675_v17 = vmul.f32 %v6967_v44, %v3592_v29  ;;  %v3678_v58 = vmul.f32 %v6971_v26, %v3598_v5 }
 0x3ac   : > { %3911 = vrot.lane.b32.xlu0 %v3675_v17, %s5385_s7  ;;  %3917 = vrot.lane.b32.xlu1 %v3678_v58, %s5385_s7 }
 0x3ad   : > { %v7287_v61 = vpop.permute.xlu0 %3771  ;;  %v3594_v31 = vpop.permute.xlu1 %3593 }
 0x3ae   : > { %3845 = vst.msk [vmem:[#allocation3 + $0xb0] sm:$0xff] %vm461_vm2, %v7287_v61  ;;  %v3676_v45 = vmul.f32 %v6975_v39, %v3594_v31 }
 0x3b0   : > { %3913 = vrot.lane.b32.xlu1 %v3676_v45, %s5385_s7 }
 0x3b1   : > { %v7293_v8 = vpop.permute.xlu0 %3767  ;;  %v7295_v56 = vpop.permute.xlu1 %3773 }
 0x3b2   : > { %3843 = vst.msk [vmem:[#allocation3 + $0xa0] sm:$0xff] %vm461_vm2, %v7293_v8  ;;  %3846 = vst.msk [vmem:[#allocation3 + $0xb8] sm:$0xff] %vm461_vm2, %v7295_v56 }
 0x3b5   : > { %v3604_v44 = vpop.permute.xlu0 %3603  ;;  %v7301_v26 = vpop.permute.xlu1 %3769 }
 0x3b6   : > { %v3681_v4 = vmul.f32 %v6981_v55, %v3604_v44  ;;  %3844 = vst.msk [vmem:[#allocation3 + $0xa8] sm:$0xff] %vm461_vm2, %v7301_v26 }
 0x3b8   : > { %3923 = vrot.lane.b32.xlu0 %v3681_v4, %s5385_s7 }
 0x3b9   : > { %v3600_v39 = vpop.permute.xlu0 %3599  ;;  %v3606_v37 = vpop.permute.xlu1 %3605 }
 0x3ba   : > { %v3679_v2 = vmul.f32 %v6985_v16, %v3600_v39  ;;  %v3682_v18 = vmul.f32 %v6989_v0, %v3606_v37 }
 0x3bc   : > { %3919 = vrot.lane.b32.xlu0 %v3679_v2, %s5385_s7  ;;  %3925 = vrot.lane.b32.xlu1 %v3682_v18, %s5385_s7 }
 0x3bd   : > { %v7311_v62 = vpop.permute.xlu0 %3779  ;;  %v3602_v9 = vpop.permute.xlu1 %3601 }
 0x3be   : > { %3849 = vst.msk [vmem:[#allocation3 + $0xd0] sm:$0xff] %vm461_vm2, %v7311_v62  ;;  %v3680_v55 = vmul.f32 %v6996_v63, %v3602_v9 }
 0x3c0   : > { %3921 = vrot.lane.b32.xlu1 %v3680_v55, %s5385_s7 }
 0x3c1   : > { %v7317_v25 = vpop.permute.xlu0 %3775  ;;  %v7319_v51 = vpop.permute.xlu1 %3781 }
 0x3c2   : > { %3847 = vst.msk [vmem:[#allocation3 + $0xc0] sm:$0xff] %vm461_vm2, %v7317_v25  ;;  %3850 = vst.msk [vmem:[#allocation3 + $0xd8] sm:$0xff] %vm461_vm2, %v7319_v51 }
 0x3c5   : > { %v3612_v16 = vpop.permute.xlu0 %3611  ;;  %v7325_v0 = vpop.permute.xlu1 %3777 }
 0x3c6   : > { %v3685_v23 = vmul.f32 %v7000_v7, %v3612_v16  ;;  %3848 = vst.msk [vmem:[#allocation3 + $0xc8] sm:$0xff] %vm461_vm2, %v7325_v0 }
 0x3c8   : > { %3931 = vrot.lane.b32.xlu0 %v3685_v23, %s5385_s7 }
 0x3c9   : > { %v3608_v63 = vpop.permute.xlu0 %3607  ;;  %v3614_v36 = vpop.permute.xlu1 %3613 }
 0x3ca   : > { %v3683_v43 = vmul.f32 %v7005_v50, %v3608_v63  ;;  %v3686_v46 = vmul.f32 %v7008_v13, %v3614_v36 }
 0x3cc   : > { %3927 = vrot.lane.b32.xlu0 %v3683_v43, %s5385_s7  ;;  %3933 = vrot.lane.b32.xlu1 %v3686_v46, %s5385_s7 }
 0x3cd   : > { %v7335_v1 = vpop.permute.xlu0 %3787  ;;  %v3610_v49 = vpop.permute.xlu1 %3609 }
 0x3ce   : > { %3853 = vst.msk [vmem:[#allocation3 + $0xf0] sm:$0xff] %vm461_vm2, %v7335_v1  ;;  %v3684_v7 = vmul.f32 %v7012_v42, %v3610_v49 }
 0x3d0   : > { %3929 = vrot.lane.b32.xlu1 %v3684_v7, %s5385_s7 }
 0x3d1   : > { %v7341_v10 = vpop.permute.xlu0 %3783  ;;  %v7343_v53 = vpop.permute.xlu1 %3789 }
 0x3d2   : > { %3851 = vst.msk [vmem:[#allocation3 + $0xe0] sm:$0xff] %vm461_vm2, %v7341_v10  ;;  %3854 = vst.msk [vmem:[#allocation3 + $0xf8] sm:$0xff] %vm461_vm2, %v7343_v53 }
 0x3d5   : > { %v3620_v50 = vpop.permute.xlu0 %3619  ;;  %v7349_v13 = vpop.permute.xlu1 %3785 }
 0x3d6   : > { %v3689_v29 = vmul.f32 %v7016_v38, %v3620_v50  ;;  %3852 = vst.msk [vmem:[#allocation3 + $0xe8] sm:$0xff] %vm461_vm2, %v7349_v13 }
 0x3d8   : > { %3939 = vrot.lane.b32.xlu0 %v3689_v29, %s5385_s7 }
 0x3d9   : > { %v3616_v42 = vpop.permute.xlu0 %3615  ;;  %v3622_v5 = vpop.permute.xlu1 %3621 }
 0x3da   : > { %v3687_v17 = vmul.f32 %v7021_v27, %v3616_v42  ;;  %v3690_v58 = vmul.f32 %v7685_v57, %v3622_v5 }
 0x3dc   : > { %3935 = vrot.lane.b32.xlu0 %v3687_v17, %s5385_s7  ;;  %3941 = vrot.lane.b32.xlu1 %v3690_v58, %s5385_s7 }
 0x3dd   : > { %v3628_v31 = vpop.permute.xlu0 %3627  ;;  %v3618_v45 = vpop.permute.xlu1 %3617 }
 0x3de   : > { %v3688_v38 = vmul.f32 %v7029_v59, %v3618_v45  ;;  %v3693_v57 = vmul.f32 %v7688_v24, %v3628_v31 }
 0x3e0   : > { %3937 = vrot.lane.b32.xlu1 %v3688_v38, %s5385_s7 }
 0x3e1   : > { %v3624_v44 = vpop.permute.xlu0 %3623  ;;  %v3630_v4 = vpop.permute.xlu1 %3629 }
 0x3e2   : > { %v3691_v39 = vmul.f32 %v7690_v11, %v3624_v44  ;;  %v3694_v59 = vmul.f32 %v7692_v52, %v3630_v4 }
 0x3e4   : > { %3943 = vrot.lane.b32.xlu0 %v3691_v39, %s5385_s7 }
 0x3e5   : > { %v3626_v27 = vpop.permute.xlu1 %3625 }
 0x3e6   : > { %v3692_v37 = vmul.f32 %v7045_v35, %v3626_v27 }
 0x3e8   : > { %3947 = vrot.lane.b32.xlu0 %v3693_v57, %s5385_s7  ;;  %3945 = vrot.lane.b32.xlu1 %v3692_v37, %s5385_s7 }
 0x3ea   : > { %v3892_v2 = vpop.permute.xlu0 %3891 }
 0x3eb   : > { %3986 = vst.msk [vmem:[#allocation2 + $0x31] sm:$0xff] %vm461_vm2, %v3892_v2  ;;  %4018 = vst.msk [vmem:[%s5493_s27 + $0x10] sm:$0xff] %vm461_vm2, %v3892_v2 }
 0x3ec   : > { %3949 = vrot.lane.b32.xlu1 %v3694_v59, %s5385_s7 }
 0x3ee   : > { %v3888_v11 = vpop.permute.xlu0 %3887  ;;  %v3894_v24 = vpop.permute.xlu1 %3893 }
 0x3ef   : > { %3984 = vst.msk [vmem:[#allocation2 + $0x19] sm:$0xff] %vm461_vm2, %v3888_v11  ;;  %4016 = vst.msk [vmem:[%s5493_s27] sm:$0xff] %vm461_vm2, %v3888_v11 }
 0x3f0   : > { %3987 = vst.msk [vmem:[#allocation2 + $0x39] sm:$0xff] %vm461_vm2, %v3894_v24  ;;  %4019 = vst.msk [vmem:[%s5493_s27 + $0x18] sm:$0xff] %vm461_vm2, %v3894_v24 }
 0x3f2   : > { %v3890_v35 = vpop.permute.xlu1 %3889 }
 0x3f3   : > { %3985 = vst.msk [vmem:[#allocation2 + $0x21] sm:$0xff] %vm461_vm2, %v3890_v35  ;;  %4017 = vst.msk [vmem:[%s5493_s27 + $0x8] sm:$0xff] %vm461_vm2, %v3890_v35 }
 0x3fa   : > { %v3900_v52 = vpop.permute.xlu0 %3899 }
 0x3fb   : > { %3990 = vst.msk [vmem:[#allocation2 + $0x61] sm:$0xff] %vm461_vm2, %v3900_v52  ;;  %4022 = vst.msk [vmem:[%s5493_s27 + $0x30] sm:$0xff] %vm461_vm2, %v3900_v52 }
 0x3fe   : > { %v3896_v18 = vpop.permute.xlu0 %3895  ;;  %v3902_v9 = vpop.permute.xlu1 %3901 }
 0x3ff   : > { %3988 = vst.msk [vmem:[#allocation2 + $0x49] sm:$0xff] %vm461_vm2, %v3896_v18  ;;  %4020 = vst.msk [vmem:[%s5493_s27 + $0x20] sm:$0xff] %vm461_vm2, %v3896_v18 }
 0x400   : > { %3991 = vst.msk [vmem:[#allocation2 + $0x69] sm:$0xff] %vm461_vm2, %v3902_v9  ;;  %4023 = vst.msk [vmem:[%s5493_s27 + $0x38] sm:$0xff] %vm461_vm2, %v3902_v9 }
 0x402   : > { %v3898_v55 = vpop.permute.xlu1 %3897 }
 0x403   : > { %3989 = vst.msk [vmem:[#allocation2 + $0x51] sm:$0xff] %vm461_vm2, %v3898_v55  ;;  %4021 = vst.msk [vmem:[%s5493_s27 + $0x28] sm:$0xff] %vm461_vm2, %v3898_v55 }
 0x40a   : > { %v3908_v16 = vpop.permute.xlu0 %3907 }
 0x40b   : > { %3994 = vst.msk [vmem:[#allocation2 + $0x91] sm:$0xff] %vm461_vm2, %v3908_v16  ;;  %4026 = vst.msk [vmem:[%s5493_s27 + $0x50] sm:$0xff] %vm461_vm2, %v3908_v16 }
 0x40e   : > { %v3904_v23 = vpop.permute.xlu0 %3903  ;;  %v3910_v63 = vpop.permute.xlu1 %3909 }
 0x40f   : > { %3992 = vst.msk [vmem:[#allocation2 + $0x79] sm:$0xff] %vm461_vm2, %v3904_v23  ;;  %4024 = vst.msk [vmem:[%s5493_s27 + $0x40] sm:$0xff] %vm461_vm2, %v3904_v23 }
 0x410   : > { %3995 = vst.msk [vmem:[#allocation2 + $0x99] sm:$0xff] %vm461_vm2, %v3910_v63  ;;  %4027 = vst.msk [vmem:[%s5493_s27 + $0x58] sm:$0xff] %vm461_vm2, %v3910_v63 }
 0x412   : > { %v3906_v36 = vpop.permute.xlu1 %3905 }
 0x413   : > { %3993 = vst.msk [vmem:[#allocation2 + $0x81] sm:$0xff] %vm461_vm2, %v3906_v36  ;;  %4025 = vst.msk [vmem:[%s5493_s27 + $0x48] sm:$0xff] %vm461_vm2, %v3906_v36 }
 0x41a   : > { %v3916_v43 = vpop.permute.xlu0 %3915 }
 0x41b   : > { %3998 = vst.msk [vmem:[#allocation2 + $0xc1] sm:$0xff] %vm461_vm2, %v3916_v43  ;;  %4030 = vst.msk [vmem:[%s5493_s27 + $0x70] sm:$0xff] %vm461_vm2, %v3916_v43 }
 0x41e   : > { %v3912_v46 = vpop.permute.xlu0 %3911  ;;  %v3918_v49 = vpop.permute.xlu1 %3917 }
 0x41f   : > { %3996 = vst.msk [vmem:[#allocation2 + $0xa9] sm:$0xff] %vm461_vm2, %v3912_v46  ;;  %4028 = vst.msk [vmem:[%s5493_s27 + $0x60] sm:$0xff] %vm461_vm2, %v3912_v46 }
 0x420   : > { %3999 = vst.msk [vmem:[#allocation2 + $0xc9] sm:$0xff] %vm461_vm2, %v3918_v49  ;;  %4031 = vst.msk [vmem:[%s5493_s27 + $0x78] sm:$0xff] %vm461_vm2, %v3918_v49 }
 0x422   : > { %v3914_v7 = vpop.permute.xlu1 %3913 }
 0x423   : > { %3997 = vst.msk [vmem:[#allocation2 + $0xb1] sm:$0xff] %vm461_vm2, %v3914_v7  ;;  %4029 = vst.msk [vmem:[%s5493_s27 + $0x68] sm:$0xff] %vm461_vm2, %v3914_v7 }
 0x42a   : > { %v3924_v50 = vpop.permute.xlu0 %3923 }
 0x42b   : > { %4002 = vst.msk [vmem:[#allocation2 + $0xf1] sm:$0xff] %vm461_vm2, %v3924_v50  ;;  %4034 = vst.msk [vmem:[%s5493_s27 + $0x90] sm:$0xff] %vm461_vm2, %v3924_v50 }
 0x42e   : > { %v3920_v29 = vpop.permute.xlu0 %3919  ;;  %v3926_v42 = vpop.permute.xlu1 %3925 }
 0x42f   : > { %4000 = vst.msk [vmem:[#allocation2 + $0xd9] sm:$0xff] %vm461_vm2, %v3920_v29  ;;  %4032 = vst.msk [vmem:[%s5493_s27 + $0x80] sm:$0xff] %vm461_vm2, %v3920_v29 }
 0x430   : > { %4003 = vst.msk [vmem:[#allocation2 + $0xf9] sm:$0xff] %vm461_vm2, %v3926_v42  ;;  %4035 = vst.msk [vmem:[%s5493_s27 + $0x98] sm:$0xff] %vm461_vm2, %v3926_v42 }
 0x432   : > { %v3922_v5 = vpop.permute.xlu1 %3921 }
 0x433   : > { %4001 = vst.msk [vmem:[#allocation2 + $0xe1] sm:$0xff] %vm461_vm2, %v3922_v5  ;;  %4033 = vst.msk [vmem:[%s5493_s27 + $0x88] sm:$0xff] %vm461_vm2, %v3922_v5 }
 0x43a   : > { %v3932_v17 = vpop.permute.xlu0 %3931 }
 0x43b   : > { %4006 = vst.msk [vmem:[#allocation2 + $0x121] sm:$0xff] %vm461_vm2, %v3932_v17  ;;  %4038 = vst.msk [vmem:[%s5493_s27 + $0xb0] sm:$0xff] %vm461_vm2, %v3932_v17 }
 0x43e   : > { %v3928_v58 = vpop.permute.xlu0 %3927  ;;  %v3934_v31 = vpop.permute.xlu1 %3933 }
 0x43f   : > { %4004 = vst.msk [vmem:[#allocation2 + $0x109] sm:$0xff] %vm461_vm2, %v3928_v58  ;;  %4036 = vst.msk [vmem:[%s5493_s27 + $0xa0] sm:$0xff] %vm461_vm2, %v3928_v58 }
 0x440   : > { %4007 = vst.msk [vmem:[#allocation2 + $0x129] sm:$0xff] %vm461_vm2, %v3934_v31  ;;  %4039 = vst.msk [vmem:[%s5493_s27 + $0xb8] sm:$0xff] %vm461_vm2, %v3934_v31 }
 0x442   : > { %v3930_v45 = vpop.permute.xlu1 %3929 }
 0x443   : > { %4005 = vst.msk [vmem:[#allocation2 + $0x111] sm:$0xff] %vm461_vm2, %v3930_v45  ;;  %4037 = vst.msk [vmem:[%s5493_s27 + $0xa8] sm:$0xff] %vm461_vm2, %v3930_v45 }
 0x44a   : > { %v3940_v38 = vpop.permute.xlu0 %3939 }
 0x44b   : > { %4010 = vst.msk [vmem:[#allocation2 + $0x151] sm:$0xff] %vm461_vm2, %v3940_v38  ;;  %4042 = vst.msk [vmem:[%s5493_s27 + $0xd0] sm:$0xff] %vm461_vm2, %v3940_v38 }
 0x44e   : > { %v3936_v44 = vpop.permute.xlu0 %3935  ;;  %v3942_v4 = vpop.permute.xlu1 %3941 }
 0x44f   : > { %4008 = vst.msk [vmem:[#allocation2 + $0x139] sm:$0xff] %vm461_vm2, %v3936_v44  ;;  %4040 = vst.msk [vmem:[%s5493_s27 + $0xc0] sm:$0xff] %vm461_vm2, %v3936_v44 }
 0x450   : > { %4011 = vst.msk [vmem:[#allocation2 + $0x159] sm:$0xff] %vm461_vm2, %v3942_v4  ;;  %4043 = vst.msk [vmem:[%s5493_s27 + $0xd8] sm:$0xff] %vm461_vm2, %v3942_v4 }
 0x452   : > { %v3938_v39 = vpop.permute.xlu1 %3937 }
 0x453   : > { %4009 = vst.msk [vmem:[#allocation2 + $0x141] sm:$0xff] %vm461_vm2, %v3938_v39  ;;  %4041 = vst.msk [vmem:[%s5493_s27 + $0xc8] sm:$0xff] %vm461_vm2, %v3938_v39 }
 0x456   : > { %v3944_v27 = vpop.permute.xlu0 %3943 }
 0x457   : > { %4012 = vst.msk [vmem:[#allocation2 + $0x169] sm:$0xff] %vm461_vm2, %v3944_v27  ;;  %4044 = vst.msk [vmem:[%s5493_s27 + $0xe0] sm:$0xff] %vm461_vm2, %v3944_v27 }
 0x45a   : > { %v3948_v57 = vpop.permute.xlu0 %3947  ;;  %v3946_v37 = vpop.permute.xlu1 %3945 }
 0x45b   : > { %4014 = vst.msk [vmem:[#allocation2 + $0x181] sm:$0xff] %vm461_vm2, %v3948_v57  ;;  %4046 = vst.msk [vmem:[%s5493_s27 + $0xf0] sm:$0xff] %vm461_vm2, %v3948_v57  ;;  %4051 = sbr.rel (%p4440_p1) target bundleno = 1136 (0x470), region = 36 }
 0x45c   : > { %4013 = vst.msk [vmem:[#allocation2 + $0x171] sm:$0xff] %vm461_vm2, %v3946_v37  ;;  %4045 = vst.msk [vmem:[%s5493_s27 + $0xe8] sm:$0xff] %vm461_vm2, %v3946_v37 }
 0x45e   : > { %v3950_v59 = vpop.permute.xlu1 %3949 }
 0x45f   : > { %4015 = vst.msk [vmem:[#allocation2 + $0x189] sm:$0xff] %vm461_vm2, %v3950_v59  ;;  %4047 = vst.msk [vmem:[%s5493_s27 + $0xf8] sm:$0xff] %vm461_vm2, %v3950_v59 }
 0x460   : > { %4052 = vst.msk [vmem:[%s5495_s23] sm:$0xff] %vm461_vm2, %v7176_v12  ;;  %4053 = vst.msk [vmem:[%s5495_s23 + $0x8] sm:$0xff] %vm461_vm2, %v7188_v41 }
 0x461   : > { %4054 = vst.msk [vmem:[%s5495_s23 + $0x10] sm:$0xff] %vm461_vm2, %v7170_v19  ;;  %4055 = vst.msk [vmem:[%s5495_s23 + $0x18] sm:$0xff] %vm461_vm2, %v7180_v34 }
 0x462   : > { %4056 = vst.msk [vmem:[%s5495_s23 + $0x20] sm:$0xff] %vm461_vm2, %v7196_v20  ;;  %4057 = vst.msk [vmem:[%s5495_s23 + $0x28] sm:$0xff] %vm461_vm2, %v7205_v28 }
 0x463   : > { %4058 = vst.msk [vmem:[%s5495_s23 + $0x30] sm:$0xff] %vm461_vm2, %v7186_v30  ;;  %4059 = vst.msk [vmem:[%s5495_s23 + $0x38] sm:$0xff] %vm461_vm2, %v7198_v6 }
 0x464   : > { %4060 = vst.msk [vmem:[%s5495_s23 + $0x40] sm:$0xff] %vm461_vm2, %v7221_v48  ;;  %4061 = vst.msk [vmem:[%s5495_s23 + $0x48] sm:$0xff] %vm461_vm2, %v7229_v60 }
 0x465   : > { %4062 = vst.msk [vmem:[%s5495_s23 + $0x50] sm:$0xff] %vm461_vm2, %v7215_v33  ;;  %4063 = vst.msk [vmem:[%s5495_s23 + $0x58] sm:$0xff] %vm461_vm2, %v7223_v21 }
 0x466   : > { %4064 = vst.msk [vmem:[%s5495_s23 + $0x60] sm:$0xff] %vm461_vm2, %v7245_v47  ;;  %4065 = vst.msk [vmem:[%s5495_s23 + $0x68] sm:$0xff] %vm461_vm2, %v7253_v22 }
 0x467   : > { %4066 = vst.msk [vmem:[%s5495_s23 + $0x70] sm:$0xff] %vm461_vm2, %v7239_v3  ;;  %4067 = vst.msk [vmem:[%s5495_s23 + $0x78] sm:$0xff] %vm461_vm2, %v7247_v14 }
 0x468   : > { %4068 = vst.msk [vmem:[%s5495_s23 + $0x80] sm:$0xff] %vm461_vm2, %v7269_v54  ;;  %4069 = vst.msk [vmem:[%s5495_s23 + $0x88] sm:$0xff] %vm461_vm2, %v7277_v32 }
 0x469   : > { %4070 = vst.msk [vmem:[%s5495_s23 + $0x90] sm:$0xff] %vm461_vm2, %v7263_v15  ;;  %4071 = vst.msk [vmem:[%s5495_s23 + $0x98] sm:$0xff] %vm461_vm2, %v7271_v40 }
 0x46a   : > { %4072 = vst.msk [vmem:[%s5495_s23 + $0xa0] sm:$0xff] %vm461_vm2, %v7293_v8  ;;  %4073 = vst.msk [vmem:[%s5495_s23 + $0xa8] sm:$0xff] %vm461_vm2, %v7301_v26 }
 0x46b   : > { %4074 = vst.msk [vmem:[%s5495_s23 + $0xb0] sm:$0xff] %vm461_vm2, %v7287_v61  ;;  %4075 = vst.msk [vmem:[%s5495_s23 + $0xb8] sm:$0xff] %vm461_vm2, %v7295_v56 }
 0x46c   : > { %4076 = vst.msk [vmem:[%s5495_s23 + $0xc0] sm:$0xff] %vm461_vm2, %v7317_v25  ;;  %4077 = vst.msk [vmem:[%s5495_s23 + $0xc8] sm:$0xff] %vm461_vm2, %v7325_v0 }
 0x46d   : > { %4078 = vst.msk [vmem:[%s5495_s23 + $0xd0] sm:$0xff] %vm461_vm2, %v7311_v62  ;;  %4079 = vst.msk [vmem:[%s5495_s23 + $0xd8] sm:$0xff] %vm461_vm2, %v7319_v51 }
 0x46e   : > { %4080 = vst.msk [vmem:[%s5495_s23 + $0xe0] sm:$0xff] %vm461_vm2, %v7341_v10  ;;  %4081 = vst.msk [vmem:[%s5495_s23 + $0xe8] sm:$0xff] %vm461_vm2, %v7349_v13 }
 0x46f   : > { %4082 = vst.msk [vmem:[%s5495_s23 + $0xf0] sm:$0xff] %vm461_vm2, %v7335_v1  ;;  %4083 = vst.msk [vmem:[%s5495_s23 + $0xf8] sm:$0xff] %vm461_vm2, %v7343_v53 }
 0x470 PF: > { %s4446_s15 = sshll.u32 %s5368_s16, 12  ;;  %s4110_s10 = sshll.u32 %s5495_s23, 4  ;;  %s7569_s10 = int_to_ptr.vmem [resolvable:$true] %s4110_s10 }
 0x471   : > { %s7566_s9 = scalar_lea.hbm %s7627_s3, %s4446_s15  ;;  %s7573_s11 = scalar_lea.sflag [#allocation5], %s197_s29 }
 0x472   : > { %s5288_s21 = scalar_lea.vmem %s7569_s10, 4096  ;;  %s5386_s16 = smov [#allocation4]  }
 0x473   : > { %p5289_p2 = scmp.ne.s32.totalorder %s7569_s10, %s5288_s21  ;;  %s5292_s26 = sshll.u32 %s5386_s16, 4  ;;  %s5293_s26 = int_to_ptr.vmem [resolvable:$false] %s5292_s26 }
 0x474   : > { %s5294_s30 = scalar_lea.vmem %s5293_s26, 8192  ;;  %p5295_p6 = scmp.lt.s32.totalorder %s7569_s10, %s5293_s26 }
 0x475   : > { %p5290_p4 = pnand %p5289_p2, %p5458_p3  ;;  %p5296_p7 = scmp.lt.s32.totalorder %s5294_s30, %s5288_s21 }
 0x477   : > { %p5291_p5 = pneg %p5290_p4  ;;  %p5297_p8 = por %p5296_p7, %p5295_p6 }
 0x479   : > { %p5298_p10 = pnand %p5297_p8, %p5291_p5 }
 0x47b   : > { %5301 = shalt.err (!%p5298_p10)
}
 0x47c   : > { %s5302_s23 = scalar_lea.hbm %s7566_s9, 4096  ;;  %s5306_s5 = scalar_lea.hbm %s7627_s3, 8192 }
 0x47d   : > { %p5303_p11 = scmp.ne.s32.totalorder %s7566_s9, %s5302_s23  ;;  %p5307_p0 = scmp.lt.s32.totalorder %s7566_s9, %s7627_s3 }
 0x47e   : > { %p5308_p1 = scmp.lt.s32.totalorder %s5306_s5, %s5302_s23 }
 0x47f   : > { %p5304_p12 = pnand %p5303_p11, %p5458_p3 }
 0x480   : > { %p5309_p2 = por %p5308_p1, %p5307_p0 }
 0x481   : > { %p5305_p13 = pneg %p5304_p12 }
 0x483   : > { %p5310_p4 = pnand %p5309_p2, %p5305_p13 }
 0x485   : > { %5313 = shalt.err (!%p5310_p4)
}
 0x486   : > { %s5387_s7 = smov 128   ;;  %s5388_s15 = smov 8  }
 0x487   : > { %4937 = dma.vmem_to_hbm [thread:$0]  (%p5458_p3), %s7569_s10, 4096, %s7566_s9, %s7573_s11, %s5387_s7, %s5387_s7, %s5388_s15  }
 0x488 PF: > { %p4943_p5 = scmp.ge.s32.totalorder %s5380_s19, 2  ;;  %s4137_s27 = sand.u32 1, %s5352_s12  }
 0x489   : > { %s4138_s8 = scalar_lea.sflag [#allocation5], %s4137_s27 }
 0x48a   : > { %p4940_p6 = pnand %p4943_p5, %p5468_p9 }
 0x48c   : > { %p4941_p7 = pneg %p4940_p6 }
 0x48e   : > { %5347 = dma.done.wait (%p4941_p7), %s4138_s8, 4096  }
 0x48f   : > { %5349 = vsyncadd (%p4941_p7), %s4138_s8, 4294963200  ;;  %s17_s19 = sadd.s32 1, %s5380_s19   ;;  %s7694_s24 = sld [smem:[#allocation7_spill]] }
 0x490   : > { %p14_p8 = scmp.ge.s32.totalorder %s17_s19, 18   ;;  %s7695_s12 = smov %s5356_s13 }
 0x491   : > { %s7696_s13 = smov %s5360_s14  ;;  %s7697_s14 = smov %s5476_s28 }
 0x492   : > { %s7698_s15 = smov %s5372_s17  ;;  %s7699_s16 = smov %s5376_s18 }
 0x493   : > { %s7700_s17 = smov %s7703_s22  ;;  %16 = sbr.rel (!%p14_p8) target bundleno = 5 (0x5), region = 84 }
 0x495   : > { %s7701_s18 = smov %s7694_s24 }
 0x498   :  { %4143 = vsyncpa [#allocation5], 1 }
 0x499   :  { %4145 = vsyncpa [#allocation5 + $0x1], 1 }

</bundles_post_ra>
